<compile_context>
chip_gen: v7x
topology: tpu7x:2x2x1
jax: 0.10.0
libtpu: 0.0.40
codegen_flags: <defaults>
</compile_context>

<pallas_src>
import functools

import numpy as np
import jax
import jax.numpy as jnp
from jax import lax
from jax.experimental import pallas as pl
from jax.experimental.pallas import tpu as pltpu


def _round_up(x, m):
    return (x + m - 1) // m * m


def bottleneck_kernel(x_ref, wa_ref, wb_ref, wc_ref, ba_ref, bb_ref, bc_ref,
                      o_ref, pad_ref, *, H1, W1, str3x3):
    # x_ref block: (1, Hs, Ws, Cin) bf16 -- one image, spatially pre-padded in
    # the wrapper (real data at rows [1,1+H1), cols [1,1+W1); Ws % 8 == 0).
    _, Hs, Ws, Cin = x_ref.shape
    Cbp = wa_ref.shape[1]
    _, H2, W2p, Coutp = o_ref.shape

    # ---- a: 1x1 conv (BN scale folded into wa) + bias + ReLU ----------------
    xm = x_ref[0].reshape(Hs * Ws, Cin)                    # free: Ws % 8 == 0
    ya = jnp.dot(xm, wa_ref[...], preferred_element_type=jnp.float32)
    ya = jnp.maximum(ya + ba_ref[...], 0.0)                # f32
    ya3 = ya.reshape(Hs, Ws, Cbp)

    # Zero everything outside the real columns [1, 1+W1): removes the
    # relu(bias) values produced at padded input columns and provides the 3x3
    # conv's zero padding in W with a single VPU select.
    col_idx = lax.broadcasted_iota(jnp.int32, (Hs, Ws, Cbp), 1)
    keep_w = (col_idx >= 1) & (col_idx <= W1)
    ya3 = jnp.where(keep_w, ya3, 0.0)

    # Aligned full-block store into the VMEM staging buffer, then zero the
    # top / bottom padding rows (two cheap aligned full-row stores).
    pad_ref[...] = ya3.astype(pad_ref.dtype)
    zrow = jnp.zeros((1, Ws, Cbp), pad_ref.dtype)
    pad_ref[0:1] = zrow
    pad_ref[H1 + 1:H1 + 2] = zrow

    # ---- b: 3x3 grouped conv (block-diag dense weight, scale folded) --------
    # Per-kh im2col: 3 W-shifted taps concatenated on the 128-aligned lane
    # axis -> K = 3*Cbp matmul, accumulated in f32 across the 3 kh rows.
    acc = None
    for kh in range(3):
        taps = []
        for kw in range(3):
            if str3x3 == 1:
                t = pad_ref[kh:kh + H2, kw:kw + W2p, :]
            else:
                # Strided output positions read strided taps (no wasted FLOPs).
                t = pad_ref[pl.ds(kh, H2, stride=str3x3),
                            pl.ds(kw, W2p, stride=str3x3), :]
            taps.append(t)
        col = jnp.concatenate(taps, axis=-1).reshape(H2 * W2p, 3 * Cbp)
        part = jnp.dot(col.astype(wb_ref.dtype), wb_ref[kh],
                       preferred_element_type=jnp.float32)
        acc = part if acc is None else acc + part
    yb = jnp.maximum(acc + bb_ref[...], 0.0)               # f32

    # ---- c: 1x1 conv + final BN (scale folded; bias only, no ReLU) ----------
    yc = jnp.dot(yb.astype(wc_ref.dtype), wc_ref[...],
                 preferred_element_type=jnp.float32)
    yc = yc + bc_ref[...]
    o_ref[0] = yc.reshape(H2, W2p, Coutp).astype(o_ref.dtype)


def bottleneck_forward(x_nchw, params, *, stride=1, stride_1x1=False, num_gs=1):
    # num_gs is baked into params["wb"]; kept in the signature for parity.
    del num_gs
    str1x1, str3x3 = (stride, 1) if stride_1x1 else (1, stride)

    x = jnp.transpose(x_nchw, (0, 2, 3, 1)).astype(jnp.bfloat16)   # NCHW->NHWC
    if str1x1 > 1:                                  # 1x1-conv stride up front
        x = x[:, ::str1x1, ::str1x1, :]
    N, H1, W1, Cin = x.shape
    Cbp = params["wa"].shape[1]
    Coutp = params["wc"].shape[1]
    w_out = params["w_out"]

    H2 = (H1 - 1) // str3x3 + 1
    W2 = (W1 - 1) // str3x3 + 1
    W2p = _round_up(W2, 8)                          # sublane-aligned output W
    Hs = H1 + 2
    Ws = _round_up(max(W1 + 2, str3x3 * (W2p - 1) + 3), 8)

    # Spatial pre-pad: real data at rows [1, 1+H1), cols [1, 1+W1).  Padded
    # values are irrelevant (the kernel masks them); zeros keep things tidy.
    x = jnp.pad(x, ((0, 0), (1, Hs - H1 - 1), (1, Ws - W1 - 1), (0, 0)))

    # f32 staging scratch on the strided path so strided sublane loads never
    # touch packed bf16 sublanes; bf16 on the (common) stride-1 path.
    pad_dtype = jnp.bfloat16 if str3x3 == 1 else jnp.float32

    kernel = functools.partial(bottleneck_kernel, H1=H1, W1=W1, str3x3=str3x3)

    # Conservative per-step VMEM estimate (double-buffered I/O + weights,
    # scratch, in-kernel temporaries), capped below v7x's 64 MiB per-core VMEM.
    est = (2 * Hs * Ws * Cin * 2                      # input double-buffer
           + 2 * H2 * W2p * Coutp * 2                 # bf16 output double-buffer
           + Hs * Ws * Cbp * np.dtype(pad_dtype).itemsize   # staging scratch
           + 2 * (Cin * Cbp + 9 * Cbp * Cbp + Cbp * Coutp) * 2  # weights
           + Hs * Ws * Cbp * 8                        # ya f32 + mask temporaries
           + H2 * W2p * 3 * Cbp * 4                   # tap concat
           + H2 * W2p * (Cbp + Coutp) * 4)            # f32 accumulators
    vmem_limit = int(min(2 * est + (16 << 20), 64 << 20))

    out = pl.pallas_call(
        kernel,
        out_shape=jax.ShapeDtypeStruct((N, H2, W2p, Coutp), jnp.bfloat16),
        grid=(N,),
        in_specs=[
            pl.BlockSpec((1, Hs, Ws, Cin), lambda n: (n, 0, 0, 0)),
            pl.BlockSpec((Cin, Cbp), lambda n: (0, 0)),            # wa (folded)
            pl.BlockSpec((3, 3 * Cbp, Cbp), lambda n: (0, 0, 0)),  # wb (im2col)
            pl.BlockSpec((Cbp, Coutp), lambda n: (0, 0)),          # wc (folded)
            pl.BlockSpec((1, Cbp), lambda n: (0, 0)),              # bias a
            pl.BlockSpec((1, Cbp), lambda n: (0, 0)),              # bias b
            pl.BlockSpec((1, Coutp), lambda n: (0, 0)),            # bias c
        ],
        out_specs=pl.BlockSpec((1, H2, W2p, Coutp), lambda n: (n, 0, 0, 0)),
        scratch_shapes=[pltpu.VMEM((Hs, Ws, Cbp), pad_dtype)],
        compiler_params=pltpu.CompilerParams(
            dimension_semantics=("parallel",),
            vmem_limit_bytes=vmem_limit),
    )(x, params["wa"], params["wb"], params["wc"],
      params["ba_pad"], params["bb_pad"], params["bc_pad"])

    out = out[:, :, :W2, :w_out]                    # drop W / channel padding
    return jnp.transpose(out, (0, 3, 1, 2))         # NHWC -> NCHW (bf16)


# ------------------------------ reference (pure JAX) -------------------------
def reference_forward(x, p, *, stride, stride_1x1, num_gs):
    """Same math as the module in inference mode, realized with the same TPU
    numerics as the kernel: BN scale folded into bf16 weights, bf16 conv
    inputs, f32 accumulation, f32 bias/ReLU."""
    str1, str3 = (stride, 1) if stride_1x1 else (1, stride)
    dn = ("NCHW", "OIHW", "NCHW")

    def conv(y, w_oihw, scale, stride_, pad, groups=1):
        w = (w_oihw * scale[:, None, None, None]).astype(jnp.bfloat16)
        return jax.lax.conv_general_dilated(
            y.astype(jnp.bfloat16), w, (stride_, stride_), pad,
            feature_group_count=groups, dimension_numbers=dn,
            preferred_element_type=jnp.float32)

    y = conv(x, p["wa_oihw"], p["sa"], str1, "VALID")
    y = jnp.maximum(y + p["ba"][None, :, None, None], 0.0)
    y = conv(y, p["wb_oihw"], p["sb"], str3, ((1, 1), (1, 1)), groups=num_gs)
    y = jnp.maximum(y + p["bb"][None, :, None, None], 0.0)
    y = conv(y, p["wc_oihw"], p["sc"], 1, "VALID")
    return y + p["bc"][None, :, None, None]


# ------------------------------ parameter setup ------------------------------
def make_params(key, w_in, w_b, w_out, num_gs, eps=1e-5):
    ks = jax.random.split(key, 6)
    wa_oihw = jax.random.normal(ks[0], (w_b, w_in, 1, 1), jnp.float32) * 0.1
    wb_oihw = jax.random.normal(ks[1], (w_b, w_b // num_gs, 3, 3), jnp.float32) * 0.1
    wc_oihw = jax.random.normal(ks[2], (w_out, w_b, 1, 1), jnp.float32) * 0.1

    def make_bn(k, c):
        k1, k2, k3, k4 = jax.random.split(k, 4)
        gamma = 1.0 + 0.1 * jax.random.normal(k1, (c,), jnp.float32)
        beta = 0.1 * jax.random.normal(k2, (c,), jnp.float32)
        mean = 0.1 * jax.random.normal(k3, (c,), jnp.float32)
        var = jax.random.uniform(k4, (c,), jnp.float32, 0.5, 1.5)
        scale = gamma / jnp.sqrt(var + eps)
        shift = beta - mean * scale
        return scale, shift

    sa, ba = make_bn(ks[3], w_b)
    sb, bb = make_bn(ks[4], w_b)
    sc, bc = make_bn(ks[5], w_out)

    # --- kernel layouts: BN scale folded into bf16 weights, channels padded --
    # --- to multiples of 128 lanes (extra rows/cols are zero), f32 biases ----
    Cbp = _round_up(w_b, 128)
    Coutp = _round_up(w_out, 128)

    wa = np.zeros((w_in, Cbp), np.float32)
    wa[:, :w_b] = np.asarray(wa_oihw)[:, :, 0, 0].T * np.asarray(sa)[None, :]

    # grouped 3x3 -> block-diagonal dense weight in per-kh im2col row order:
    # row index (within kh block) = kw*Cbp + ci, column = output channel.
    cg = w_b // num_gs
    wbv = np.asarray(wb_oihw)
    sbv = np.asarray(sb)
    wb = np.zeros((3, 3 * Cbp, Cbp), np.float32)
    for oc in range(w_b):
        g = oc // cg
        for kh in range(3):
            for kw in range(3):
                wb[kh, kw * Cbp + g * cg: kw * Cbp + (g + 1) * cg, oc] = \
                    wbv[oc, :, kh, kw] * sbv[oc]

    wc = np.zeros((Cbp, Coutp), np.float32)
    wc[:w_b, :w_out] = np.asarray(wc_oihw)[:, :, 0, 0].T * np.asarray(sc)[None, :]

    def pad_bias(b, cpad):
        out = np.zeros((1, cpad), np.float32)
        out[0, :b.shape[0]] = np.asarray(b)
        return jnp.asarray(out)

    return dict(
        wa=jnp.asarray(wa, jnp.bfloat16),
        wb=jnp.asarray(wb, jnp.bfloat16),
        wc=jnp.asarray(wc, jnp.bfloat16),
        ba_pad=pad_bias(ba, Cbp), bb_pad=pad_bias(bb, Cbp),
        bc_pad=pad_bias(bc, Coutp),
        w_out=w_out,
        # un-fused copies for the pure-JAX reference
        wa_oihw=wa_oihw, wb_oihw=wb_oihw, wc_oihw=wc_oihw,
        sa=sa, ba=ba, sb=sb, bb=bb, sc=sc, bc=bc)


if __name__ == "__main__":
    configs = [
        # (w_in, w_b, w_out, num_gs, stride, stride_1x1, N, H, W)
        dict(w_in=8, w_b=8, w_out=16, num_gs=2, stride=1, stride_1x1=False,
             N=2, H=16, W=16),
        dict(w_in=16, w_b=8, w_out=16, num_gs=1, stride=2, stride_1x1=True,
             N=2, H=16, W=16),
        dict(w_in=8, w_b=16, w_out=32, num_gs=4, stride=2, stride_1x1=False,
             N=2, H=16, W=16),   # exercises the strided 3x3 path
    ]

    key = jax.random.PRNGKey(0)
    for cfg in configs:
        key, k_param, k_x = jax.random.split(key, 3)
        params = make_params(k_param, cfg["w_in"], cfg["w_b"], cfg["w_out"],
                             cfg["num_gs"])
        x = jax.random.normal(k_x, (cfg["N"], cfg["w_in"], cfg["H"], cfg["W"]),
                              jnp.float32)          # NCHW like PyTorch

        out = bottleneck_forward(x, params, stride=cfg["stride"],
                                 stride_1x1=cfg["stride_1x1"],
                                 num_gs=cfg["num_gs"])
        out = jax.block_until_ready(out)

        ref = reference_forward(x, params, stride=cfg["stride"],
                                stride_1x1=cfg["stride_1x1"],
                                num_gs=cfg["num_gs"])
        ref = jax.block_until_ready(ref)

        assert out.shape == ref.shape, (out.shape, ref.shape)
        # Kernel output is bf16; compare against the f32 reference with
        # bf16-level tolerances.
        np.testing.assert_allclose(np.asarray(out.astype(jnp.float32)),
                                   np.asarray(ref), rtol=1e-2, atol=5e-3)

    print("KERNEL_OK")
</pallas_src>

<mosaic_0001>
module attributes {stable_mosaic.version = 11 : i64} {
  func.func @bottleneck_kernel(%arg0: i32, %arg1: memref<1x18x24x8xbf16, #tpu.memory_space<vmem>>, %arg2: memref<8x128xbf16, #tpu.memory_space<vmem>>, %arg3: memref<3x384x128xbf16, #tpu.memory_space<vmem>>, %arg4: memref<128x128xbf16, #tpu.memory_space<vmem>>, %arg5: memref<1x128xf32, #tpu.memory_space<vmem>>, %arg6: memref<1x128xf32, #tpu.memory_space<vmem>>, %arg7: memref<1x128xf32, #tpu.memory_space<vmem>>, %arg8: memref<1x16x16x128xbf16, #tpu.memory_space<vmem>>, %arg9: memref<18x24x128xbf16, #tpu.memory_space<vmem>>) attributes {dimension_semantics = [#tpu.dimension_semantics<parallel>], iteration_bounds = array<i64: 2>, scalar_prefetch = 0 : i64, scratch_operands = 1 : i64, tpu.core_type = #tpu.core_type<tc>, window_params = [{transform_indices = @transform_0, window_bounds = array<i64: 1, 18, 24, 8>}, {pipeline_mode = #tpu.pipeline_mode<synchronous>, transform_indices = @transform_1, window_bounds = array<i64: 8, 128>}, {pipeline_mode = #tpu.pipeline_mode<synchronous>, transform_indices = @transform_2, window_bounds = array<i64: 3, 384, 128>}, {pipeline_mode = #tpu.pipeline_mode<synchronous>, transform_indices = @transform_3, window_bounds = array<i64: 128, 128>}, {pipeline_mode = #tpu.pipeline_mode<synchronous>, transform_indices = @transform_4, window_bounds = array<i64: 1, 128>}, {pipeline_mode = #tpu.pipeline_mode<synchronous>, transform_indices = @transform_5, window_bounds = array<i64: 1, 128>}, {pipeline_mode = #tpu.pipeline_mode<synchronous>, transform_indices = @transform_6, window_bounds = array<i64: 1, 128>}, {transform_indices = @transform_7, window_bounds = array<i64: 1, 16, 16, 128>}]} {
    %c0 = arith.constant 0 : index
    %c0_0 = arith.constant 0 : index
    %c0_1 = arith.constant 0 : index
    %c0_2 = arith.constant 0 : index
    %0 = vector.load %arg1[%c0, %c0_0, %c0_1, %c0_2] : memref<1x18x24x8xbf16, #tpu.memory_space<vmem>>, vector<1x18x24x8xbf16>
    %1 = vector.shape_cast %0 : vector<1x18x24x8xbf16> to vector<18x24x8xbf16>
    %2 = vector.shape_cast %1 : vector<18x24x8xbf16> to vector<432x8xbf16>
    %c0_3 = arith.constant 0 : index
    %c0_4 = arith.constant 0 : index
    %3 = vector.load %arg2[%c0_3, %c0_4] : memref<8x128xbf16, #tpu.memory_space<vmem>>, vector<8x128xbf16>
    %cst = arith.constant dense<0.000000e+00> : vector<432x128xf32>
    %4 = tpu.matmul %2, %3, %cst {dimension_numbers = #tpu.dot_dimension_numbers<[1], [0], [0], [1], [0, 0, 1, 1], [], []>} : vector<432x8xbf16>, vector<8x128xbf16>, vector<432x128xf32> -> vector<432x128xf32>
    %c0_5 = arith.constant 0 : index
    %c0_6 = arith.constant 0 : index
    %5 = vector.load %arg5[%c0_5, %c0_6] : memref<1x128xf32, #tpu.memory_space<vmem>>, vector<1x128xf32>
    %6 = vector.broadcast %5 : vector<1x128xf32> to vector<432x128xf32>
    %7 = arith.addf %4, %6 : vector<432x128xf32>
    %cst_7 = arith.constant 0.000000e+00 : f32
    %8 = vector.broadcast %cst_7 : f32 to vector<432x128xf32>
    %9 = arith.maximumf %7, %8 : vector<432x128xf32>
    %10 = vector.shape_cast %9 : vector<432x128xf32> to vector<18x24x128xf32>
    %11 = tpu.iota {dimensions = array<i32: 1>} : vector<18x24x128xi32>
    %c1_i32 = arith.constant 1 : i32
    %12 = vector.broadcast %c1_i32 : i32 to vector<18x24x128xi32>
    %13 = arith.cmpi sge, %11, %12 : vector<18x24x128xi32>
    %c16_i32 = arith.constant 16 : i32
    %14 = vector.broadcast %c16_i32 : i32 to vector<18x24x128xi32>
    %15 = arith.cmpi sle, %11, %14 : vector<18x24x128xi32>
    %16 = arith.andi %13, %15 : vector<18x24x128xi1>
    %cst_8 = arith.constant 0.000000e+00 : f32
    %17 = vector.broadcast %cst_8 : f32 to vector<18x24x128xf32>
    %18 = arith.select %16, %10, %17 : vector<18x24x128xi1>, vector<18x24x128xf32>
    %19 = arith.truncf %18 : vector<18x24x128xf32> to vector<18x24x128xbf16>
    %c0_9 = arith.constant 0 : index
    %c0_10 = arith.constant 0 : index
    %c0_11 = arith.constant 0 : index
    %20 = vector.load %arg9[%c0_9, %c0_10, %c0_11] : memref<18x24x128xbf16, #tpu.memory_space<vmem>>, vector<18x24x128xbf16>
    tpu.vector_store %arg9[%c0_9, %c0_10, %c0_11], %19 {strides = array<i32>} : memref<18x24x128xbf16, #tpu.memory_space<vmem>>, vector<18x24x128xbf16>,
    %cst_12 = arith.constant 0.000000e+00 : bf16
    %21 = vector.broadcast %cst_12 : bf16 to vector<1x24x128xbf16>
    %c0_13 = arith.constant 0 : index
    %c0_14 = arith.constant 0 : index
    %c0_15 = arith.constant 0 : index
    %22 = vector.load %arg9[%c0_13, %c0_14, %c0_15] : memref<18x24x128xbf16, #tpu.memory_space<vmem>>, vector<1x24x128xbf16>
    tpu.vector_store %arg9[%c0_13, %c0_14, %c0_15], %21 {strides = array<i32>} : memref<18x24x128xbf16, #tpu.memory_space<vmem>>, vector<1x24x128xbf16>,
    %c17 = arith.constant 17 : index
    %c0_16 = arith.constant 0 : index
    %c0_17 = arith.constant 0 : index
    %23 = vector.load %arg9[%c17, %c0_16, %c0_17] : memref<18x24x128xbf16, #tpu.memory_space<vmem>>, vector<1x24x128xbf16>
    tpu.vector_store %arg9[%c17, %c0_16, %c0_17], %21 {strides = array<i32>} : memref<18x24x128xbf16, #tpu.memory_space<vmem>>, vector<1x24x128xbf16>,
    %c0_18 = arith.constant 0 : index
    %c0_19 = arith.constant 0 : index
    %c0_20 = arith.constant 0 : index
    %24 = vector.load %arg9[%c0_18, %c0_19, %c0_20] : memref<18x24x128xbf16, #tpu.memory_space<vmem>>, vector<16x16x128xbf16>
    %c0_21 = arith.constant 0 : index
    %c1 = arith.constant 1 : index
    %c0_22 = arith.constant 0 : index
    %25 = vector.load %arg9[%c0_21, %c1, %c0_22] : memref<18x24x128xbf16, #tpu.memory_space<vmem>>, vector<16x16x128xbf16>
    %c0_23 = arith.constant 0 : index
    %c2 = arith.constant 2 : index
    %c0_24 = arith.constant 0 : index
    %26 = vector.load %arg9[%c0_23, %c2, %c0_24] : memref<18x24x128xbf16, #tpu.memory_space<vmem>>, vector<16x16x128xbf16>
    %27 = tpu.concatenate %24, %25, %26 in 2 : vector<16x16x128xbf16>, vector<16x16x128xbf16>, vector<16x16x128xbf16> -> vector<16x16x384xbf16>
    %28 = vector.shape_cast %27 : vector<16x16x384xbf16> to vector<256x384xbf16>
    %c0_25 = arith.constant 0 : index
    %c0_26 = arith.constant 0 : index
    %c0_27 = arith.constant 0 : index
    %29 = vector.load %arg3[%c0_25, %c0_26, %c0_27] : memref<3x384x128xbf16, #tpu.memory_space<vmem>>, vector<1x384x128xbf16>
    %30 = vector.shape_cast %29 : vector<1x384x128xbf16> to vector<384x128xbf16>
    %cst_28 = arith.constant dense<0.000000e+00> : vector<256x128xf32>
    %31 = tpu.matmul %28, %30, %cst_28 {dimension_numbers = #tpu.dot_dimension_numbers<[1], [0], [0], [1], [0, 0, 1, 1], [], []>} : vector<256x384xbf16>, vector<384x128xbf16>, vector<256x128xf32> -> vector<256x128xf32>
    %c1_29 = arith.constant 1 : index
    %c0_30 = arith.constant 0 : index
    %c0_31 = arith.constant 0 : index
    %32 = vector.load %arg9[%c1_29, %c0_30, %c0_31] : memref<18x24x128xbf16, #tpu.memory_space<vmem>>, vector<16x16x128xbf16>
    %c1_32 = arith.constant 1 : index
    %c1_33 = arith.constant 1 : index
    %c0_34 = arith.constant 0 : index
    %33 = vector.load %arg9[%c1_32, %c1_33, %c0_34] : memref<18x24x128xbf16, #tpu.memory_space<vmem>>, vector<16x16x128xbf16>
    %c1_35 = arith.constant 1 : index
    %c2_36 = arith.constant 2 : index
    %c0_37 = arith.constant 0 : index
    %34 = vector.load %arg9[%c1_35, %c2_36, %c0_37] : memref<18x24x128xbf16, #tpu.memory_space<vmem>>, vector<16x16x128xbf16>
    %35 = tpu.concatenate %32, %33, %34 in 2 : vector<16x16x128xbf16>, vector<16x16x128xbf16>, vector<16x16x128xbf16> -> vector<16x16x384xbf16>
    %36 = vector.shape_cast %35 : vector<16x16x384xbf16> to vector<256x384xbf16>
    %c1_38 = arith.constant 1 : index
    %c0_39 = arith.constant 0 : index
    %c0_40 = arith.constant 0 : index
    %37 = vector.load %arg3[%c1_38, %c0_39, %c0_40] : memref<3x384x128xbf16, #tpu.memory_space<vmem>>, vector<1x384x128xbf16>
    %38 = vector.shape_cast %37 : vector<1x384x128xbf16> to vector<384x128xbf16>
    %cst_41 = arith.constant dense<0.000000e+00> : vector<256x128xf32>
    %39 = tpu.matmul %36, %38, %cst_41 {dimension_numbers = #tpu.dot_dimension_numbers<[1], [0], [0], [1], [0, 0, 1, 1], [], []>} : vector<256x384xbf16>, vector<384x128xbf16>, vector<256x128xf32> -> vector<256x128xf32>
    %40 = arith.addf %31, %39 : vector<256x128xf32>
    %c2_42 = arith.constant 2 : index
    %c0_43 = arith.constant 0 : index
    %c0_44 = arith.constant 0 : index
    %41 = vector.load %arg9[%c2_42, %c0_43, %c0_44] : memref<18x24x128xbf16, #tpu.memory_space<vmem>>, vector<16x16x128xbf16>
    %c2_45 = arith.constant 2 : index
    %c1_46 = arith.constant 1 : index
    %c0_47 = arith.constant 0 : index
    %42 = vector.load %arg9[%c2_45, %c1_46, %c0_47] : memref<18x24x128xbf16, #tpu.memory_space<vmem>>, vector<16x16x128xbf16>
    %c2_48 = arith.constant 2 : index
    %c2_49 = arith.constant 2 : index
    %c0_50 = arith.constant 0 : index
    %43 = vector.load %arg9[%c2_48, %c2_49, %c0_50] : memref<18x24x128xbf16, #tpu.memory_space<vmem>>, vector<16x16x128xbf16>
    %44 = tpu.concatenate %41, %42, %43 in 2 : vector<16x16x128xbf16>, vector<16x16x128xbf16>, vector<16x16x128xbf16> -> vector<16x16x384xbf16>
    %45 = vector.shape_cast %44 : vector<16x16x384xbf16> to vector<256x384xbf16>
    %c2_51 = arith.constant 2 : index
    %c0_52 = arith.constant 0 : index
    %c0_53 = arith.constant 0 : index
    %46 = vector.load %arg3[%c2_51, %c0_52, %c0_53] : memref<3x384x128xbf16, #tpu.memory_space<vmem>>, vector<1x384x128xbf16>
    %47 = vector.shape_cast %46 : vector<1x384x128xbf16> to vector<384x128xbf16>
    %cst_54 = arith.constant dense<0.000000e+00> : vector<256x128xf32>
    %48 = tpu.matmul %45, %47, %cst_54 {dimension_numbers = #tpu.dot_dimension_numbers<[1], [0], [0], [1], [0, 0, 1, 1], [], []>} : vector<256x384xbf16>, vector<384x128xbf16>, vector<256x128xf32> -> vector<256x128xf32>
    %49 = arith.addf %40, %48 : vector<256x128xf32>
    %c0_55 = arith.constant 0 : index
    %c0_56 = arith.constant 0 : index
    %50 = vector.load %arg6[%c0_55, %c0_56] : memref<1x128xf32, #tpu.memory_space<vmem>>, vector<1x128xf32>
    %51 = vector.broadcast %50 : vector<1x128xf32> to vector<256x128xf32>
    %52 = arith.addf %49, %51 : vector<256x128xf32>
    %cst_57 = arith.constant 0.000000e+00 : f32
    %53 = vector.broadcast %cst_57 : f32 to vector<256x128xf32>
    %54 = arith.maximumf %52, %53 : vector<256x128xf32>
    %55 = arith.truncf %54 : vector<256x128xf32> to vector<256x128xbf16>
    %c0_58 = arith.constant 0 : index
    %c0_59 = arith.constant 0 : index
    %56 = vector.load %arg4[%c0_58, %c0_59] : memref<128x128xbf16, #tpu.memory_space<vmem>>, vector<128x128xbf16>
    %cst_60 = arith.constant dense<0.000000e+00> : vector<256x128xf32>
    %57 = tpu.matmul %55, %56, %cst_60 {dimension_numbers = #tpu.dot_dimension_numbers<[1], [0], [0], [1], [0, 0, 1, 1], [], []>} : vector<256x128xbf16>, vector<128x128xbf16>, vector<256x128xf32> -> vector<256x128xf32>
    %c0_61 = arith.constant 0 : index
    %c0_62 = arith.constant 0 : index
    %58 = vector.load %arg7[%c0_61, %c0_62] : memref<1x128xf32, #tpu.memory_space<vmem>>, vector<1x128xf32>
    %59 = vector.broadcast %58 : vector<1x128xf32> to vector<256x128xf32>
    %60 = arith.addf %57, %59 : vector<256x128xf32>
    %61 = vector.shape_cast %60 : vector<256x128xf32> to vector<16x16x128xf32>
    %62 = arith.truncf %61 : vector<16x16x128xf32> to vector<16x16x128xbf16>
    %c0_63 = arith.constant 0 : index
    %c0_64 = arith.constant 0 : index
    %c0_65 = arith.constant 0 : index
    %c0_66 = arith.constant 0 : index
    %63 = vector.load %arg8[%c0_63, %c0_64, %c0_65, %c0_66] : memref<1x16x16x128xbf16, #tpu.memory_space<vmem>>, vector<1x16x16x128xbf16>
    %64 = vector.shape_cast %63 : vector<1x16x16x128xbf16> to vector<16x16x128xbf16>
    %65 = vector.shape_cast %62 : vector<16x16x128xbf16> to vector<1x16x16x128xbf16>
    tpu.vector_store %arg8[%c0_63, %c0_64, %c0_65, %c0_66], %65 {strides = array<i32>} : memref<1x16x16x128xbf16, #tpu.memory_space<vmem>>, vector<1x16x16x128xbf16>,
    return
  }
  func.func @transform_0(%arg0: i32) -> (i32, i32, i32, i32) {
    %c0_i32 = arith.constant 0 : i32
    %c0_i32_0 = arith.constant 0 : i32
    %c0_i32_1 = arith.constant 0 : i32
    %c0_i32_2 = arith.constant 0 : i32
    return %arg0, %c0_i32, %c0_i32_0, %c0_i32_1 : i32, i32, i32, i32
  }
  func.func @transform_1(%arg0: i32) -> (i32, i32) {
    %c0_i32 = arith.constant 0 : i32
    %c0_i32_0 = arith.constant 0 : i32
    %c0_i32_1 = arith.constant 0 : i32
    return %c0_i32, %c0_i32_0 : i32, i32
  }
  func.func @transform_2(%arg0: i32) -> (i32, i32, i32) {
    %c0_i32 = arith.constant 0 : i32
    %c0_i32_0 = arith.constant 0 : i32
    %c0_i32_1 = arith.constant 0 : i32
    %c0_i32_2 = arith.constant 0 : i32
    return %c0_i32, %c0_i32_0, %c0_i32_1 : i32, i32, i32
  }
  func.func @transform_3(%arg0: i32) -> (i32, i32) {
    %c0_i32 = arith.constant 0 : i32
    %c0_i32_0 = arith.constant 0 : i32
    %c0_i32_1 = arith.constant 0 : i32
    return %c0_i32, %c0_i32_0 : i32, i32
  }
  func.func @transform_4(%arg0: i32) -> (i32, i32) {
    %c0_i32 = arith.constant 0 : i32
    %c0_i32_0 = arith.constant 0 : i32
    %c0_i32_1 = arith.constant 0 : i32
    return %c0_i32, %c0_i32_0 : i32, i32
  }
  func.func @transform_5(%arg0: i32) -> (i32, i32) {
    %c0_i32 = arith.constant 0 : i32
    %c0_i32_0 = arith.constant 0 : i32
    %c0_i32_1 = arith.constant 0 : i32
    return %c0_i32, %c0_i32_0 : i32, i32
  }
  func.func @transform_6(%arg0: i32) -> (i32, i32) {
    %c0_i32 = arith.constant 0 : i32
    %c0_i32_0 = arith.constant 0 : i32
    %c0_i32_1 = arith.constant 0 : i32
    return %c0_i32, %c0_i32_0 : i32, i32
  }
  func.func @transform_7(%arg0: i32) -> (i32, i32, i32, i32) {
    %c0_i32 = arith.constant 0 : i32
    %c0_i32_0 = arith.constant 0 : i32
    %c0_i32_1 = arith.constant 0 : i32
    %c0_i32_2 = arith.constant 0 : i32
    return %arg0, %c0_i32, %c0_i32_0, %c0_i32_1 : i32, i32, i32, i32
  }
}

</mosaic_0001>

<bundles_post_ra>
// kernel: tpu_custom_call.1
= control target key start
LH: loop header
LB: loop body
LE: loop exit
PB: predicated region body
PF: predicated region fallthrough
CT: control target
= control target key end

     0   :  { %12 = vsyncpa [#allocation4], 0  ;;  %s8669_s0 = inlined_call_operand.vmem [shape: bf16[2,18,24,8], index: 0, kind: input, shape index: {}]   ;;  %s8670_s1 = inlined_call_operand.vmem [shape: bf16[8,128], index: 1, kind: input, shape index: {}]   ;;  %s8671_s2 = inlined_call_operand.vmem [shape: bf16[3,384,128], index: 2, kind: input, shape index: {}]   ;;  %s8672_s3 = inlined_call_operand.hbm [shape: bf16[128,128], index: 3, kind: input, shape index: {}]   ;;  %s8673_s4 = inlined_call_operand.vmem [shape: f32[1,128], index: 4, kind: input, shape index: {}]   ;;  %s8674_s5 = inlined_call_operand.vmem [shape: f32[1,128], index: 5, kind: input, shape index: {}]   ;;  %s8675_s6 = inlined_call_operand.vmem [shape: f32[1,128], index: 6, kind: input, shape index: {}]   ;;  %s8676_s7 = inlined_call_operand.hbm [shape: bf16[2,16,16,128], index: 7, kind: output, shape index: {}]  }
   0x1   :  { %13 = vsyncpa [#allocation5], 0 }
   0x2   :  { %15 = vsyncpa [#allocation5 + $0x1], 0  ;;  %s7199_s24 = smov 0   ;;  %s7201_s25 = smov 0  }
   0x3   :  { %s7203_s26 = smov 0   ;;  %s7205_s27 = smov 0  }
   0x4 LB: > { %s7220_s28 = sadd.s32 4294967295, %s7148_s27   ;;  %s4972_s29 = sadd.s32 4294967294, %s7148_s27   ;;  %s7148_s27 = sphi %s7205_s27, %s8720_s27   ;;  %s7144_s26 = sphi %s7203_s26, %s8719_s26   ;;  %s7140_s25 = sphi %s7201_s25, %s8718_s25   ;;  %s7136_s24 = sphi %s7199_s24, %s8717_s24  }
   0x5   : > { %s7224_s30 = sadd.s32 1, %s7148_s27   ;;  %s180_s8 = sadd.s32 1, %s7144_s26 }
   0x6   : > { %s177_s9 = ssub.s32 %s7148_s27, %s7224_s30  ;;  %p190_p0 = scmp.ne.s32.totalorder %s7144_s26, %s7140_s25 }
   0x7   : > { %p178_p1 = scmp.eq.s32.totalorder %s177_s9, 0  ;;  %p191_p2 = scmp.eq.s32.totalorder %s7220_s28, 1 }
   0x8   : > { %p196_p3 = scmp.ne.s32.totalorder %s7140_s25, %s7136_s24  ;;  %p197_p4 = scmp.eq.s32.totalorder %s4972_s29, 1 }
   0x9   : > { %s7235_s10 = scalar_select %p178_p1, %s7144_s26, %s180_s8  }
   0xa   : > { %p7237_p5 = por %p191_p2, %p190_p0  ;;  %p7241_p6 = por %p197_p4, %p196_p3 }
   0xb   : > { %p4973_p7 = scmp.ge.s32.totalorder %s7148_s27, 1  ;;  %p204_p8 = scmp.lt.s32.totalorder %s7148_s27, 3 }
   0xc   : > { %s8680_s11 = scalar_select %p7237_p5, 1, 0 }
   0xd   : > { %s8681_s12 = scalar_select %p7241_p6, 1, 0 }
   0xe   : > { %p8677_p9 = scmp.eq.s32.totalorder %s7220_s28, 0  ;;  %p7248_p10 = pnand %p4973_p7, %p204_p8 }
   0xf   : > { %s7150_s14 = smov [#allocation3]   ;;  %s7054_s19 = scalar_lea.hbm %s8672_s3, 1024 }
  0x10   : > { %s8682_s13 = scalar_select %p7248_p10, 1, 0 }
  0x11   : > { %s222_s15 = sshll.u32 %s7150_s14, 4  ;;  %p6736_p11 = pneg %p7248_p10  ;;  %s223_s15 = int_to_ptr.vmem [resolvable:$true] %s222_s15 }
  0x12   : > { %p7055_p13 = scmp.ne.s32.totalorder %s8672_s3, %s7054_s19  ;;  %p7061_p3 = scmp.lt.u32.totalorder %s7054_s19, %s8672_s3 }
  0x13   : > { %p7256_p12 = pnand %p8677_p9, %p6736_p11 }
  0x15   : > { %p7056_p0 = pneg %p7256_p12 }
  0x17   : > { %p7057_p1 = pnand %p7056_p0, %p7055_p13 }
  0x19   : > { %p7058_p2 = pneg %p7057_p1 }
  0x1b   : > { %p7063_p4 = pnand %p7061_p3, %p7058_p2 }
  0x1d   : > { %7066 = shalt.err (!%p7063_p4)
}
  0x1e   : > { %s7067_s29 = scalar_lea.vmem %s223_s15, 1024  ;;  %p7075_p9 = scmp.lt.s32.totalorder %s223_s15, %s223_s15 }
  0x1f   : > { %p7068_p7 = scmp.ne.s32.totalorder %s223_s15, %s7067_s29  ;;  %p7076_p6 = scmp.lt.s32.totalorder %s7067_s29, %s7067_s29 }
  0x21   : > { %p7070_p8 = pnand %p7068_p7, %p7056_p0  ;;  %p7077_p5 = por %p7076_p6, %p7075_p9 }
  0x23   : > { %p7071_p11 = pneg %p7070_p8 }
  0x25   : > { %p7078_p10 = pnand %p7077_p5, %p7071_p11 }
  0x27   : > { %7081 = shalt.err (!%p7078_p10)
}
  0x28   : > { %s7151_s8 = smov 64   ;;  %s7152_s9 = smov 4  }
  0x29   : > { %6739 = dma.hbm_to_vmem [thread:$0]  (!%p7256_p12), %s8672_s3, 1024, %s223_s15, [#allocation4], %s7151_s8, %s7151_s8, %s7152_s9  }
  0x2a   : > { %p8684_p13 = scmp.ne.s32.totalorder %s8682_s13, 0 }
  0x2c   : > { %255 = sbr.rel (%p8684_p13) target bundleno = 1275 (0x4fb), region = 48 }
  0x33   : > { %p8685_p1 = scmp.eq.s32.totalorder %s7220_s28, 0 }
  0x35   : > { %7127 = dma.done.wait (%p8685_p1), [#allocation4], 1024   ;;  %p8686_p0 = pmov %p8685_p1 }
  0x36   : > { %p287_p5 = scmp.lt.s32.totalorder %s7220_s28, 1  ;;  %v7153_v0 = vmov 0.0   ;;  %vm7154_vm0 = vmmov 0   ;;  %vm572_vm1 = vcmask 1043456   ;;  %v347_v1 = vld [vmem:[%s8670_s1] sm:$0xf]  ;;  %v879_v47 = vlaneseq }
  0x37   : > { %7129 = vsyncadd (%p8686_p0), [#allocation4], 4294966272  ;;  %6251 = vmatprep.subr.bf16.mxu0 %v7153_v0  ;;  %6253 = vmatprep.mubr.msk.bf16.mxu0 %vm7154_vm0, %v7153_v0  ;;  %v574_v2 = vsel %vm572_vm1, %v347_v1, 0  ;;  %vm490_vm2 = vcmask 64512   ;;  %v6813_v16 = vld [vmem:[%s8671_s2 + $0x100] sm:$0xff]   ;;  %v6815_v18 = vld [vmem:[%s8671_s2 + $0x108] sm:$0xff]  }
  0x38   : > { %s288_s15 = scalar_select %p287_p5, %s7220_s28, 1  ;;  %6252 = vmatpush3.bf16.msra.mxu0 %v574_v2  ;;  %v6814_v17 = vld [vmem:[%s8671_s2 + $0xc0] sm:$0xff]   ;;  %6553 = vmatprep.subr.bf16.mxu1 %v6813_v16  ;;  %v6816_v19 = vld [vmem:[%s8671_s2 + $0xc8] sm:$0xff]   ;;  %v6817_v21 = vld [vmem:[%s8671_s2 + $0x110] sm:$0xff]   ;;  %v7457_v49 = vshrl.u32 %v879_v47, 7  ;;  %vm1706_vm5 = vcmask 1046528  }
  0x39   : > { %5819 = vmatprep.subr.bf16.mxu0 %v6813_v16  ;;  %6561 = vmatpush3.bf16.msra.mxu1 %v6814_v17  ;;  %v6818_v22 = vld [vmem:[%s8671_s2 + $0xd0] sm:$0xff]   ;;  %v6819_v23 = vld [vmem:[%s8671_s2 + $0x118] sm:$0xff]   ;;  %v6821_v26 = vld [vmem:[%s8671_s2 + $0x120] sm:$0xff]   ;;  %vm1449_vm6 = vsmask.f32 7424  ;;  %s284_s22 = sand.u32 1, %s7140_s25  }
  0x3a   : > { %s6729_s16 = smul.u32 216, %s288_s15  ;;  %6554 = vmatprep.subr.bf16.mxu1 %v6815_v18  ;;  %v6820_v24 = vld [vmem:[%s8671_s2 + $0xd8] sm:$0xff]   ;;  %v6822_v27 = vld [vmem:[%s8671_s2 + $0xe0] sm:$0xff]   ;;  %v6823_v28 = vld [vmem:[%s8671_s2 + $0x128] sm:$0xff]   ;;  %vm883_vm3 = vcmp.ge.s32.totalorder %v7457_v49, 1  ;;  %v7465_v60 = vadd.s32 16, %v7457_v49 }
  0x3b   : > { %v6824_v29 = vld [vmem:[%s8671_s2 + $0xe8] sm:$0xff]   ;;  %v6826_v31 = vld [vmem:[%s8671_s2 + $0x130] sm:$0xff]   ;;  %v6828_v33 = vld [vmem:[%s8671_s2 + $0x138] sm:$0xff]   ;;  %s4978_s8 = sshll.u32 %s284_s22, 7  ;;  %s5534_s14 = sshll.u32 %s7220_s28, 11 }
  0x3c   : > { %s7290_s19 = scalar_lea.vmem %s8669_s0, %s6729_s16  ;;  %v6827_v32 = vld [vmem:[%s8671_s2 + $0xf0] sm:$0xff]   ;;  %v6829_v34 = vld [vmem:[%s8671_s2 + $0xf8] sm:$0xff]   ;;  %v6834_v37 = vld [vmem:[%s8671_s2 + $0x40] sm:$0xff]   ;;  %vm888_vm4 = vcmp.le.s32.totalorder %v7465_v60, 16  ;;  %s8571_s9 = scalar_lea.vmem [#allocation6], %s4978_s8 }
  0x3d   : > { %v6787_v3 = vld [vmem:[%s7290_s19] sm:$0xff]   ;;  %v6788_v4 = vld [vmem:[%s7290_s19 + $0x8] sm:$0xff]   ;;  %v6789_v5 = vld [vmem:[%s7290_s19 + $0x10] sm:$0xff]   ;;  %6562 = vmatpush3.bf16.msra.mxu1 %v6816_v19  ;;  %s4898_s17 = sshll.u32 %s8571_s9, 4  ;;  %s8620_s13 = scalar_lea.hbm %s8676_s7, %s5534_s14  ;;  %s8622_s17 = int_to_ptr.vmem [resolvable:$true] %s4898_s17 }
  0x3e   : > { %6254 = vmatmul.mubr.msk.bf16.vlgmr.msra.gmra.mrb[0].mxu0 %vm490_vm2, %v6787_v3  ;;  %v6790_v6 = vld [vmem:[%s7290_s19 + $0x18] sm:$0xff]   ;;  %v6791_v7 = vld [vmem:[%s7290_s19 + $0x20] sm:$0xff]   ;;  %v6792_v8 = vld [vmem:[%s7290_s19 + $0x28] sm:$0xff]   ;;  %6555 = vmatprep.subr.bf16.mxu1 %v6817_v21  ;;  %s8628_s28 = scalar_lea.sflag [#allocation5], %s284_s22  ;;  %p8715_p9 = scmp.ne.s32.totalorder %s8680_s11, 0 }
  0x3f   : > { %6257 = vmatprep.mubr.msk.bf16.mxu0 %vm7154_vm0, %v7153_v0  ;;  %v6793_v9 = vld [vmem:[%s7290_s19 + $0x30] sm:$0xff]   ;;  %v6794_v10 = vld [vmem:[%s7290_s19 + $0x38] sm:$0xff]   ;;  %v6795_v11 = vld [vmem:[%s7290_s19 + $0x40] sm:$0xff]   ;;  %5820 = vmatpush3.bf16.msra.mxu0 %v6814_v17  ;;  %s7156_s18 = smov [#allocation6]  }
  0x40   : > { %v6796_v12 = vld [vmem:[%s7290_s19 + $0x48] sm:$0xff]   ;;  %v6797_v13 = vld [vmem:[%s7290_s19 + $0x50] sm:$0xff]   ;;  %v6798_v14 = vld [vmem:[%s7290_s19 + $0x58] sm:$0xff]   ;;  %5821 = vmatprep.subr.bf16.mxu0 %v6815_v18  ;;  %s7086_s20 = sshll.u32 %s7156_s18, 4  ;;  %s7087_s20 = int_to_ptr.vmem [resolvable:$false] %s7086_s20 }
  0x41   : > { %v6799_v15 = vld [vmem:[%s7290_s19 + $0x60] sm:$0xff]   ;;  %v6800_v20 = vld [vmem:[%s7290_s19 + $0x68] sm:$0xff]   ;;  %6563 = vmatpush3.bf16.msra.mxu1 %v6818_v22  ;;  %v6801_v25 = vld [vmem:[%s7290_s19 + $0x70] sm:$0xff]   ;;  %s7088_s21 = scalar_lea.vmem %s7087_s20, 4096  ;;  %p7089_p2 = scmp.lt.s32.totalorder %s8622_s17, %s7087_s20 }
  0x42   : > { %6556 = vmatprep.subr.bf16.mxu1 %v6819_v23  ;;  %v6802_v30 = vld [vmem:[%s7290_s19 + $0x78] sm:$0xff]   ;;  %v6803_v35 = vld [vmem:[%s7290_s19 + $0x80] sm:$0xff]   ;;  %v6804_v36 = vld [vmem:[%s7290_s19 + $0x88] sm:$0xff]  }
  0x43   : > { %5822 = vmatpush3.bf16.msra.mxu0 %v6816_v19  ;;  %v6805_v38 = vld [vmem:[%s7290_s19 + $0x90] sm:$0xff]   ;;  %v6806_v39 = vld [vmem:[%s7290_s19 + $0x98] sm:$0xff]   ;;  %v6807_v40 = vld [vmem:[%s7290_s19 + $0xa0] sm:$0xff]  }
  0x44   : > { %5823 = vmatprep.subr.bf16.mxu0 %v6817_v21  ;;  %v6808_v41 = vld [vmem:[%s7290_s19 + $0xa8] sm:$0xff]   ;;  %v6809_v42 = vld [vmem:[%s7290_s19 + $0xb0] sm:$0xff]   ;;  %v6810_v43 = vld [vmem:[%s7290_s19 + $0xb8] sm:$0xff]  }
  0x45   : > { %6564 = vmatpush3.bf16.msra.mxu1 %v6820_v24  ;;  %v6811_v44 = vld [vmem:[%s7290_s19 + $0xc0] sm:$0xff]   ;;  %v6812_v45 = vld [vmem:[%s7290_s19 + $0xc8] sm:$0xff]   ;;  %v6825_v46 = vld [vmem:[%s7290_s19 + $0xd0] sm:$0xff]   ;;  %s7082_s19 = scalar_lea.vmem %s8622_s17, 2048 }
  0x46   : > { %6258 = vmatmul.mubr.msk.bf16.gmra.mrb[4].mxu0 %vm490_vm2, %v6788_v4  ;;  %6557 = vmatprep.subr.bf16.mxu1 %v6821_v26  ;;  %v7455_v48 = vld [vmem:[%s8673_s4] ss:$0 sm:$0xff]  ;;  %p7083_p6 = scmp.ne.s32.totalorder %s8622_s17, %s7082_s19  ;;  %p7090_p3 = scmp.lt.s32.totalorder %s7088_s21, %s7082_s19 }
  0x47   : > { %6261 = vmatprep.mubr.msk.bf16.mxu0 %vm7154_vm0, %v7153_v0  ;;  %5824 = vmatpush3.bf16.msra.mxu0 %v6818_v22 }
  0x48   : > { %5825 = vmatprep.subr.bf16.mxu0 %v6819_v23  ;;  %p7084_p10 = pnand %p7083_p6, %p8715_p9  ;;  %p7091_p4 = por %p7090_p3, %p7089_p2 }
  0x49   : > { %6565 = vmatpush3.bf16.msra.mxu1 %v6822_v27 }
  0x4a   : > { %6558 = vmatprep.subr.bf16.mxu1 %v6823_v28  ;;  %p7085_p12 = pneg %p7084_p10 }
  0x4b   : > { %5826 = vmatpush3.bf16.msra.mxu0 %v6820_v24 }
  0x4c   : > { %5827 = vmatprep.subr.bf16.mxu0 %v6821_v26  ;;  %p7092_p7 = pnand %p7091_p4, %p7085_p12 }
  0x4d   : > { %6566 = vmatpush3.bf16.msra.mxu1 %v6824_v29 }
  0x4e   : > { %6262 = vmatmul.mubr.msk.bf16.gmra.mrb[8].mxu0 %vm490_vm2, %v6789_v5  ;;  %6559 = vmatprep.subr.bf16.mxu1 %v6826_v31  ;;  %v7474_v5 = vld [vmem:[%s8671_s2 + $0x140] sm:$0xff]  }
  0x4f   : > { %6265 = vmatprep.mubr.msk.bf16.mxu0 %vm7154_vm0, %v7153_v0  ;;  %5828 = vmatpush3.bf16.msra.mxu0 %v6822_v27 }
  0x50   : > { %5829 = vmatprep.subr.bf16.mxu0 %v6823_v28 }
  0x51   : > { %6567 = vmatpush3.bf16.msra.mxu1 %v6827_v32 }
  0x52   : > { %6560 = vmatprep.subr.bf16.mxu1 %v6828_v33 }
  0x53   : > { %5830 = vmatpush3.bf16.msra.mxu0 %v6824_v29 }
  0x54   : > { %5831 = vmatprep.subr.bf16.mxu0 %v6826_v31 }
  0x55   : > { %6568 = vmatpush3.bf16.msra.mxu1 %v6829_v34 }
  0x56   : > { %6266 = vmatmul.mubr.msk.bf16.gmra.mrb[12].mxu0 %vm490_vm2, %v6790_v6  ;;  %6361 = vmatprep.subr.bf16.mxu1 %v7474_v5 }
  0x57   : > { %6269 = vmatprep.mubr.msk.bf16.mxu0 %vm7154_vm0, %v7153_v0  ;;  %5832 = vmatpush3.bf16.msra.mxu0 %v6827_v32 }
  0x58   : > { %5833 = vmatprep.subr.bf16.mxu0 %v6828_v33 }
  0x5b   : > { %5834 = vmatpush3.bf16.msra.mxu0 %v6829_v34 }
  0x5c   : > { %5955 = vmatprep.subr.bf16.mxu0 %v6834_v37 }
  0x5e   : > { %6270 = vmatmul.mubr.msk.bf16.gmra.mrb[16].mxu0 %vm490_vm2, %v6791_v7 }
  0x5f   : > { %6273 = vmatprep.mubr.msk.bf16.mxu0 %vm7154_vm0, %v7153_v0 }
  0x66   : > { %6274 = vmatmul.mubr.msk.bf16.gmra.mrb[20].mxu0 %vm490_vm2, %v6792_v8 }
  0x67   : > { %6277 = vmatprep.mubr.msk.bf16.mxu0 %vm7154_vm0, %v7153_v0 }
  0x6e   : > { %6278 = vmatmul.mubr.msk.bf16.gmra.mrb[24].mxu0 %vm490_vm2, %v6793_v9 }
  0x6f   : > { %6281 = vmatprep.mubr.msk.bf16.mxu0 %vm7154_vm0, %v7153_v0 }
  0x76   : > { %6282 = vmatmul.mubr.msk.bf16.gmra.mrb[28].mxu0 %vm490_vm2, %v6794_v10 }
  0x77   : > { %6285 = vmatprep.mubr.msk.bf16.mxu0 %vm7154_vm0, %v7153_v0 }
  0x7e   : > { %6286 = vmatmul.mubr.msk.bf16.gmra.mrb[32].mxu0 %vm490_vm2, %v6795_v11 }
  0x7f   : > { %6289 = vmatprep.mubr.msk.bf16.mxu0 %vm7154_vm0, %v7153_v0 }
  0x86   : > { %6290 = vmatmul.mubr.msk.bf16.gmra.mrb[36].mxu0 %vm490_vm2, %v6796_v12 }
  0x87   : > { %6293 = vmatprep.mubr.msk.bf16.mxu0 %vm7154_vm0, %v7153_v0 }
  0x8e   : > { %6294 = vmatmul.mubr.msk.bf16.gmra.mrb[40].mxu0 %vm490_vm2, %v6797_v13 }
  0x8f   : > { %6297 = vmatprep.mubr.msk.bf16.mxu0 %vm7154_vm0, %v7153_v0 }
  0x96   : > { %6298 = vmatmul.mubr.msk.bf16.gmra.mrb[44].mxu0 %vm490_vm2, %v6798_v14 }
  0x97   : > { %6301 = vmatprep.mubr.msk.bf16.mxu0 %vm7154_vm0, %v7153_v0 }
  0x9e   : > { %6302 = vmatmul.mubr.msk.bf16.gmra.mrb[48].mxu0 %vm490_vm2, %v6799_v15 }
  0x9f   : > { %6305 = vmatprep.mubr.msk.bf16.mxu0 %vm7154_vm0, %v7153_v0 }
  0xa6   : > { %6306 = vmatmul.mubr.msk.bf16.gmra.mrb[52].mxu0 %vm490_vm2, %v6800_v20 }
  0xa7   : > { %6309 = vmatprep.mubr.msk.bf16.mxu0 %vm7154_vm0, %v7153_v0 }
  0xae   : > { %6310 = vmatmul.mubr.msk.bf16.gmra.mrb[56].mxu0 %vm490_vm2, %v6801_v25 }
  0xaf   : > { %6313 = vmatprep.mubr.msk.bf16.mxu0 %vm7154_vm0, %v7153_v0 }
  0xb6   : > { %6314 = vmatmul.mubr.msk.bf16.gmra.mrb[60].mxu0 %vm490_vm2, %v6802_v30 }
  0xb7   : > { %6317 = vmatprep.mubr.msk.bf16.mxu0 %vm7154_vm0, %v7153_v0 }
  0xbe   : > { %6318 = vmatmul.mubr.msk.bf16.gmra.mrb[64].mxu0 %vm490_vm2, %v6803_v35 }
  0xbf   : > { %6321 = vmatprep.mubr.msk.bf16.mxu0 %vm7154_vm0, %v7153_v0 }
  0xc6   : > { %6322 = vmatmul.mubr.msk.bf16.gmra.mrb[68].mxu0 %vm490_vm2, %v6804_v36 }
  0xc7   : > { %6325 = vmatprep.mubr.msk.bf16.mxu0 %vm7154_vm0, %v7153_v0 }
  0xce   : > { %6326 = vmatmul.mubr.msk.bf16.gmra.mrb[72].mxu0 %vm490_vm2, %v6805_v38 }
  0xcf   : > { %6329 = vmatprep.mubr.msk.bf16.mxu0 %vm7154_vm0, %v7153_v0 }
  0xd6   : > { %6330 = vmatmul.mubr.msk.bf16.gmra.mrb[76].mxu0 %vm490_vm2, %v6806_v39 }
  0xd7   : > { %6333 = vmatprep.mubr.msk.bf16.mxu0 %vm7154_vm0, %v7153_v0 }
  0xde   : > { %6334 = vmatmul.mubr.msk.bf16.gmra.mrb[80].mxu0 %vm490_vm2, %v6807_v40 }
  0xdf   : > { %6337 = vmatprep.mubr.msk.bf16.mxu0 %vm7154_vm0, %v7153_v0 }
  0xe6   : > { %6338 = vmatmul.mubr.msk.bf16.gmra.mrb[84].mxu0 %vm490_vm2, %v6808_v41 }
  0xe7   : > { %6341 = vmatprep.mubr.msk.bf16.mxu0 %vm7154_vm0, %v7153_v0 }
  0xee   : > { %6342 = vmatmul.mubr.msk.bf16.gmra.mrb[88].mxu0 %vm490_vm2, %v6809_v42 }
  0xef   : > { %6345 = vmatprep.mubr.msk.bf16.mxu0 %vm7154_vm0, %v7153_v0 }
  0xf6   : > { %6346 = vmatmul.mubr.msk.bf16.gmra.mrb[92].mxu0 %vm490_vm2, %v6810_v43 }
  0xf7   : > { %6349 = vmatprep.mubr.msk.bf16.mxu0 %vm7154_vm0, %v7153_v0 }
  0xfe   : > { %6350 = vmatmul.mubr.msk.bf16.gmra.mrb[96].mxu0 %vm490_vm2, %v6811_v44 }
  0xff   : > { %6353 = vmatprep.mubr.msk.bf16.mxu0 %vm7154_vm0, %v7153_v0 }
 0x106   : > { %6354 = vmatmul.mubr.msk.bf16.gmra.mrb[100].mxu0 %vm490_vm2, %v6812_v45 }
 0x107   : > { %6357 = vmatprep.mubr.msk.bf16.mxu0 %vm7154_vm0, %v7153_v0  ;;  %v7155_v0 = vmov 0  }
 0x10e   : > { %6358 = vmatmul.mubr.msk.bf16.gmra.mrb[104].mxu0 %vm490_vm2, %v6825_v46 }
 0x111   : > { %v610_v50 = vpop.f32.mrb[0].mxu0 }
 0x112   : > { %v611_v51 = vadd.f32 %v7455_v48, %v610_v50  ;;  %v6255_v52 = vpop.f32.mrb[1].mxu0 }
 0x113   : > { %v613_v53 = vpop.f32.mrb[2].mxu0 }
 0x114   : > { %v825_v54 = vmax.f32 %v611_v51, 0.0  ;;  %v614_v55 = vadd.f32 %v7455_v48, %v613_v53  ;;  %v6256_v56 = vpop.f32.mrb[3].mxu0 }
 0x116   : > { %v892_v57 = vsel %vm883_vm3, %v825_v54, 0.0  ;;  %v826_v58 = vmax.f32 %v614_v55, 0.0 }
 0x118   : > { %v5538_v59 = vpack.c.bf16 %v826_v58, %v892_v57 }
 0x119   : > { %v618_v61 = vpop.f32.mrb[4].mxu0 }
 0x11a   : > { %5539 = vst [vmem:[#allocation2] sm:$0xff] %v5538_v59   ;;  %v619_v62 = vadd.f32 %v7455_v48, %v618_v61  ;;  %v6259_v63 = vpop.f32.mrb[5].mxu0 }
 0x11b   : > { %1234 = vst [vmem:[#allocation2] sm:$0xf] %v7155_v0  ;;  %1235 = vst [vmem:[#allocation2 + $0x4] sm:$0xf] %v7155_v0  ;;  %v621_v1 = vpop.f32.mrb[6].mxu0 }
 0x11c   : > { %v827_v2 = vmax.f32 %v619_v62, 0.0  ;;  %v622_v3 = vadd.f32 %v7455_v48, %v621_v1  ;;  %v6260_v4 = vpop.f32.mrb[7].mxu0 }
 0x11d   : > { %v6835_v4 = vld [vmem:[%s8671_s2] sm:$0xff]  }
 0x11e   : > { %v828_v6 = vmax.f32 %v622_v3, 0.0  ;;  %v894_v7 = vsel %vm888_vm4, %v827_v2, 0.0 }
 0x120   : > { %v895_v8 = vsel %vm883_vm3, %v828_v6, 0.0 }
 0x121   : > { %v5543_v9 = vpack.c.bf16 %v895_v8, %v894_v7  ;;  %v626_v10 = vpop.f32.mrb[8].mxu0 }
 0x122   : > { %v6263_v11 = vpop.f32.mrb[9].mxu0  ;;  %v627_v12 = vadd.f32 %v7455_v48, %v626_v10 }
 0x123   : > { %5750 = vst [vmem:[#allocation2 + $0x8] sm:$0xff] %v5543_v9   ;;  %v629_v13 = vpop.f32.mrb[10].mxu0  ;;  %v6836_v11 = vld [vmem:[%s8671_s2 + $0x48] sm:$0xff]  }
 0x124   : > { %1236 = vst [vmem:[#allocation2 + $0x8] sm:$0xf] %v7155_v0  ;;  %v630_v14 = vadd.f32 %v7455_v48, %v629_v13  ;;  %v6264_v15 = vpop.f32.mrb[11].mxu0  ;;  %v829_v17 = vmax.f32 %v627_v12, 0.0 }
 0x126   : > { %v830_v16 = vmax.f32 %v630_v14, 0.0 }
 0x128   : > { %v897_v18 = vsel %vm888_vm4, %v830_v16, 0.0 }
 0x129   : > { %v5548_v19 = vpack.c.bf16 %v897_v18, %v829_v17  ;;  %v634_v20 = vpop.f32.mrb[12].mxu0  ;;  %v6837_v17 = vld [vmem:[%s8671_s2 + $0x8] sm:$0xff]  }
 0x12a   : > { %v635_v21 = vadd.f32 %v7455_v48, %v634_v20  ;;  %v6267_v22 = vpop.f32.mrb[13].mxu0  ;;  %v1820_v31 = vld [vmem:[#allocation2 + $0xc] sm:$0xf] }
 0x12b   : > { %5751 = vst [vmem:[#allocation2 + $0x10] sm:$0xff] %v5548_v19   ;;  %v637_v23 = vpop.f32.mrb[14].mxu0  ;;  %v1868_v32 = vld [vmem:[#allocation2 + $0xc] sm:$0xe] }
 0x12c   : > { %v831_v24 = vmax.f32 %v635_v21, 0.0  ;;  %v638_v25 = vadd.f32 %v7455_v48, %v637_v23  ;;  %v6268_v26 = vpop.f32.mrb[15].mxu0  ;;  %v1290_v46 = vld [vmem:[#allocation2 + $0xc] sm:$0xe]  ;;  %v6838_v21 = vld [vmem:[%s8671_s2 + $0x50] sm:$0xff]  }
 0x12e   : > { %v898_v27 = vsel %vm883_vm3, %v831_v24, 0.0  ;;  %v832_v28 = vmax.f32 %v638_v25, 0.0  ;;  %v6841_v25 = vld [vmem:[%s8671_s2 + $0x10] sm:$0xff]  }
 0x130   : > { %v5553_v29 = vpack.c.bf16 %v832_v28, %v898_v27 }
 0x131   : > { %v642_v30 = vpop.f32.mrb[16].mxu0 }
 0x132   : > { %5752 = vst [vmem:[#allocation2 + $0x18] sm:$0xff] %v5553_v29   ;;  %v643_v33 = vadd.f32 %v7455_v48, %v642_v30  ;;  %v6271_v34 = vpop.f32.mrb[17].mxu0  ;;  %v1821_v35 = vld [vmem:[#allocation2 + $0x10] sm:$0xf] }
 0x133   : > { %v645_v36 = vpop.f32.mrb[18].mxu0  ;;  %v5137_v37 = vcombine.low %v1820_v31, %v1821_v35  ;;  %v6831_v38 = vld [vmem:[#allocation2 + $0x14] ss:$0 sps:$4 sm:$0x11]   ;;  %v7492_v39 = vld [vmem:[#allocation2 + $0x10] sm:$0xf]  ;;  %v5169_v40 = vcombine.low %v1868_v32, %v1821_v35 }
 0x134   : > { %v833_v41 = vmax.f32 %v643_v33, 0.0  ;;  %v646_v42 = vadd.f32 %v7455_v48, %v645_v36  ;;  %v6272_v43 = vpop.f32.mrb[19].mxu0  ;;  %v2036_v45 = vshll.u32 %v6831_v38, 16  ;;  %v5122_v50 = vcombine.low %v1290_v46, %v7492_v39  ;;  %v7496_v53 = vld [vmem:[#allocation2 + $0x14] ss:$0 sps:$4 sm:$0x11]  }
 0x135   : > { %v2031_v44 = vshll.u32 %v5137_v37, 16  ;;  %v2029_v51 = vshrl.u32 %v5137_v37, 16  ;;  %v2284_v54 = vrot.slane %v5169_v40, 1  ;;  %v2285_v57 = vrot.slane %v6831_v38, 1  ;;  %v6842_v38 = vld [vmem:[%s8671_s2 + $0x58] sm:$0xff]  }
 0x136   : > { %v834_v47 = vmax.f32 %v646_v42, 0.0  ;;  %v900_v55 = vsel %vm888_vm4, %v833_v41, 0.0  ;;  %v2038_v62 = vrot.slane %v2036_v45, 1  ;;  %v1710_v7 = vrot.slane %v5122_v50, 1 }
 0x137   : > { %v2033_v52 = vrot.slane %v2031_v44, 1  ;;  %v7508_v6 = vsel %vm1706_vm5, %v2284_v54, %v2285_v57  ;;  %v1711_v12 = vrot.slane %v7496_v53, 1 }
 0x138   : > { %v901_v56 = vsel %vm883_vm3, %v834_v47, 0.0 }
 0x139   : > { %v5558_v58 = vpack.c.bf16 %v901_v56, %v900_v55  ;;  %v650_v59 = vpop.f32.mrb[20].mxu0  ;;  %v2034_v61 = vor.u32 %v2033_v52, %v2029_v51  ;;  %v1822_v63 = vld [vmem:[#allocation2 + $0x18] sm:$0xf]  ;;  %v1823_v1 = vld [vmem:[#allocation2 + $0x1c] sm:$0xf]  ;;  %v7522_v19 = vsel %vm1706_vm5, %v1710_v7, %v1711_v12 }
 0x13a   : > { %v6275_v2 = vpop.f32.mrb[21].mxu0  ;;  %v7502_v3 = vcombine.low %v1822_v63, %v1823_v1  ;;  %v651_v8 = vadd.f32 %v7455_v48, %v650_v59  ;;  %v1869_v18 = vld [vmem:[#allocation2 + $0x18] sm:$0xe]  ;;  %v7527_v22 = vld [vmem:[#allocation2 + $0x1c] sm:$0xf] }
 0x13b   : > { %5753 = vst [vmem:[#allocation2 + $0x20] sm:$0xff] %v5558_v58   ;;  %v653_v9 = vpop.f32.mrb[22].mxu0  ;;  %v2039_v10 = vsel %vm1449_vm6, %v2034_v61, %v2038_v62  ;;  %v1291_v23 = vld [vmem:[#allocation2 + $0x18] sm:$0xe]  ;;  %v5170_v29 = vcombine.low %v1869_v18, %v1823_v1  ;;  %v3331_v30 = vld [vmem:[#allocation2 + $0x1c] sm:$0xf] }
 0x13c   : > { %v654_v13 = vadd.f32 %v7455_v48, %v653_v9  ;;  %v6276_v14 = vpop.f32.mrb[23].mxu0  ;;  %2573 = vmatprep.mubr.bf16.mxu0 %v2039_v10  ;;  %v2043_v15 = vshll.u32 %v7502_v3, 16  ;;  %v835_v20 = vmax.f32 %v651_v8, 0.0  ;;  %v3378_v31 = vld [vmem:[#allocation2 + $0x18] sm:$0xe]  ;;  %v5123_v35 = vcombine.low %v1291_v23, %v7527_v22  ;;  %v6844_v1 = vld [vmem:[%s8671_s2 + $0x60] sm:$0xff]  }
 0x13d   : > { %2574 = vmatmul.mubr.bf16.vlgmr.msra.gmra.mrb[108].mxu0 %v5137_v37  ;;  %v2041_v37 = vshrl.u32 %v7502_v3, 16  ;;  %v2287_v46 = vrot.slane %v5170_v29, 1  ;;  %v5313_v50 = vcombine.low %v3378_v31, %v3331_v30  ;;  %v6843_v55 = vld [vmem:[%s8671_s2 + $0x18] sm:$0xff]   ;;  %v6846_v14 = vld [vmem:[%s8671_s2 + $0x68] sm:$0xff]  }
 0x13e   : > { %v836_v16 = vmax.f32 %v654_v13, 0.0  ;;  %5956 = vmatpush3.bf16.msra.mxu0 %v6835_v4  ;;  %v2045_v28 = vrot.slane %v2043_v15, 1  ;;  %v1713_v56 = vrot.slane %v5123_v35, 1  ;;  %v6845_v4 = vld [vmem:[%s8671_s2 + $0x20] sm:$0xff]   ;;  %v6847_v35 = vld [vmem:[%s8671_s2 + $0x28] sm:$0xff]  }
 0x13f   : > { %5957 = vmatprep.subr.bf16.mxu0 %v6836_v11  ;;  %v3794_v9 = vrot.slane %v5313_v50, 1 }
 0x140   : > { %v903_v24 = vsel %vm888_vm4, %v836_v16, 0.0  ;;  %v2046_v45 = vor.u32 %v2045_v28, %v2041_v37  ;;  %v1242_v28 = vld [vmem:[#allocation2 + $0x4] sm:$0xf] }
 0x141   : > { %v5563_v26 = vpack.c.bf16 %v903_v24, %v835_v20  ;;  %v658_v27 = vpop.f32.mrb[24].mxu0 }
 0x142   : > { %v659_v32 = vadd.f32 %v7455_v48, %v658_v27  ;;  %v6279_v33 = vpop.f32.mrb[25].mxu0  ;;  %v6833_v34 = vld [vmem:[#allocation2 + $0x20] ss:$0 sps:$4 sm:$0x11]   ;;  %5958 = vmatpush3.bf16.msra.mxu0 %v6837_v17  ;;  %v1824_v63 = vld [vmem:[#allocation2 + $0x24] sm:$0xf] }
 0x143   : > { %5754 = vst [vmem:[#allocation2 + $0x28] sm:$0xff] %v5563_v26   ;;  %v661_v36 = vpop.f32.mrb[26].mxu0  ;;  %5959 = vmatprep.subr.bf16.mxu0 %v6838_v21  ;;  %v2048_v43 = vshll.u32 %v6833_v34, 16  ;;  %v7541_v44 = vld [vmem:[#allocation2 + $0x20] ss:$0 sps:$4 sm:$0x11]  }
 0x144   : > { %v837_v40 = vmax.f32 %v659_v32, 0.0  ;;  %v662_v41 = vadd.f32 %v7455_v48, %v661_v36  ;;  %v6280_v42 = vpop.f32.mrb[27].mxu0  ;;  %v2288_v47 = vrot.slane %v6833_v34, 1  ;;  %v1714_v58 = vrot.slane %v7541_v44, 1  ;;  %v1870_v7 = vld [vmem:[#allocation2 + $0x24] sm:$0xe] }
 0x145   : > { %v2050_v54 = vrot.slane %v2048_v43, 1  ;;  %v6975_v59 = vld [vmem:[#allocation2 + $0x20] ss:$0 sps:$4 sm:$0x11]   ;;  %v1292_v29 = vld [vmem:[#allocation2 + $0x24] sm:$0xe] }
 0x146   : > { %v904_v51 = vsel %vm883_vm3, %v837_v40, 0.0  ;;  %v838_v52 = vmax.f32 %v662_v41, 0.0  ;;  %5960 = vmatpush3.bf16.msra.mxu0 %v6841_v25  ;;  %v7549_v57 = vsel %vm1706_vm5, %v2287_v46, %v2288_v47  ;;  %v7560_v8 = vsel %vm1706_vm5, %v1713_v56, %v1714_v58  ;;  %v6850_v40 = vld [vmem:[%s8671_s2 + $0x70] sm:$0xff]  }
 0x147   : > { %5961 = vmatprep.subr.bf16.mxu0 %v6842_v38  ;;  %v2051_v62 = vsel %vm1449_vm6, %v2046_v45, %v2050_v54  ;;  %v3795_v10 = vrot.slane %v6975_v59, 1 }
 0x148   : > { %v5568_v61 = vpack.c.bf16 %v838_v52, %v904_v51  ;;  %2581 = vmatprep.mubr.bf16.mxu0 %v2051_v62  ;;  %v6851_v62 = vld [vmem:[%s8671_s2 + $0x30] sm:$0xff]  }
 0x149   : > { %v666_v2 = vpop.f32.mrb[28].mxu0  ;;  %2582 = vmatmul.mubr.bf16.gmra.mrb[112].mxu0 %v7502_v3  ;;  %v7570_v21 = vsel %vm1706_vm5, %v3794_v9, %v3795_v10  ;;  %v1241_v3 = vld [vmem:[#allocation2] sm:$0xf] }
 0x14a   : > { %5755 = vst [vmem:[#allocation2 + $0x30] sm:$0xff] %v5568_v61   ;;  %v667_v11 = vadd.f32 %v7455_v48, %v666_v2  ;;  %v6283_v12 = vpop.f32.mrb[29].mxu0  ;;  %v1825_v13 = vld [vmem:[#allocation2 + $0x28] sm:$0xf]  ;;  %5962 = vmatpush3.bf16.msra.mxu0 %v6843_v55  ;;  %8687 = vst [vmem:[#allocation9_spill] sm:$0xff] %v7570_v21  ;;  %v7586_v41 = vcombine.low %v1241_v3, %v1242_v28 }
 0x14b   : > { %v669_v15 = vpop.f32.mrb[30].mxu0  ;;  %v5139_v16 = vcombine.low %v1824_v63, %v1825_v13  ;;  %v6840_v17 = vld [vmem:[#allocation2 + $0x2c] ss:$0 sps:$4 sm:$0x11]   ;;  %v7567_v18 = vld [vmem:[#allocation2 + $0x28] sm:$0xf]  ;;  %v5171_v20 = vcombine.low %v1870_v7, %v1825_v13  ;;  %5963 = vmatprep.subr.bf16.mxu0 %v6844_v1 }
 0x14c   : > { %v839_v23 = vmax.f32 %v667_v11, 0.0  ;;  %v670_v24 = vadd.f32 %v7455_v48, %v669_v15  ;;  %v6284_v25 = vpop.f32.mrb[31].mxu0  ;;  %v2060_v27 = vshll.u32 %v6840_v17, 16  ;;  %v7573_v31 = vld [vmem:[#allocation2 + $0x2c] ss:$0 sps:$4 sm:$0x11]   ;;  %v5124_v32 = vcombine.low %v1292_v29, %v7567_v18 }
 0x14d   : > { %v2055_v26 = vshll.u32 %v5139_v16, 16  ;;  %v2053_v33 = vshrl.u32 %v5139_v16, 16  ;;  %v2290_v36 = vrot.slane %v5171_v20, 1  ;;  %v2291_v42 = vrot.slane %v6840_v17, 1  ;;  %v6852_v7 = vld [vmem:[%s8671_s2 + $0x78] sm:$0xff]  }
 0x14e   : > { %v840_v30 = vmax.f32 %v670_v24, 0.0  ;;  %5964 = vmatpush3.bf16.msra.mxu0 %v6845_v4  ;;  %v906_v37 = vsel %vm888_vm4, %v839_v23, 0.0  ;;  %v2062_v47 = vrot.slane %v2060_v27, 1  ;;  %v1716_v56 = vrot.slane %v5124_v32, 1  ;;  %v6853_v15 = vld [vmem:[%s8671_s2 + $0x38] sm:$0xff]  }
 0x14f   : > { %v2057_v34 = vrot.slane %v2055_v26, 1  ;;  %5965 = vmatprep.subr.bf16.mxu0 %v6846_v14  ;;  %v7591_v55 = vsel %vm1706_vm5, %v2290_v36, %v2291_v42  ;;  %v6855_v63 = vld [vmem:[#allocation2 + $0x8] ss:$0 sps:$4 sm:$0x11]   ;;  %v1717_v1 = vrot.slane %v7573_v31, 1  ;;  %v1453_v9 = vshll.u32 %v7586_v41, 16 }
 0x150   : > { %v907_v38 = vsel %vm883_vm3, %v840_v30, 0.0  ;;  %v1451_v17 = vshrl.u32 %v7586_v41, 16  ;;  %v1458_v20 = vshll.u32 %v6855_v63, 16  ;;  %v1243_v23 = vld [vmem:[#allocation2 + $0xc] sm:$0xf] }
 0x151   : > { %v5573_v43 = vpack.c.bf16 %v907_v38, %v906_v37  ;;  %v674_v45 = vpop.f32.mrb[32].mxu0  ;;  %v2058_v46 = vor.u32 %v2057_v34, %v2053_v33  ;;  %v1826_v50 = vld [vmem:[#allocation2 + $0x30] sm:$0xf]  ;;  %v1827_v51 = vld [vmem:[#allocation2 + $0x34] sm:$0xf]  ;;  %v7606_v13 = vsel %vm1706_vm5, %v1716_v56, %v1717_v1  ;;  %v1455_v24 = vrot.slane %v1453_v9, 1 }
 0x152   : > { %v6287_v52 = vpop.f32.mrb[33].mxu0  ;;  %v7588_v54 = vcombine.low %v1826_v50, %v1827_v51  ;;  %v675_v58 = vadd.f32 %v7455_v48, %v674_v45  ;;  %5966 = vmatpush3.bf16.msra.mxu0 %v6847_v35  ;;  %v1871_v12 = vld [vmem:[#allocation2 + $0x30] sm:$0xe]  ;;  %v7614_v25 = vld [vmem:[#allocation2 + $0x34] sm:$0xf]  ;;  %v7617_v29 = vcombine.low %v1243_v23, %v7492_v39  ;;  %v1460_v37 = vrot.slane %v1458_v20, 1 }
 0x153   : > { %5756 = vst [vmem:[#allocation2 + $0x38] sm:$0xff] %v5573_v43   ;;  %v677_v59 = vpop.f32.mrb[34].mxu0  ;;  %v2063_v61 = vsel %vm1449_vm6, %v2058_v46, %v2062_v47  ;;  %5967 = vmatprep.subr.bf16.mxu0 %v6850_v40  ;;  %v1293_v3 = vld [vmem:[#allocation2 + $0x30] sm:$0xe]  ;;  %v5172_v30 = vcombine.low %v1871_v12, %v1827_v51  ;;  %v1456_v39 = vor.u32 %v1455_v24, %v1451_v17 }
 0x154   : > { %v678_v2 = vadd.f32 %v7455_v48, %v677_v59  ;;  %v6288_v4 = vpop.f32.mrb[35].mxu0  ;;  %2589 = vmatprep.mubr.bf16.mxu0 %v2063_v61  ;;  %v2067_v10 = vshll.u32 %v7588_v54, 16  ;;  %v841_v14 = vmax.f32 %v675_v58, 0.0  ;;  %v2065_v36 = vshrl.u32 %v7588_v54, 16  ;;  %v1245_v61 = vld [vmem:[#allocation2 + $0x18] sm:$0xf] }
 0x155   : > { %2590 = vmatmul.mubr.bf16.gmra.mrb[116].mxu0 %v5139_v16  ;;  %v5125_v38 = vcombine.low %v1293_v3, %v7614_v25  ;;  %v1465_v47 = vshll.u32 %v7617_v29, 16  ;;  %v2293_v50 = vrot.slane %v5172_v30, 1  ;;  %v1463_v9 = vshrl.u32 %v7617_v29, 16 }
 0x156   : > { %v842_v11 = vmax.f32 %v678_v2, 0.0  ;;  %5968 = vmatpush3.bf16.msra.mxu0 %v6851_v62  ;;  %v2069_v28 = vrot.slane %v2067_v10, 1  ;;  %v7642_v24 = vcombine.low %v1245_v61, %v7527_v22 }
 0x157   : > { %5969 = vmatprep.subr.bf16.mxu0 %v6852_v7  ;;  %v1719_v63 = vrot.slane %v5125_v38, 1  ;;  %v1461_v7 = vsel %vm1449_vm6, %v1456_v39, %v1460_v37  ;;  %v1467_v12 = vrot.slane %v1465_v47, 1 }
 0x158   : > { %v909_v16 = vsel %vm888_vm4, %v842_v11, 0.0  ;;  %v2070_v58 = vor.u32 %v2069_v28, %v2065_v36  ;;  %v1477_v22 = vshll.u32 %v7642_v24, 16 }
 0x159   : > { %v5578_v26 = vpack.c.bf16 %v909_v16, %v841_v14  ;;  %v682_v27 = vpop.f32.mrb[36].mxu0  ;;  %v1470_v16 = vshll.u32 %v7496_v53, 16 }
 0x15a   : > { %v683_v32 = vadd.f32 %v7455_v48, %v682_v27  ;;  %v6291_v33 = vpop.f32.mrb[37].mxu0  ;;  %v6849_v34 = vld [vmem:[#allocation2 + $0x38] ss:$0 sps:$4 sm:$0x11]   ;;  %5970 = vmatpush3.bf16.msra.mxu0 %v6853_v15  ;;  %v1828_v11 = vld [vmem:[#allocation2 + $0x3c] sm:$0xf] }
 0x15b   : > { %5757 = vst [vmem:[#allocation2 + $0x40] sm:$0xff] %v5578_v26   ;;  %v685_v35 = vpop.f32.mrb[38].mxu0  ;;  %v2072_v45 = vshll.u32 %v6849_v34, 16  ;;  %v7623_v46 = vld [vmem:[#allocation2 + $0x38] ss:$0 sps:$4 sm:$0x11]  }
 0x15c   : > { %v843_v40 = vmax.f32 %v683_v32, 0.0  ;;  %v686_v42 = vadd.f32 %v7455_v48, %v685_v35  ;;  %v6292_v43 = vpop.f32.mrb[39].mxu0  ;;  %v2294_v51 = vrot.slane %v6849_v34, 1  ;;  %v1720_v1 = vrot.slane %v7623_v46, 1  ;;  %v1872_v14 = vld [vmem:[#allocation2 + $0x3c] sm:$0xe] }
 0x15d   : > { %v2074_v59 = vrot.slane %v2072_v45, 1  ;;  %v1294_v37 = vld [vmem:[#allocation2 + $0x3c] sm:$0xe]  ;;  %v1472_v53 = vrot.slane %v1470_v16, 1  ;;  %v1479_v16 = vrot.slane %v1477_v22, 1 }
 0x15e   : > { %v910_v52 = vsel %vm883_vm3, %v843_v40, 0.0  ;;  %v844_v56 = vmax.f32 %v686_v42, 0.0  ;;  %v7629_v62 = vsel %vm1706_vm5, %v2293_v50, %v2294_v51  ;;  %v7636_v15 = vsel %vm1706_vm5, %v1719_v63, %v1720_v1  ;;  %v1247_v40 = vld [vmem:[#allocation2 + $0x24] sm:$0xf] }
 0x15f   : > { %v2075_v4 = vsel %vm1449_vm6, %v2070_v58, %v2074_v59 }
 0x160   : > { %v5583_v2 = vpack.c.bf16 %v844_v56, %v910_v52  ;;  %2597 = vmatprep.mubr.bf16.mxu0 %v2075_v4  ;;  %v7656_v52 = vcombine.low %v1247_v40, %v7567_v18 }
 0x161   : > { %v690_v10 = vpop.f32.mrb[40].mxu0  ;;  %2598 = vmatmul.mubr.bf16.gmra.mrb[120].mxu0 %v7588_v54  ;;  %v1468_v54 = vor.u32 %v1467_v12, %v1463_v9  ;;  %v1482_v9 = vshll.u32 %v7541_v44, 16 }
 0x162   : > { %5758 = vst [vmem:[#allocation2 + $0x48] sm:$0xff] %v5583_v2   ;;  %v691_v17 = vadd.f32 %v7455_v48, %v690_v10  ;;  %v6295_v20 = vpop.f32.mrb[41].mxu0  ;;  %v1829_v23 = vld [vmem:[#allocation2 + $0x40] sm:$0xf]  ;;  %3039 = vmatprep.mubr.bf16.mxu0 %v1461_v7 }
 0x163   : > { %v693_v3 = vpop.f32.mrb[42].mxu0  ;;  %v5141_v26 = vcombine.low %v1828_v11, %v1829_v23  ;;  %v6857_v27 = vld [vmem:[#allocation2 + $0x44] ss:$0 sps:$4 sm:$0x11]   ;;  %v7644_v28 = vld [vmem:[#allocation2 + $0x40] sm:$0xf]  ;;  %v5173_v30 = vcombine.low %v1872_v14, %v1829_v23  ;;  %v1473_v1 = vsel %vm1449_vm6, %v1468_v54, %v1472_v53 }
 0x164   : > { %v845_v32 = vmax.f32 %v691_v17, 0.0  ;;  %v694_v33 = vadd.f32 %v7455_v48, %v693_v3  ;;  %v6296_v34 = vpop.f32.mrb[43].mxu0  ;;  %v2084_v36 = vshll.u32 %v6857_v27, 16  ;;  %v5126_v42 = vcombine.low %v1294_v37, %v7644_v28  ;;  %v7649_v39 = vld [vmem:[#allocation2 + $0x44] ss:$0 sps:$4 sm:$0x11]  }
 0x165   : > { %v2079_v35 = vshll.u32 %v5141_v26, 16  ;;  %v2077_v43 = vshrl.u32 %v5141_v26, 16  ;;  %v2296_v47 = vrot.slane %v5173_v30, 1  ;;  %v2297_v56 = vrot.slane %v6857_v27, 1  ;;  %v1249_v34 = vld [vmem:[#allocation2 + $0x30] sm:$0xf] }
 0x166   : > { %v846_v38 = vmax.f32 %v694_v33, 0.0  ;;  %v912_v50 = vsel %vm888_vm4, %v845_v32, 0.0  ;;  %v2086_v63 = vrot.slane %v2084_v36, 1  ;;  %v1722_v11 = vrot.slane %v5126_v42, 1  ;;  %v6888_v37 = vld [vmem:[%s8671_s2 + $0x150] sm:$0xff]  }
 0x167   : > { %v2081_v45 = vrot.slane %v2079_v35, 1  ;;  %v7667_v18 = vsel %vm1706_vm5, %v2296_v47, %v2297_v56  ;;  %v1723_v44 = vrot.slane %v7649_v39, 1  ;;  %v1489_v3 = vshll.u32 %v7656_v52, 16  ;;  %v7696_v47 = vld [vmem:[%s8671_s2 + $0x158] sm:$0xff]   ;;  %v3379_v56 = vld [vmem:[#allocation2 + $0x24] sm:$0xe] }
 0x168   : > { %v913_v51 = vsel %vm883_vm3, %v846_v38, 0.0  ;;  %v1475_v27 = vshrl.u32 %v7642_v24, 16  ;;  %v1484_v33 = vrot.slane %v1482_v9, 1 }
 0x169   : > { %v5588_v58 = vpack.c.bf16 %v913_v51, %v912_v50  ;;  %v698_v59 = vpop.f32.mrb[44].mxu0  ;;  %v2082_v61 = vor.u32 %v2081_v45, %v2077_v43  ;;  %v1830_v2 = vld [vmem:[#allocation2 + $0x48] sm:$0xf]  ;;  %v7659_v4 = vld [vmem:[#allocation2 + $0x4c] sm:$0xf]  ;;  %3040 = vmatmul.mubr.bf16.vlgmr.msra.gmra.mrb[124].mxu0 %v7586_v41  ;;  %v7681_v36 = vsel %vm1706_vm5, %v1722_v11, %v1723_v44  ;;  %v1491_v53 = vrot.slane %v1489_v3, 1 }
 0x16a   : > { %v6299_v7 = vpop.f32.mrb[45].mxu0  ;;  %v7664_v10 = vcombine.low %v1830_v2, %v7659_v4  ;;  %v699_v12 = vadd.f32 %v7455_v48, %v698_v59  ;;  %3047 = vmatprep.mubr.bf16.mxu0 %v1473_v1  ;;  %v6883_v41 = vld [vmem:[%s8671_s2 + $0x148] sm:$0xff]   ;;  %v1480_v38 = vor.u32 %v1479_v16, %v1475_v27  ;;  %v7691_v45 = vcombine.low %v1249_v34, %v7614_v25 }
 0x16b   : > { %5759 = vst [vmem:[#allocation2 + $0x50] sm:$0xff] %v5588_v58   ;;  %v701_v14 = vpop.f32.mrb[46].mxu0  ;;  %v2087_v17 = vsel %vm1449_vm6, %v2082_v61, %v2086_v63  ;;  %v1873_v35 = vld [vmem:[#allocation2 + $0x48] sm:$0xe]  ;;  %v7688_v22 = vld [vmem:[#allocation2 + $0x4c] sm:$0xf] }
 0x16c   : > { %v702_v20 = vadd.f32 %v7455_v48, %v701_v14  ;;  %v6300_v23 = vpop.f32.mrb[47].mxu0  ;;  %2605 = vmatprep.mubr.bf16.mxu1 %v2087_v17  ;;  %v2091_v30 = vshll.u32 %v7664_v10, 16  ;;  %v847_v54 = vmax.f32 %v699_v12, 0.0  ;;  %v1295_v40 = vld [vmem:[#allocation2 + $0x48] sm:$0xe]  ;;  %v5174_v50 = vcombine.low %v1873_v35, %v7659_v4 }
 0x16d   : > { %2606 = vmatmul.mubr.bf16.vlgmr.msra.gmra.mrb[0].mxu1 %v5141_v26  ;;  %v3333_v51 = vld [vmem:[#allocation2 + $0x28] sm:$0xf]  ;;  %v1485_v61 = vsel %vm1449_vm6, %v1480_v38, %v1484_v33  ;;  %v2089_v1 = vshrl.u32 %v7664_v10, 16  ;;  %v1487_v2 = vshrl.u32 %v7656_v52, 16  ;;  %v1494_v4 = vshll.u32 %v7573_v31, 16 }
 0x16e   : > { %v848_v32 = vmax.f32 %v702_v20, 0.0  ;;  %6362 = vmatpush3.bf16.msra.mxu1 %v7474_v5  ;;  %v2093_v43 = vrot.slane %v2091_v30, 1  ;;  %v5127_v7 = vcombine.low %v1295_v40, %v7688_v22  ;;  %v5314_v17 = vcombine.low %v3379_v56, %v3333_v51  ;;  %v6978_v16 = vld [vmem:[#allocation2 + $0x2c] ss:$0 sps:$4 sm:$0x11]   ;;  %v6900_v40 = vld [vmem:[%s8671_s2 + $0x160] sm:$0xff]  }
 0x16f   : > { %6363 = vmatprep.subr.bf16.mxu1 %v6883_v41  ;;  %v1501_v44 = vshll.u32 %v7691_v45, 16  ;;  %v2299_v20 = vrot.slane %v5174_v50, 1  ;;  %v1506_v38 = vshll.u32 %v7623_v46, 16  ;;  %v3798_v51 = vrot.slane %v6978_v16, 1 }
 0x170   : > { %v915_v26 = vsel %vm888_vm4, %v848_v32, 0.0  ;;  %v2094_v27 = vor.u32 %v2093_v43, %v2089_v1  ;;  %v1496_v32 = vrot.slane %v1494_v4, 1  ;;  %v1725_v34 = vrot.slane %v5127_v7, 1 }
 0x171   : > { %v5593_v42 = vpack.c.bf16 %v915_v26, %v847_v54  ;;  %v706_v5 = vpop.f32.mrb[48].mxu0  ;;  %3048 = vmatmul.mubr.bf16.gmra.mrb[128].mxu0 %v7617_v29 }
 0x172   : > { %v707_v58 = vadd.f32 %v7455_v48, %v706_v5  ;;  %v6303_v59 = vpop.f32.mrb[49].mxu0  ;;  %v6863_v63 = vld [vmem:[#allocation2 + $0x50] ss:$0 sps:$4 sm:$0x11]   ;;  %6364 = vmatpush3.bf16.msra.mxu1 %v6883_v41  ;;  %3055 = vmatprep.mubr.bf16.mxu0 %v1485_v61  ;;  %v1492_v41 = vor.u32 %v1491_v53, %v1487_v2  ;;  %v1251_v53 = vld [vmem:[#allocation2 + $0x3c] sm:$0xf] }
 0x173   : > { %5760 = vst [vmem:[#allocation2 + $0x58] sm:$0xff] %v5593_v42   ;;  %v709_v25 = vpop.f32.mrb[50].mxu0  ;;  %6365 = vmatprep.subr.bf16.mxu1 %v6888_v37  ;;  %v2096_v12 = vshll.u32 %v6863_v63, 16  ;;  %v7707_v14 = vld [vmem:[#allocation2 + $0x50] ss:$0 sps:$4 sm:$0x11]  }
 0x174   : > { %v849_v9 = vmax.f32 %v707_v58, 0.0  ;;  %v710_v11 = vadd.f32 %v7455_v48, %v709_v25  ;;  %v6304_v29 = vpop.f32.mrb[51].mxu0  ;;  %v2300_v23 = vrot.slane %v6863_v63, 1  ;;  %v1726_v35 = vrot.slane %v7707_v14, 1  ;;  %v1832_v5 = vld [vmem:[#allocation2 + $0x54] sm:$0xf] }
 0x175   : > { %v2098_v30 = vrot.slane %v2096_v12, 1  ;;  %v1874_v43 = vld [vmem:[#allocation2 + $0x54] sm:$0xe]  ;;  %v1497_v46 = vsel %vm1449_vm6, %v1492_v41, %v1496_v32  ;;  %v1503_v61 = vrot.slane %v1501_v44, 1  ;;  %v7730_v63 = vcombine.low %v1251_v53, %v7644_v28  ;;  %v6905_v28 = vld [vmem:[%s8671_s2 + $0x168] sm:$0xff]  }
 0x176   : > { %v916_v31 = vsel %vm883_vm3, %v849_v9, 0.0  ;;  %v850_v3 = vmax.f32 %v710_v11, 0.0  ;;  %6366 = vmatpush3.bf16.msra.mxu1 %v6888_v37  ;;  %v7714_v33 = vsel %vm1706_vm5, %v2299_v20, %v2300_v23  ;;  %v3797_v37 = vrot.slane %v5314_v17, 1  ;;  %v1296_v41 = vld [vmem:[#allocation2 + $0x54] sm:$0xe] }
 0x177   : > { %6367 = vmatprep.subr.bf16.mxu1 %v7696_v47  ;;  %v2099_v26 = vsel %vm1449_vm6, %v2094_v27, %v2098_v30  ;;  %v7723_v50 = vsel %vm1706_vm5, %v1725_v34, %v1726_v35  ;;  %v1499_v11 = vshrl.u32 %v7691_v45, 16  ;;  %v1508_v17 = vrot.slane %v1506_v38, 1  ;;  %v6910_v30 = vld [vmem:[%s8671_s2 + $0x170] sm:$0xff]  }
 0x178   : > { %v5598_v54 = vpack.c.bf16 %v850_v3, %v916_v31  ;;  %2613 = vmatprep.mubr.bf16.mxu1 %v2099_v26  ;;  %v7741_v44 = vsel %vm1706_vm5, %v3797_v37, %v3798_v51  ;;  %v1513_v20 = vshll.u32 %v7730_v63, 16  ;;  %v1253_v26 = vld [vmem:[#allocation2 + $0x48] sm:$0xf] }
 0x179   : > { %v714_v42 = vpop.f32.mrb[52].mxu0  ;;  %2614 = vmatmul.mubr.bf16.gmra.mrb[4].mxu1 %v7664_v10  ;;  %3056 = vmatmul.mubr.bf16.gmra.mrb[132].mxu0 %v7642_v24  ;;  %8688 = vst [vmem:[#allocation10_spill] sm:$0xff] %v7741_v44  ;;  %v1504_v27 = vor.u32 %v1503_v61, %v1499_v11  ;;  %v6915_v11 = vld [vmem:[%s8671_s2 + $0x178] sm:$0xff]  }
 0x17a   : > { %5761 = vst [vmem:[#allocation2 + $0x60] sm:$0xff] %v5598_v54   ;;  %v715_v56 = vadd.f32 %v7455_v48, %v714_v42  ;;  %v6307_v58 = vpop.f32.mrb[53].mxu0  ;;  %v1833_v59 = vld [vmem:[#allocation2 + $0x58] sm:$0xf]  ;;  %3063 = vmatprep.mubr.bf16.mxu0 %v1497_v46  ;;  %6368 = vmatpush3.bf16.msra.mxu1 %v7696_v47  ;;  %v1518_v54 = vshll.u32 %v7649_v39, 16 }
 0x17b   : > { %v717_v25 = vpop.f32.mrb[54].mxu0  ;;  %v5143_v1 = vcombine.low %v1832_v5, %v1833_v59  ;;  %v6867_v2 = vld [vmem:[#allocation2 + $0x5c] ss:$0 sps:$4 sm:$0x11]   ;;  %v7732_v4 = vld [vmem:[#allocation2 + $0x58] sm:$0xf]  ;;  %v5175_v7 = vcombine.low %v1874_v43, %v1833_v59  ;;  %6369 = vmatprep.subr.bf16.mxu1 %v6900_v40  ;;  %v1509_v5 = vsel %vm1449_vm6, %v1504_v27, %v1508_v17 }
 0x17c   : > { %v851_v9 = vmax.f32 %v715_v56, 0.0  ;;  %v718_v10 = vadd.f32 %v7455_v48, %v717_v25  ;;  %v6308_v24 = vpop.f32.mrb[55].mxu0  ;;  %v2108_v12 = vshll.u32 %v6867_v2, 16  ;;  %v7744_v23 = vld [vmem:[#allocation2 + $0x5c] ss:$0 sps:$4 sm:$0x11]   ;;  %v5128_v16 = vcombine.low %v1296_v41, %v7732_v4 }
 0x17d   : > { %v2103_v29 = vshll.u32 %v5143_v1, 16  ;;  %v2101_v31 = vshrl.u32 %v5143_v1, 16  ;;  %v2302_v32 = vrot.slane %v5175_v7, 1  ;;  %v2303_v38 = vrot.slane %v6867_v2, 1 }
 0x17e   : > { %v852_v47 = vmax.f32 %v718_v10, 0.0  ;;  %6370 = vmatpush3.bf16.msra.mxu1 %v6900_v40  ;;  %v918_v34 = vsel %vm888_vm4, %v851_v9, 0.0  ;;  %v2110_v40 = vrot.slane %v2108_v12, 1  ;;  %v1515_v58 = vrot.slane %v1513_v20, 1  ;;  %v1255_v20 = vld [vmem:[#allocation2 + $0x54] sm:$0xf] }
 0x17f   : > { %v2105_v3 = vrot.slane %v2103_v29, 1  ;;  %6371 = vmatprep.subr.bf16.mxu1 %v6905_v28  ;;  %v7763_v39 = vsel %vm1706_vm5, %v2302_v32, %v2303_v38  ;;  %v1728_v59 = vrot.slane %v5128_v16, 1  ;;  %v7768_v7 = vcombine.low %v1253_v26, %v7688_v22  ;;  %v6919_v16 = vld [vmem:[%s8671_s2 + $0x80] sm:$0xff]   ;;  %v3335_v26 = vld [vmem:[#allocation2 + $0x34] sm:$0xf] }
 0x180   : > { %v919_v35 = vsel %vm883_vm3, %v852_v47, 0.0  ;;  %v1511_v24 = vshrl.u32 %v7730_v63, 16  ;;  %v3380_v38 = vld [vmem:[#allocation2 + $0x30] sm:$0xe] }
 0x181   : > { %v5603_v53 = vpack.c.bf16 %v919_v35, %v918_v34  ;;  %v722_v37 = vpop.f32.mrb[56].mxu0  ;;  %v2106_v42 = vor.u32 %v2105_v3, %v2101_v31  ;;  %v1834_v43 = vld [vmem:[#allocation2 + $0x60] sm:$0xf]  ;;  %v7756_v51 = vld [vmem:[#allocation2 + $0x64] sm:$0xf]  ;;  %3064 = vmatmul.mubr.bf16.gmra.mrb[136].mxu0 %v7656_v52  ;;  %v1729_v52 = vrot.slane %v7744_v23, 1 }
 0x182   : > { %v6311_v56 = vpop.f32.mrb[57].mxu0  ;;  %v7760_v46 = vcombine.low %v1834_v43, %v7756_v51  ;;  %v723_v61 = vadd.f32 %v7455_v48, %v722_v37  ;;  %3071 = vmatprep.mubr.bf16.mxu0 %v1509_v5  ;;  %6372 = vmatpush3.bf16.msra.mxu1 %v6905_v28  ;;  %v1516_v22 = vor.u32 %v1515_v58, %v1511_v24  ;;  %v1875_v17 = vld [vmem:[#allocation2 + $0x60] sm:$0xe]  ;;  %v1525_v47 = vshll.u32 %v7768_v7, 16  ;;  %v7787_v3 = vld [vmem:[#allocation2 + $0x64] sm:$0xf] }
 0x183   : > { %5762 = vst [vmem:[#allocation2 + $0x68] sm:$0xff] %v5603_v53   ;;  %v725_v25 = vpop.f32.mrb[58].mxu0  ;;  %v2111_v2 = vsel %vm1449_vm6, %v2106_v42, %v2110_v40  ;;  %6373 = vmatprep.subr.bf16.mxu1 %v6910_v30  ;;  %v7778_v28 = vsel %vm1706_vm5, %v1728_v59, %v1729_v52  ;;  %v1530_v31 = vshll.u32 %v7707_v14, 16  ;;  %v1297_v27 = vld [vmem:[#allocation2 + $0x60] sm:$0xe]  ;;  %v1523_v43 = vshrl.u32 %v7768_v7, 16 }
 0x184   : > { %v726_v9 = vadd.f32 %v7455_v48, %v725_v25  ;;  %v6312_v10 = vpop.f32.mrb[59].mxu0  ;;  %2621 = vmatprep.mubr.bf16.mxu1 %v2111_v2  ;;  %v2115_v29 = vshll.u32 %v7760_v46, 16  ;;  %v853_v41 = vmax.f32 %v723_v61, 0.0  ;;  %v1520_v48 = vrot.slane %v1518_v54, 1  ;;  %v7796_v53 = vld [vmem:[%s8673_s4] ss:$0 sm:$0xff] }
 0x185   : > { %2622 = vmatmul.mubr.bf16.gmra.mrb[8].mxu1 %v5143_v1  ;;  %v7790_v54 = vcombine.low %v1255_v20, %v7732_v4  ;;  %v2113_v5 = vshrl.u32 %v7760_v46, 16  ;;  %v5129_v56 = vcombine.low %v1297_v27, %v7787_v3  ;;  %v6980_v58 = vld [vmem:[#allocation2 + $0x38] ss:$0 sps:$4 sm:$0x11]   ;;  %v5315_v52 = vcombine.low %v3380_v38, %v3335_v26 }
 0x186   : > { %v854_v12 = vmax.f32 %v726_v9, 0.0  ;;  %6374 = vmatpush3.bf16.msra.mxu1 %v6910_v30  ;;  %v2117_v35 = vrot.slane %v2115_v29, 1  ;;  %v5176_v30 = vcombine.low %v1875_v17, %v7756_v51  ;;  %v1521_v42 = vsel %vm1449_vm6, %v1516_v22, %v1520_v48 }
 0x187   : > { %6375 = vmatprep.subr.bf16.mxu1 %v6915_v11  ;;  %v1527_v51 = vrot.slane %v1525_v47, 1  ;;  %v1532_v9 = vrot.slane %v1530_v31, 1  ;;  %v1537_v10 = vshll.u32 %v7790_v54, 16  ;;  %v1731_v48 = vrot.slane %v5129_v56, 1 }
 0x188   : > { %v921_v1 = vsel %vm888_vm4, %v854_v12, 0.0  ;;  %v2305_v24 = vrot.slane %v5176_v30, 1  ;;  %v2118_v22 = vor.u32 %v2117_v35, %v2113_v5  ;;  %v1542_v27 = vshll.u32 %v7744_v23, 16 }
 0x189   : > { %v5608_v32 = vpack.c.bf16 %v921_v1, %v853_v41  ;;  %v730_v34 = vpop.f32.mrb[60].mxu0  ;;  %3072 = vmatmul.mubr.bf16.gmra.mrb[140].mxu0 %v7691_v45  ;;  %v1528_v1 = vor.u32 %v1527_v51, %v1523_v43  ;;  %v1539_v30 = vrot.slane %v1537_v10, 1  ;;  %v3800_v38 = vrot.slane %v5315_v52, 1 }
 0x18a   : > { %v731_v14 = vadd.f32 %v7796_v53, %v730_v34  ;;  %v6315_v37 = vpop.f32.mrb[61].mxu0  ;;  %v6873_v40 = vld [vmem:[#allocation2 + $0x68] ss:$0 sps:$4 sm:$0x11]   ;;  %3079 = vmatprep.mubr.bf16.mxu0 %v1521_v42  ;;  %6376 = vmatpush3.bf16.msra.mxu1 %v6915_v11  ;;  %v1836_v31 = vld [vmem:[#allocation2 + $0x6c] sm:$0xf] }
 0x18b   : > { %5763 = vst [vmem:[#allocation2 + $0x70] sm:$0xff] %v5608_v32   ;;  %v733_v4 = vpop.f32.mrb[62].mxu0  ;;  %v2120_v45 = vshll.u32 %v6873_v40, 16  ;;  %v7805_v2 = vld [vmem:[#allocation2 + $0x68] ss:$0 sps:$4 sm:$0x11]   ;;  %6409 = vmatprep.subr.bf16.mxu1 %v6919_v16  ;;  %v1533_v23 = vsel %vm1449_vm6, %v1528_v1, %v1532_v9 }
 0x18c   : > { %v855_v59 = vmax.f32 %v731_v14, 0.0  ;;  %v734_v61 = vadd.f32 %v7796_v53, %v733_v4  ;;  %v6316_v25 = vpop.f32.mrb[63].mxu0  ;;  %v2306_v29 = vrot.slane %v6873_v40, 1  ;;  %v1732_v47 = vrot.slane %v7805_v2, 1  ;;  %v1257_v32 = vld [vmem:[#allocation2 + $0x60] sm:$0xf] }
 0x18d   : > { %v2122_v17 = vrot.slane %v2120_v45, 1  ;;  %v1876_v26 = vld [vmem:[#allocation2 + $0x6c] sm:$0xe]  ;;  %v3801_v14 = vrot.slane %v6980_v58, 1  ;;  %v1535_v4 = vshrl.u32 %v7790_v54, 16  ;;  %v7825_v56 = vcombine.low %v1257_v32, %v7787_v3 }
 0x18e   : > { %v922_v11 = vsel %vm883_vm3, %v855_v59, 0.0  ;;  %v856_v12 = vmax.f32 %v734_v61, 0.0  ;;  %v7811_v41 = vsel %vm1706_vm5, %v2305_v24, %v2306_v29  ;;  %v7817_v35 = vsel %vm1706_vm5, %v1731_v48, %v1732_v47  ;;  %v1298_v24 = vld [vmem:[#allocation2 + $0x6c] sm:$0xe] }
 0x18f   : > { %v2123_v16 = vsel %vm1449_vm6, %v2118_v22, %v2122_v17  ;;  %v7828_v61 = vsel %vm1706_vm5, %v3800_v38, %v3801_v14  ;;  %v1540_v9 = vor.u32 %v1539_v30, %v1535_v4  ;;  %v1544_v10 = vrot.slane %v1542_v27, 1 }
 0x190   : > { %v5613_v20 = vpack.c.bf16 %v856_v12, %v922_v11  ;;  %2629 = vmatprep.mubr.bf16.mxu1 %v2123_v16  ;;  %8689 = vst [vmem:[#allocation11_spill] sm:$0xff] %v7828_v61  ;;  %v1259_v11 = vld [vmem:[#allocation2 + $0x6c] sm:$0xf]  ;;  %v1549_v48 = vshll.u32 %v7825_v56, 16 }
 0x191   : > { %v738_v34 = vpop.f32.mrb[64].mxu0  ;;  %2630 = vmatmul.mubr.bf16.gmra.mrb[12].mxu1 %v7760_v46  ;;  %3080 = vmatmul.mubr.bf16.gmra.mrb[144].mxu0 %v7730_v63 }
 0x192   : > { %5764 = vst [vmem:[#allocation2 + $0x78] sm:$0xff] %v5613_v20   ;;  %v739_v37 = vadd.f32 %v7796_v53, %v738_v34  ;;  %v6319_v42 = vpop.f32.mrb[65].mxu0  ;;  %v1837_v40 = vld [vmem:[#allocation2 + $0x70] sm:$0xf]  ;;  %3087 = vmatprep.mubr.bf16.mxu0 %v1533_v23 }
 0x193   : > { %v741_v5 = vpop.f32.mrb[66].mxu0  ;;  %v5145_v43 = vcombine.low %v1836_v31, %v1837_v40  ;;  %v6878_v51 = vld [vmem:[#allocation2 + $0x74] ss:$0 sps:$4 sm:$0x11]   ;;  %v1260_v58 = vld [vmem:[#allocation2 + $0x70] sm:$0xf]  ;;  %v5177_v59 = vcombine.low %v1876_v26, %v1837_v40  ;;  %v1545_v26 = vsel %vm1449_vm6, %v1540_v9, %v1544_v10 }
 0x194   : > { %v857_v46 = vmax.f32 %v739_v37, 0.0  ;;  %v742_v63 = vadd.f32 %v7796_v53, %v741_v5  ;;  %v6320_v25 = vpop.f32.mrb[67].mxu0  ;;  %v2132_v52 = vshll.u32 %v6878_v51, 16  ;;  %v7831_v12 = vld [vmem:[#allocation2 + $0x74] ss:$0 sps:$4 sm:$0x11]   ;;  %v5130_v3 = vcombine.low %v1298_v24, %v1260_v58 }
 0x195   : > { %v2127_v45 = vshll.u32 %v5145_v43, 16  ;;  %v2125_v22 = vshrl.u32 %v5145_v43, 16  ;;  %v2308_v47 = vrot.slane %v5177_v59, 1  ;;  %v7838_v1 = vcombine.low %v1259_v11, %v1260_v58 }
 0x196   : > { %v858_v29 = vmax.f32 %v742_v63, 0.0  ;;  %v924_v20 = vsel %vm888_vm4, %v857_v46, 0.0  ;;  %v2309_v31 = vrot.slane %v6878_v51, 1  ;;  %v2134_v30 = vrot.slane %v2132_v52, 1 }
 0x197   : > { %v2129_v17 = vrot.slane %v2127_v45, 1  ;;  %v1554_v42 = vshll.u32 %v7805_v2, 16  ;;  %v1734_v4 = vrot.slane %v5130_v3, 1  ;;  %v1735_v59 = vrot.slane %v7831_v12, 1 }
 0x198   : > { %v925_v16 = vsel %vm883_vm3, %v858_v29, 0.0  ;;  %v7846_v40 = vsel %vm1706_vm5, %v2308_v47, %v2309_v31  ;;  %v1551_v2 = vrot.slane %v1549_v48, 1  ;;  %v1561_v63 = vshll.u32 %v7838_v1, 16 }
 0x199   : > { %v5618_v27 = vpack.c.bf16 %v925_v16, %v924_v20  ;;  %v746_v32 = vpop.f32.mrb[68].mxu0  ;;  %v2130_v34 = vor.u32 %v2129_v17, %v2125_v22  ;;  %v1838_v38 = vld [vmem:[#allocation2 + $0x78] sm:$0xf]  ;;  %v1839_v14 = vld [vmem:[#allocation2 + $0x7c] sm:$0xf]  ;;  %3088 = vmatmul.mubr.bf16.gmra.mrb[148].mxu0 %v7768_v7  ;;  %v1547_v25 = vshrl.u32 %v7825_v56, 16  ;;  %v7856_v11 = vsel %vm1706_vm5, %v1734_v4, %v1735_v59 }
 0x19a   : > { %v6323_v37 = vpop.f32.mrb[69].mxu0  ;;  %v7843_v23 = vcombine.low %v1838_v38, %v1839_v14  ;;  %v747_v5 = vadd.f32 %v7796_v53, %v746_v32  ;;  %3095 = vmatprep.mubr.bf16.mxu0 %v1545_v26  ;;  %v1261_v52 = vld [vmem:[#allocation2 + $0x78] sm:$0xf]  ;;  %v1556_v10 = vrot.slane %v1554_v42, 1  ;;  %v1262_v24 = vld [vmem:[#allocation2 + $0x7c] sm:$0xf] }
 0x19b   : > { %5765 = vst [vmem:[#allocation2 + $0x80] sm:$0xff] %v5618_v27   ;;  %v749_v51 = vpop.f32.mrb[70].mxu0  ;;  %v2135_v58 = vsel %vm1449_vm6, %v2130_v34, %v2134_v30  ;;  %v1877_v29 = vld [vmem:[#allocation2 + $0x78] sm:$0xe]  ;;  %v1552_v17 = vor.u32 %v1551_v2, %v1547_v25  ;;  %v1563_v48 = vrot.slane %v1561_v63, 1  ;;  %v7860_v31 = vcombine.low %v1261_v52, %v1262_v24 }
 0x19c   : > { %v750_v46 = vadd.f32 %v7796_v53, %v749_v51  ;;  %v6324_v7 = vpop.f32.mrb[71].mxu0  ;;  %2637 = vmatprep.mubr.bf16.mxu1 %v2135_v58  ;;  %v2139_v45 = vshll.u32 %v7843_v23, 16  ;;  %v859_v3 = vmax.f32 %v747_v5, 0.0  ;;  %v1299_v47 = vld [vmem:[#allocation2 + $0x78] sm:$0xe]  ;;  %v5178_v27 = vcombine.low %v1877_v29, %v1839_v14 }
 0x19d   : > { %2638 = vmatmul.mubr.bf16.gmra.mrb[16].mxu1 %v5145_v43  ;;  %v1557_v30 = vsel %vm1449_vm6, %v1552_v17, %v1556_v10  ;;  %v2137_v37 = vshrl.u32 %v7843_v23, 16  ;;  %v1559_v42 = vshrl.u32 %v7838_v1, 16  ;;  %v1566_v4 = vshll.u32 %v7831_v12, 16 }
 0x19e   : > { %v860_v9 = vmax.f32 %v750_v46, 0.0  ;;  %v2141_v16 = vrot.slane %v2139_v45, 1  ;;  %v5131_v5 = vcombine.low %v1299_v47, %v1262_v24  ;;  %v1573_v7 = vshll.u32 %v7860_v31, 16 }
 0x19f   : > { %v2311_v2 = vrot.slane %v5178_v27, 1 }
 0x1a0   : > { %v927_v22 = vsel %vm888_vm4, %v860_v9, 0.0  ;;  %v2142_v52 = vor.u32 %v2141_v16, %v2137_v37  ;;  %v1737_v10 = vrot.slane %v5131_v5, 1  ;;  %v1575_v47 = vrot.slane %v1573_v7, 1 }
 0x1a1   : > { %v5623_v43 = vpack.c.bf16 %v927_v22, %v859_v3  ;;  %v754_v20 = vpop.f32.mrb[72].mxu0  ;;  %3096 = vmatmul.mubr.bf16.gmra.mrb[152].mxu0 %v7790_v54  ;;  %v1564_v54 = vor.u32 %v1563_v48, %v1559_v42  ;;  %v1568_v22 = vrot.slane %v1566_v4, 1 }
 0x1a2   : > { %v755_v32 = vadd.f32 %v7796_v53, %v754_v20  ;;  %v6327_v34 = vpop.f32.mrb[73].mxu0  ;;  %v6885_v26 = vld [vmem:[#allocation2 + $0x80] ss:$0 sps:$4 sm:$0x11]   ;;  %3103 = vmatprep.mubr.bf16.mxu0 %v1557_v30  ;;  %v1840_v17 = vld [vmem:[#allocation2 + $0x84] sm:$0xf] }
 0x1a3   : > { %5766 = vst [vmem:[#allocation2 + $0x88] sm:$0xff] %v5623_v43   ;;  %v757_v38 = vpop.f32.mrb[74].mxu0  ;;  %v2144_v59 = vshll.u32 %v6885_v26, 16  ;;  %v6892_v46 = vld [vmem:[#allocation2 + $0x80] ss:$0 sps:$4 sm:$0x11]   ;;  %v1569_v34 = vsel %vm1449_vm6, %v1564_v54, %v1568_v22 }
 0x1a4   : > { %v861_v51 = vmax.f32 %v755_v32, 0.0  ;;  %v758_v14 = vadd.f32 %v7796_v53, %v757_v38  ;;  %v6328_v58 = vpop.f32.mrb[75].mxu0  ;;  %v2312_v63 = vrot.slane %v6885_v26, 1  ;;  %v1738_v24 = vrot.slane %v6892_v46, 1  ;;  %v1263_v43 = vld [vmem:[#allocation2 + $0x84] sm:$0xf] }
 0x1a5   : > { %v2146_v9 = vrot.slane %v2144_v59, 1  ;;  %v1878_v20 = vld [vmem:[#allocation2 + $0x84] sm:$0xe]  ;;  %v1578_v26 = vshll.u32 %v6892_v46, 16 }
 0x1a6   : > { %v928_v25 = vsel %vm883_vm3, %v861_v51, 0.0  ;;  %v862_v45 = vmax.f32 %v758_v14, 0.0  ;;  %v7873_v12 = vsel %vm1706_vm5, %v2311_v2, %v2312_v63  ;;  %v7877_v27 = vsel %vm1706_vm5, %v1737_v10, %v1738_v24  ;;  %v1300_v2 = vld [vmem:[#allocation2 + $0x84] sm:$0xe] }
 0x1a7   : > { %v2147_v3 = vsel %vm1449_vm6, %v2142_v52, %v2146_v9  ;;  %v1580_v63 = vrot.slane %v1578_v26, 1 }
 0x1a8   : > { %v5628_v29 = vpack.c.bf16 %v862_v45, %v928_v25  ;;  %2645 = vmatprep.mubr.bf16.mxu1 %v2147_v3 }
 0x1a9   : > { %v762_v48 = vpop.f32.mrb[76].mxu0  ;;  %2646 = vmatmul.mubr.bf16.gmra.mrb[20].mxu1 %v7843_v23  ;;  %3104 = vmatmul.mubr.bf16.gmra.mrb[156].mxu0 %v7825_v56  ;;  %v1571_v56 = vshrl.u32 %v7860_v31, 16 }
 0x1aa   : > { %5767 = vst [vmem:[#allocation2 + $0x90] sm:$0xff] %v5628_v29   ;;  %v763_v16 = vadd.f32 %v7796_v53, %v762_v48  ;;  %v6331_v32 = vpop.f32.mrb[77].mxu0  ;;  %v1841_v30 = vld [vmem:[#allocation2 + $0x88] sm:$0xf]  ;;  %3111 = vmatprep.mubr.bf16.mxu0 %v1569_v34 }
 0x1ab   : > { %v765_v38 = vpop.f32.mrb[78].mxu0  ;;  %v5147_v37 = vcombine.low %v1840_v17, %v1841_v30  ;;  %v6890_v42 = vld [vmem:[#allocation2 + $0x8c] ss:$0 sps:$4 sm:$0x11]   ;;  %v1264_v4 = vld [vmem:[#allocation2 + $0x88] sm:$0xf]  ;;  %v5179_v5 = vcombine.low %v1878_v20, %v1841_v30  ;;  %v1576_v10 = vor.u32 %v1575_v47, %v1571_v56 }
 0x1ac   : > { %v863_v51 = vmax.f32 %v763_v16, 0.0  ;;  %v766_v14 = vadd.f32 %v7796_v53, %v765_v38  ;;  %v6332_v58 = vpop.f32.mrb[79].mxu0  ;;  %v7884_v59 = vcombine.low %v1263_v43, %v1264_v4  ;;  %v2156_v23 = vshll.u32 %v6890_v42, 16  ;;  %v6894_v46 = vld [vmem:[#allocation2 + $0x8c] ss:$0 sps:$4 sm:$0x11]  }
 0x1ad   : > { %v2151_v7 = vshll.u32 %v5147_v37, 16  ;;  %v5132_v45 = vcombine.low %v1300_v2, %v1264_v4  ;;  %v2149_v52 = vshrl.u32 %v5147_v37, 16  ;;  %v2314_v24 = vrot.slane %v5179_v5, 1  ;;  %v8002_v60 = vld [vmem:[#allocation2 + $0x8c] ss:$0 sps:$4 sm:$0x11]  }
 0x1ae   : > { %v864_v54 = vmax.f32 %v766_v14, 0.0  ;;  %v1585_v25 = vshll.u32 %v7884_v59, 16  ;;  %v930_v29 = vsel %vm888_vm4, %v863_v51, 0.0  ;;  %v2158_v22 = vrot.slane %v2156_v23, 1 }
 0x1af   : > { %v2153_v9 = vrot.slane %v2151_v7, 1  ;;  %v2315_v17 = vrot.slane %v6890_v42, 1  ;;  %v1581_v47 = vsel %vm1449_vm6, %v1576_v10, %v1580_v63  ;;  %v1740_v51 = vrot.slane %v5132_v45, 1 }
 0x1b0   : > { %v931_v3 = vsel %vm883_vm3, %v864_v54, 0.0  ;;  %v1587_v16 = vrot.slane %v1585_v25, 1  ;;  %v1741_v23 = vrot.slane %v6894_v46, 1  ;;  %v1583_v54 = vshrl.u32 %v7884_v59, 16 }
 0x1b1   : > { %v5633_v48 = vpack.c.bf16 %v931_v3, %v930_v29  ;;  %v770_v43 = vpop.f32.mrb[80].mxu0  ;;  %v2154_v20 = vor.u32 %v2153_v9, %v2149_v52  ;;  %v1842_v32 = vld [vmem:[#allocation2 + $0x90] sm:$0xf]  ;;  %v1843_v34 = vld [vmem:[#allocation2 + $0x94] sm:$0xf]  ;;  %3112 = vmatmul.mubr.bf16.gmra.mrb[160].mxu0 %v7838_v1  ;;  %v7897_v5 = vsel %vm1706_vm5, %v2314_v24, %v2315_v17  ;;  %v1590_v63 = vshll.u32 %v6894_v46, 16 }
 0x1b2   : > { %v6335_v30 = vpop.f32.mrb[81].mxu0  ;;  %v7894_v26 = vcombine.low %v1842_v32, %v1843_v34  ;;  %v1265_v38 = vld [vmem:[#allocation2 + $0x90] sm:$0xf]  ;;  %v1266_v4 = vld [vmem:[#allocation2 + $0x94] sm:$0xf]  ;;  %v771_v42 = vadd.f32 %v7796_v53, %v770_v43  ;;  %3119 = vmatprep.mubr.bf16.mxu0 %v1581_v47  ;;  %v1588_v10 = vor.u32 %v1587_v16, %v1583_v54  ;;  %v7908_v24 = vsel %vm1706_vm5, %v1740_v51, %v1741_v23 }
 0x1b3   : > { %5768 = vst [vmem:[#allocation2 + $0x98] sm:$0xff] %v5633_v48   ;;  %v773_v14 = vpop.f32.mrb[82].mxu0  ;;  %v2159_v58 = vsel %vm1449_vm6, %v2154_v20, %v2158_v22  ;;  %v7901_v7 = vcombine.low %v1265_v38, %v1266_v4  ;;  %v1879_v1 = vld [vmem:[#allocation2 + $0x90] sm:$0xe]  ;;  %v1592_v22 = vrot.slane %v1590_v63, 1 }
 0x1b4   : > { %v774_v56 = vadd.f32 %v7796_v53, %v773_v14  ;;  %v6336_v2 = vpop.f32.mrb[83].mxu0  ;;  %2653 = vmatprep.mubr.bf16.mxu1 %v2159_v58  ;;  %v2163_v25 = vshll.u32 %v7894_v26, 16  ;;  %v5180_v52 = vcombine.low %v1879_v1, %v1843_v34  ;;  %v865_v29 = vmax.f32 %v771_v42, 0.0  ;;  %v1301_v48 = vld [vmem:[#allocation2 + $0x90] sm:$0xe] }
 0x1b5   : > { %2654 = vmatmul.mubr.bf16.gmra.mrb[24].mxu1 %v5147_v37  ;;  %v1597_v45 = vshll.u32 %v7901_v7, 16  ;;  %v2161_v17 = vshrl.u32 %v7894_v26, 16  ;;  %v1593_v16 = vsel %vm1449_vm6, %v1588_v10, %v1592_v22  ;;  %v5133_v42 = vcombine.low %v1301_v48, %v1266_v4 }
 0x1b6   : > { %v866_v9 = vmax.f32 %v774_v56, 0.0  ;;  %v2165_v43 = vrot.slane %v2163_v25, 1  ;;  %v2317_v32 = vrot.slane %v5180_v52, 1  ;;  %v1595_v54 = vshrl.u32 %v7901_v7, 16 }
 0x1b7   : > { %v1599_v20 = vrot.slane %v1597_v45, 1  ;;  %v1743_v4 = vrot.slane %v5133_v42, 1 }
 0x1b8   : > { %v933_v3 = vsel %vm888_vm4, %v866_v9, 0.0  ;;  %v2166_v2 = vor.u32 %v2165_v43, %v2161_v17 }
 0x1b9   : > { %v5638_v46 = vpack.c.bf16 %v933_v3, %v865_v29  ;;  %v778_v37 = vpop.f32.mrb[84].mxu0  ;;  %3120 = vmatmul.mubr.bf16.gmra.mrb[164].mxu0 %v7860_v31  ;;  %v1600_v22 = vor.u32 %v1599_v20, %v1595_v54 }
 0x1ba   : > { %v779_v34 = vadd.f32 %v7796_v53, %v778_v37  ;;  %v6339_v30 = vpop.f32.mrb[85].mxu0  ;;  %v6897_v47 = vld [vmem:[#allocation2 + $0x98] ss:$0 sps:$4 sm:$0x11]   ;;  %3127 = vmatprep.mubr.bf16.mxu0 %v1593_v16  ;;  %v1844_v48 = vld [vmem:[#allocation2 + $0x9c] sm:$0xf] }
 0x1bb   : > { %5769 = vst [vmem:[#allocation2 + $0xa0] sm:$0xff] %v5638_v46   ;;  %v781_v38 = vpop.f32.mrb[86].mxu0  ;;  %v6899_v51 = vld [vmem:[#allocation2 + $0x98] ss:$0 sps:$4 sm:$0x11]   ;;  %v2168_v23 = vshll.u32 %v6897_v47, 16 }
 0x1bc   : > { %v867_v14 = vmax.f32 %v779_v34, 0.0  ;;  %v782_v58 = vadd.f32 %v7796_v53, %v781_v38  ;;  %v6340_v1 = vpop.f32.mrb[87].mxu0  ;;  %v2318_v56 = vrot.slane %v6897_v47, 1  ;;  %v1602_v63 = vshll.u32 %v6899_v51, 16  ;;  %v1267_v46 = vld [vmem:[#allocation2 + $0x9c] sm:$0xf] }
 0x1bd   : > { %v2170_v45 = vrot.slane %v2168_v23, 1  ;;  %v1744_v10 = vrot.slane %v6899_v51, 1  ;;  %v1880_v37 = vld [vmem:[#allocation2 + $0x9c] sm:$0xe] }
 0x1be   : > { %v934_v31 = vsel %vm883_vm3, %v867_v14, 0.0  ;;  %v868_v25 = vmax.f32 %v782_v58, 0.0  ;;  %v7921_v52 = vsel %vm1706_vm5, %v2317_v32, %v2318_v56  ;;  %v1604_v9 = vrot.slane %v1602_v63, 1  ;;  %v1302_v56 = vld [vmem:[#allocation2 + $0x9c] sm:$0xe] }
 0x1bf   : > { %v2171_v3 = vsel %vm1449_vm6, %v2166_v2, %v2170_v45  ;;  %v7925_v43 = vsel %vm1706_vm5, %v1743_v4, %v1744_v10 }
 0x1c0   : > { %v5643_v29 = vpack.c.bf16 %v868_v25, %v934_v31  ;;  %2661 = vmatprep.mubr.bf16.mxu1 %v2171_v3  ;;  %v1605_v30 = vsel %vm1449_vm6, %v1600_v22, %v1604_v9 }
 0x1c1   : > { %v786_v17 = vpop.f32.mrb[88].mxu0  ;;  %2662 = vmatmul.mubr.bf16.gmra.mrb[28].mxu1 %v7894_v26  ;;  %3128 = vmatmul.mubr.bf16.gmra.mrb[168].mxu0 %v7884_v59 }
 0x1c2   : > { %5770 = vst [vmem:[#allocation2 + $0xa8] sm:$0xff] %v5643_v29   ;;  %v787_v34 = vadd.f32 %v7796_v53, %v786_v17  ;;  %v6343_v32 = vpop.f32.mrb[89].mxu0  ;;  %v1845_v16 = vld [vmem:[#allocation2 + $0xa0] sm:$0xf]  ;;  %3135 = vmatprep.mubr.bf16.mxu0 %v1605_v30 }
 0x1c3   : > { %v789_v20 = vpop.f32.mrb[90].mxu0  ;;  %v5149_v47 = vcombine.low %v1844_v48, %v1845_v16  ;;  %v6902_v38 = vld [vmem:[#allocation2 + $0xa4] ss:$0 sps:$4 sm:$0x11]   ;;  %v1268_v51 = vld [vmem:[#allocation2 + $0xa0] sm:$0xf]  ;;  %v5181_v42 = vcombine.low %v1880_v37, %v1845_v16 }
 0x1c4   : > { %v869_v14 = vmax.f32 %v787_v34, 0.0  ;;  %v790_v58 = vadd.f32 %v7796_v53, %v789_v20  ;;  %v6344_v1 = vpop.f32.mrb[91].mxu0  ;;  %v5102_v23 = vcombine.low %v1267_v46, %v1268_v51  ;;  %v2180_v54 = vshll.u32 %v6902_v38, 16  ;;  %v6904_v26 = vld [vmem:[#allocation2 + $0xa4] ss:$0 sps:$4 sm:$0x11]  }
 0x1c5   : > { %v2175_v2 = vshll.u32 %v5149_v47, 16  ;;  %v5134_v63 = vcombine.low %v1302_v56, %v1268_v51  ;;  %v2173_v25 = vshrl.u32 %v5149_v47, 16  ;;  %v1614_v10 = vshll.u32 %v6904_v26, 16 }
 0x1c6   : > { %v936_v59 = vsel %vm888_vm4, %v869_v14, 0.0  ;;  %v870_v31 = vmax.f32 %v790_v58, 0.0  ;;  %v1609_v45 = vshll.u32 %v5102_v23, 16  ;;  %v1607_v4 = vshrl.u32 %v5102_v23, 16 }
 0x1c7   : > { %v2177_v9 = vrot.slane %v2175_v2, 1  ;;  %v2320_v29 = vrot.slane %v5181_v42, 1  ;;  %v2182_v22 = vrot.slane %v2180_v54, 1  ;;  %v2321_v17 = vrot.slane %v6902_v38, 1 }
 0x1c8   : > { %v937_v3 = vsel %vm883_vm3, %v870_v31, 0.0  ;;  %v1611_v48 = vrot.slane %v1609_v45, 1  ;;  %v1746_v16 = vrot.slane %v5134_v63, 1  ;;  %v1616_v14 = vrot.slane %v1614_v10, 1 }
 0x1c9   : > { %v5648_v46 = vpack.c.bf16 %v937_v3, %v936_v59  ;;  %v794_v37 = vpop.f32.mrb[92].mxu0  ;;  %v2178_v34 = vor.u32 %v2177_v9, %v2173_v25  ;;  %v1846_v32 = vld [vmem:[#allocation2 + $0xa8] sm:$0xf]  ;;  %v1847_v30 = vld [vmem:[#allocation2 + $0xac] sm:$0xf]  ;;  %3136 = vmatmul.mubr.bf16.gmra.mrb[172].mxu0 %v7901_v7  ;;  %v7940_v56 = vsel %vm1706_vm5, %v2320_v29, %v2321_v17  ;;  %v1747_v31 = vrot.slane %v6904_v26, 1 }
 0x1ca   : > { %v6347_v20 = vpop.f32.mrb[93].mxu0  ;;  %v1612_v51 = vor.u32 %v1611_v48, %v1607_v4  ;;  %v7937_v58 = vcombine.low %v1846_v32, %v1847_v30  ;;  %v1269_v42 = vld [vmem:[#allocation2 + $0xa8] sm:$0xf]  ;;  %v1270_v1 = vld [vmem:[#allocation2 + $0xac] sm:$0xf]  ;;  %v795_v38 = vadd.f32 %v7796_v53, %v794_v37 }
 0x1cb   : > { %5771 = vst [vmem:[#allocation2 + $0xb0] sm:$0xff] %v5648_v46   ;;  %v797_v2 = vpop.f32.mrb[94].mxu0  ;;  %v2183_v54 = vsel %vm1449_vm6, %v2178_v34, %v2182_v22  ;;  %v7944_v59 = vcombine.low %v1269_v42, %v1270_v1  ;;  %v1881_v63 = vld [vmem:[#allocation2 + $0xa8] sm:$0xe]  ;;  %v7951_v3 = vsel %vm1706_vm5, %v1746_v16, %v1747_v31 }
 0x1cc   : > { %v798_v7 = vadd.f32 %v7796_v53, %v797_v2  ;;  %v6348_v25 = vpop.f32.mrb[95].mxu0  ;;  %2669 = vmatprep.mubr.bf16.mxu1 %v2183_v54  ;;  %v1617_v45 = vsel %vm1449_vm6, %v1612_v51, %v1616_v14  ;;  %v2187_v9 = vshll.u32 %v7937_v58, 16  ;;  %v5182_v10 = vcombine.low %v1881_v63, %v1847_v30  ;;  %v1303_v17 = vld [vmem:[#allocation2 + $0xa8] sm:$0xe] }
 0x1cd   : > { %3143 = vmatprep.mubr.bf16.mxu0 %v1617_v45  ;;  %2670 = vmatmul.mubr.bf16.gmra.mrb[32].mxu1 %v5149_v47  ;;  %v1621_v4 = vshll.u32 %v7944_v59, 16  ;;  %v871_v22 = vmax.f32 %v795_v38, 0.0  ;;  %v2185_v48 = vshrl.u32 %v7937_v58, 16  ;;  %v5135_v42 = vcombine.low %v1303_v17, %v1270_v1 }
 0x1ce   : > { %v872_v29 = vmax.f32 %v798_v7, 0.0  ;;  %v2189_v34 = vrot.slane %v2187_v9, 1  ;;  %v2323_v32 = vrot.slane %v5182_v10, 1  ;;  %v1619_v25 = vshrl.u32 %v7944_v59, 16 }
 0x1cf   : > { %v1623_v47 = vrot.slane %v1621_v4, 1 }
 0x1d0   : > { %v939_v26 = vsel %vm888_vm4, %v872_v29, 0.0  ;;  %v2190_v7 = vor.u32 %v2189_v34, %v2185_v48 }
 0x1d1   : > { %v5653_v46 = vpack.c.bf16 %v939_v26, %v871_v22  ;;  %v802_v37 = vpop.f32.mrb[96].mxu0  ;;  %3144 = vmatmul.mubr.bf16.gmra.mrb[176].mxu0 %v5102_v23  ;;  %v1624_v29 = vor.u32 %v1623_v47, %v1619_v25  ;;  %v1749_v22 = vrot.slane %v5135_v42, 1 }
 0x1d2   : > { %v803_v20 = vadd.f32 %v7796_v53, %v802_v37  ;;  %v6351_v51 = vpop.f32.mrb[97].mxu0  ;;  %v6907_v30 = vld [vmem:[#allocation2 + $0xb0] ss:$0 sps:$4 sm:$0x11]   ;;  %v1848_v37 = vld [vmem:[#allocation2 + $0xb4] sm:$0xf] }
 0x1d3   : > { %5772 = vst [vmem:[#allocation2 + $0xb8] sm:$0xff] %v5653_v46   ;;  %v805_v16 = vpop.f32.mrb[98].mxu0  ;;  %v6909_v14 = vld [vmem:[#allocation2 + $0xb0] ss:$0 sps:$4 sm:$0x11]   ;;  %v2192_v63 = vshll.u32 %v6907_v30, 16 }
 0x1d4   : > { %v873_v38 = vmax.f32 %v803_v20, 0.0  ;;  %v806_v2 = vadd.f32 %v7796_v53, %v805_v16  ;;  %v6352_v54 = vpop.f32.mrb[99].mxu0  ;;  %v2324_v31 = vrot.slane %v6907_v30, 1  ;;  %v1626_v45 = vshll.u32 %v6909_v14, 16  ;;  %v1271_v20 = vld [vmem:[#allocation2 + $0xb4] sm:$0xf] }
 0x1d5   : > { %v2194_v23 = vrot.slane %v2192_v63, 1  ;;  %v1750_v26 = vrot.slane %v6909_v14, 1  ;;  %v1882_v51 = vld [vmem:[#allocation2 + $0xb4] sm:$0xe] }
 0x1d6   : > { %v940_v9 = vsel %vm883_vm3, %v873_v38, 0.0  ;;  %v874_v4 = vmax.f32 %v806_v2, 0.0  ;;  %v7962_v10 = vsel %vm1706_vm5, %v2323_v32, %v2324_v31  ;;  %v1628_v1 = vrot.slane %v1626_v45, 1  ;;  %v1304_v16 = vld [vmem:[#allocation2 + $0xb4] sm:$0xe] }
 0x1d7   : > { %v2195_v46 = vsel %vm1449_vm6, %v2190_v7, %v2194_v23  ;;  %v7967_v30 = vsel %vm1706_vm5, %v1749_v22, %v1750_v26 }
 0x1d8   : > { %v5658_v17 = vpack.c.bf16 %v874_v4, %v940_v9  ;;  %2677 = vmatprep.mubr.bf16.mxu1 %v2195_v46  ;;  %v1629_v34 = vsel %vm1449_vm6, %v1624_v29, %v1628_v1 }
 0x1d9   : > { %v810_v48 = vpop.f32.mrb[100].mxu0  ;;  %3151 = vmatprep.mubr.bf16.mxu0 %v1629_v34  ;;  %2678 = vmatmul.mubr.bf16.gmra.mrb[36].mxu1 %v7937_v58 }
 0x1da   : > { %5773 = vst [vmem:[#allocation2 + $0xc0] sm:$0xff] %v5658_v17   ;;  %v811_v47 = vadd.f32 %v7796_v53, %v810_v48  ;;  %v6355_v32 = vpop.f32.mrb[101].mxu0  ;;  %v1849_v14 = vld [vmem:[#allocation2 + $0xb8] sm:$0xf]  ;;  %3152 = vmatmul.mubr.bf16.gmra.mrb[180].mxu0 %v7944_v59 }
 0x1db   : > { %v813_v42 = vpop.f32.mrb[102].mxu0  ;;  %v5151_v38 = vcombine.low %v1848_v37, %v1849_v14  ;;  %v6912_v2 = vld [vmem:[#allocation2 + $0xbc] ss:$0 sps:$4 sm:$0x11]   ;;  %v1272_v54 = vld [vmem:[#allocation2 + $0xb8] sm:$0xf]  ;;  %v5183_v63 = vcombine.low %v1882_v51, %v1849_v14 }
 0x1dc   : > { %v875_v31 = vmax.f32 %v811_v47, 0.0  ;;  %v814_v7 = vadd.f32 %v7796_v53, %v813_v42  ;;  %v6356_v25 = vpop.f32.mrb[103].mxu0  ;;  %v5104_v45 = vcombine.low %v1271_v20, %v1272_v54  ;;  %v5136_v9 = vcombine.low %v1304_v16, %v1272_v54  ;;  %v6914_v1 = vld [vmem:[#allocation2 + $0xbc] ss:$0 sps:$4 sm:$0x11]  }
 0x1dd   : > { %v2197_v4 = vshrl.u32 %v5151_v38, 16  ;;  %v2199_v23 = vshll.u32 %v5151_v38, 16  ;;  %v2204_v29 = vshll.u32 %v6912_v2, 16  ;;  %v1638_v37 = vshll.u32 %v6914_v1, 16 }
 0x1de   : > { %v942_v58 = vsel %vm888_vm4, %v875_v31, 0.0  ;;  %v876_v22 = vmax.f32 %v814_v7, 0.0  ;;  %v1631_v26 = vshrl.u32 %v5104_v45, 16  ;;  %v1633_v59 = vshll.u32 %v5104_v45, 16 }
 0x1df   : > { %v2201_v17 = vrot.slane %v2199_v23, 1  ;;  %v2206_v46 = vrot.slane %v2204_v29, 1  ;;  %v2326_v48 = vrot.slane %v5183_v63, 1  ;;  %v2327_v20 = vrot.slane %v6912_v2, 1 }
 0x1e0   : > { %v943_v34 = vsel %vm883_vm3, %v876_v22, 0.0  ;;  %v1635_v51 = vrot.slane %v1633_v59, 1  ;;  %v1752_v16 = vrot.slane %v5136_v9, 1  ;;  %v1640_v14 = vrot.slane %v1638_v37, 1 }
 0x1e1   : > { %v5663_v47 = vpack.c.bf16 %v943_v34, %v942_v58  ;;  %v2202_v32 = vor.u32 %v2201_v17, %v2197_v4  ;;  %v1850_v42 = vld [vmem:[#allocation2 + $0xc0] sm:$0xf]  ;;  %v1851_v54 = vld [vmem:[#allocation2 + $0xc4] sm:$0xf]  ;;  %v818_v25 = vpop.f32.mrb[104].mxu0  ;;  %v7981_v63 = vsel %vm1706_vm5, %v2326_v48, %v2327_v20  ;;  %v1753_v9 = vrot.slane %v6914_v1, 1 }
 0x1e2   : > { %v1636_v31 = vor.u32 %v1635_v51, %v1631_v26  ;;  %v7977_v7 = vcombine.low %v1850_v42, %v1851_v54  ;;  %v819_v23 = vadd.f32 %v7796_v53, %v818_v25  ;;  %v6359_v29 = vpop.f32.mrb[105].mxu0  ;;  %v1883_v26 = vld [vmem:[#allocation2 + $0xc0] sm:$0xe]  ;;  %v7991_v48 = vld [vmem:[#allocation2 + $0x7c] sm:$0xf] }
 0x1e3   : > { %5774 = vst [vmem:[#allocation2 + $0xc8] sm:$0xff] %v5663_v47   ;;  %v2207_v49 = vsel %vm1449_vm6, %v2202_v32, %v2206_v46  ;;  %v821_v2 = vpop.f32.mrb[106].mxu0  ;;  %v7988_v59 = vsel %vm1706_vm5, %v1752_v16, %v1753_v9  ;;  %v5184_v1 = vcombine.low %v1883_v26, %v1851_v54  ;;  %v7995_v51 = vld [vmem:[#allocation2 + $0x88] sm:$0xf]  ;;  %v3387_v32 = vld [vmem:[#allocation2 + $0x84] sm:$0xe] }
 0x1e4   : > { %1238 = vst [vmem:[#allocation2 + $0xcc] sm:$0xf] %v7155_v0  ;;  %2685 = vmatprep.mubr.bf16.mxu1 %v2207_v49  ;;  %v1641_v4 = vsel %vm1449_vm6, %v1636_v31, %v1640_v14  ;;  %v6360_v58 = vpop.f32.mrb[107].mxu0  ;;  %v822_v22 = vadd.f32 %v7796_v53, %v821_v2  ;;  %v2211_v17 = vshll.u32 %v7977_v7, 16  ;;  %v877_v46 = vmax.f32 %v819_v23, 0.0 }
 0x1e5   : > { %3159 = vmatprep.mubr.bf16.mxu0 %v1641_v4  ;;  %2686 = vmatmul.mubr.bf16.gmra.mrb[40].mxu1 %v5151_v38  ;;  %v3386_v38 = vld [vmem:[#allocation2 + $0x78] sm:$0xe]  ;;  %v7997_v16 = vld [vmem:[#allocation2 + $0x80] ss:$0 sps:$4 sm:$0x11]   ;;  %v2209_v42 = vshrl.u32 %v7977_v7, 16  ;;  %v5322_v4 = vcombine.low %v3387_v32, %v7995_v51 }
 0x1e6   : > { %3160 = vmatmul.mubr.bf16.gmra.mrb[184].mxu0 %v5104_v45  ;;  %v878_v37 = vmax.f32 %v822_v22, 0.0  ;;  %v2213_v53 = vrot.slane %v2211_v17, 1  ;;  %v7999_v45 = vld [vmem:[#allocation2 + $0x94] sm:$0xf]  ;;  %v3388_v14 = vld [vmem:[#allocation2 + $0x90] sm:$0xe]  ;;  %v5321_v9 = vcombine.low %v3386_v38, %v7991_v48 }
 0x1e7   : > { %v2329_v25 = vrot.slane %v5184_v1, 1  ;;  %v8004_v23 = vld [vmem:[#allocation2 + $0xa0] sm:$0xf]  ;;  %v8008_v29 = vld [vmem:[#allocation2 + $0x98] ss:$0 sps:$4 sm:$0x11]  }
 0x1e8   : > { %v945_v34 = vsel %vm888_vm4, %v878_v37, 0.0  ;;  %v3355_v49 = vld [vmem:[#allocation2 + $0xac] sm:$0xf]  ;;  %v3357_v2 = vld [vmem:[#allocation2 + $0xb8] sm:$0xf]  ;;  %v2214_v22 = vor.u32 %v2213_v53, %v2209_v42  ;;  %v5323_v37 = vcombine.low %v3388_v14, %v7999_v45  ;;  %v3818_v53 = vrot.slane %v5321_v9, 1 }
 0x1e9   : > { %v5668_v47 = vpack.c.bf16 %v945_v34, %v877_v46  ;;  %v3390_v58 = vld [vmem:[#allocation2 + $0xa8] sm:$0xe]  ;;  %v8015_v46 = vld [vmem:[#allocation2 + $0xa4] ss:$0 sps:$4 sm:$0x11]   ;;  %v3819_v42 = vrot.slane %v7997_v16, 1 }
 0x1ea   : > { %v6917_v20 = vld [vmem:[#allocation2 + $0xc8] ss:$0 sps:$4 sm:$0x11]   ;;  %v3389_v1 = vld [vmem:[#allocation2 + $0x9c] sm:$0xe]  ;;  %v5325_v32 = vcombine.low %v3390_v58, %v3355_v49  ;;  %v3824_v21 = vrot.slane %v5323_v37, 1 }
 0x1eb   : > { %v2216_v54 = vshll.u32 %v6917_v20, 16  ;;  %5775 = vst [vmem:[#allocation2 + $0xd0] sm:$0xff] %v5668_v47   ;;  %v2330_v31 = vrot.slane %v6917_v20, 1  ;;  %v5324_v34 = vcombine.low %v3389_v1, %v8004_v23  ;;  %v3391_v20 = vld [vmem:[#allocation2 + $0xb4] sm:$0xe]  ;;  %v3825_v49 = vrot.slane %v8008_v29, 1 }
 0x1ec   : > { %1239 = vst [vmem:[#allocation2 + $0xd0] sm:$0xf] %v7155_v0  ;;  %1240 = vst [vmem:[#allocation2 + $0xd4] sm:$0xf] %v7155_v0  ;;  %v3359_v61 = vld [vmem:[#allocation2 + $0xc4] sm:$0xf]  ;;  %v5326_v44 = vcombine.low %v3391_v20, %v3357_v2 }
 0x1ed   : > { %v2218_v26 = vrot.slane %v2216_v54, 1  ;;  %v8013_v17 = vsel %vm1706_vm5, %v2329_v25, %v2330_v31  ;;  %v7005_v0 = vld [vmem:[#allocation2 + $0xb0] ss:$0 sps:$4 sm:$0x11]   ;;  %v3821_v54 = vrot.slane %v5322_v4, 1  ;;  %v3822_v31 = vrot.slane %v8002_v60, 1 }
 0x1ee   : > { %v7008_v38 = vld [vmem:[#allocation2 + $0xbc] ss:$0 sps:$4 sm:$0x11]   ;;  %v3392_v25 = vld [vmem:[#allocation2 + $0xc0] sm:$0xe]  ;;  %v3827_v2 = vrot.slane %v5324_v34, 1  ;;  %v8033_v1 = vsel %vm1706_vm5, %v3824_v21, %v3825_v49 }
 0x1ef   : > { %v2219_v47 = vsel %vm1449_vm6, %v2214_v22, %v2218_v26  ;;  %v7010_v14 = vld [vmem:[#allocation2 + $0xc8] ss:$0 sps:$4 sm:$0x11]   ;;  %v8025_v22 = vsel %vm1706_vm5, %v3818_v53, %v3819_v42  ;;  %v3828_v9 = vrot.slane %v8015_v46, 1  ;;  %v8030_v58 = vsel %vm1706_vm5, %v3821_v54, %v3822_v31  ;;  %v6943_v31 = vld [vmem:[%s8671_s2 + $0x1c0] sm:$0xff]  }
 0x1f0   : > { %2693 = vmatprep.mubr.bf16.mxu1 %v2219_v47  ;;  %v3830_v4 = vrot.slane %v5325_v32, 1  ;;  %v3831_v26 = vrot.slane %v7005_v0, 1  ;;  %v5327_v20 = vcombine.low %v3392_v25, %v3359_v61  ;;  %v3837_v34 = vrot.slane %v7010_v14, 1  ;;  %v7039_v61 = vld [vmem:[%s8671_s2 + $0x80] sm:$0xff]   ;;  %v6925_v0 = vld [vmem:[%s8671_s2 + $0x90] sm:$0xff]   ;;  %v6940_v32 = vld [vmem:[%s8671_s2 + $0xb8] sm:$0xff]  }
 0x1f1   : > { %2694 = vmatmul.mubr.bf16.gmra.mrb[44].mxu1 %v7977_v7  ;;  %v3833_v7 = vrot.slane %v5326_v44, 1  ;;  %v8036_v37 = vsel %vm1706_vm5, %v3827_v2, %v3828_v9  ;;  %v6922_v44 = vld [vmem:[%s8671_s2 + $0x88] sm:$0xff]  }
 0x1f2   : > { %6377 = vmatprep.mubr.bf16.mxu1 %v7508_v6  ;;  %v3834_v6 = vrot.slane %v7008_v38, 1  ;;  %v8039_v47 = vsel %vm1706_vm5, %v3830_v4, %v3831_v26  ;;  %v3836_v42 = vrot.slane %v5327_v20, 1  ;;  %v6928_v38 = vld [vmem:[%s8671_s2 + $0x98] sm:$0xff]   ;;  %v1289_v26 = vld [vmem:[#allocation2] sm:$0xe] }
 0x1f4   : > { %v8042_v53 = vsel %vm1706_vm5, %v3833_v7, %v3834_v6  ;;  %v8048_v21 = vsel %vm1706_vm5, %v3836_v42, %v3837_v34  ;;  %v7040_v6 = vld [vmem:[#allocation2 + $0x4] sm:$0xf] }
 0x1f5   : > { %v5121_v20 = vcombine.low %v1289_v26, %v7040_v6 }
 0x1f9   : > { %6378 = vmatmul.mubr.bf16.vlgmr.msra.gmra.mrb[48].mxu1 %v7549_v57  ;;  %v6931_v57 = vld [vmem:[%s8671_s2 + $0xa0] sm:$0xff]  }
 0x1fa   : > { %6410 = vmatpush3.bf16.msra.mxu1 %v7039_v61  ;;  %6381 = vmatprep.mubr.bf16.mxu1 %v7591_v55  ;;  %v6934_v55 = vld [vmem:[%s8671_s2 + $0xa8] sm:$0xff]   ;;  %v1707_v61 = vrot.slane %v5121_v20, 1 }
 0x1fb   : > { %6411 = vmatprep.subr.bf16.mxu1 %v6922_v44 }
 0x1fe   : > { %6412 = vmatpush3.bf16.msra.mxu1 %v6922_v44 }
 0x1ff   : > { %6413 = vmatprep.subr.bf16.mxu1 %v6925_v0 }
 0x201   : > { %6382 = vmatmul.mubr.bf16.gmra.mrb[52].mxu1 %v7629_v62  ;;  %v6937_v62 = vld [vmem:[%s8671_s2 + $0xb0] sm:$0xff]  }
 0x202   : > { %6385 = vmatprep.mubr.bf16.mxu1 %v7667_v18  ;;  %6414 = vmatpush3.bf16.msra.mxu1 %v6925_v0  ;;  %v7041_v0 = vld [vmem:[#allocation2 + $0x8] ss:$0 sps:$4 sm:$0x11]  }
 0x203   : > { %6415 = vmatprep.subr.bf16.mxu1 %v6928_v38 }
 0x206   : > { %6416 = vmatpush3.bf16.msra.mxu1 %v6928_v38 }
 0x207   : > { %6417 = vmatprep.subr.bf16.mxu1 %v6931_v57 }
 0x209   : > { %6386 = vmatmul.mubr.bf16.gmra.mrb[56].mxu1 %v7714_v33 }
 0x20a   : > { %6389 = vmatprep.mubr.bf16.mxu1 %v7763_v39  ;;  %6418 = vmatpush3.bf16.msra.mxu1 %v6931_v57 }
 0x20b   : > { %6419 = vmatprep.subr.bf16.mxu1 %v6934_v55 }
 0x20e   : > { %6420 = vmatpush3.bf16.msra.mxu1 %v6934_v55 }
 0x20f   : > { %6421 = vmatprep.subr.bf16.mxu1 %v6937_v62 }
 0x210   : > { %v5835_v18 = vpop.f32.mrb[108].mxu0 }
 0x211   : > { %v5836_v54 = vpop.f32.mrb[109].mxu0  ;;  %6390 = vmatmul.mubr.bf16.gmra.mrb[60].mxu1 %v7811_v41 }
 0x212   : > { %v5837_v25 = vadd.f32 %v5836_v54, %v5835_v18  ;;  %v5838_v14 = vpop.f32.mrb[110].mxu0  ;;  %6393 = vmatprep.mubr.bf16.mxu1 %v7846_v40  ;;  %6422 = vmatpush3.bf16.msra.mxu1 %v6937_v62  ;;  %v6947_v18 = vld [vmem:[%s8671_s2 + $0x1c8] sm:$0xff]   ;;  %v6951_v54 = vld [vmem:[%s8671_s2 + $0x1d0] sm:$0xff]  }
 0x213   : > { %v5839_v33 = vpop.f32.mrb[111].mxu0  ;;  %6423 = vmatprep.subr.bf16.mxu1 %v6940_v32 }
 0x214   : > { %v5840_v39 = vadd.f32 %v5839_v33, %v5838_v14 }
 0x216   : > { %6424 = vmatpush3.bf16.msra.mxu1 %v6940_v32 }
 0x217   : > { %6091 = vmatprep.subr.bf16.mxu1 %v6943_v31 }
 0x219   : > { %6394 = vmatmul.mubr.bf16.gmra.mrb[64].mxu1 %v7873_v12 }
 0x21a   : > { %6397 = vmatprep.mubr.bf16.mxu1 %v7897_v5 }
 0x21c   : > { %v5841_v49 = vpop.f32.mrb[112].mxu0 }
 0x21d   : > { %v5842_v2 = vpop.f32.mrb[113].mxu0 }
 0x21e   : > { %v8084_v9 = vadd.f32 %v5842_v2, %v5841_v49  ;;  %v5844_v41 = vpop.f32.mrb[114].mxu0 }
 0x21f   : > { %v5845_v4 = vpop.f32.mrb[115].mxu0 }
 0x220   : > { %v8086_v40 = vadd.f32 %v5845_v4, %v5844_v41  ;;  %v6955_v41 = vld [vmem:[%s8671_s2 + $0x1d8] sm:$0xff]  }
 0x221   : > { %6398 = vmatmul.mubr.bf16.gmra.mrb[68].mxu1 %v7921_v52  ;;  %v1708_v52 = vrot.slane %v7041_v0, 1 }
 0x222   : > { %6401 = vmatprep.mubr.bf16.mxu1 %v7940_v56 }
 0x223   : > { %v1709_v56 = vsel %vm1706_vm5, %v1707_v61, %v1708_v52 }
 0x228   : > { %v5847_v7 = vpop.f32.mrb[116].mxu0 }
 0x229   : > { %v5848_v34 = vpop.f32.mrb[117].mxu0  ;;  %6402 = vmatmul.mubr.bf16.gmra.mrb[72].mxu1 %v7962_v10  ;;  %v6945_v10 = vld [vmem:[%s8671_s2 + $0x180] sm:$0xff]  }
 0x22a   : > { %v8090_v12 = vadd.f32 %v5848_v34, %v5847_v7  ;;  %v5850_v5 = vpop.f32.mrb[118].mxu0  ;;  %6405 = vmatprep.mubr.bf16.mxu1 %v7981_v63 }
 0x22b   : > { %v5851_v42 = vpop.f32.mrb[119].mxu0 }
 0x22c   : > { %v8094_v44 = vadd.f32 %v5851_v42, %v5850_v5  ;;  %v6957_v42 = vld [vmem:[%s8671_s2 + $0x198] sm:$0xff]  }
 0x231   : > { %6406 = vmatmul.mubr.bf16.gmra.mrb[76].mxu1 %v8013_v17  ;;  %v6949_v17 = vld [vmem:[%s8671_s2 + $0x188] sm:$0xff]  }
 0x232   : > { %6425 = vmatprep.mubr.bf16.mxu1 %v1709_v56 }
 0x234   : > { %v5853_v38 = vpop.f32.mrb[120].mxu0 }
 0x235   : > { %v5854_v57 = vpop.f32.mrb[121].mxu0 }
 0x236   : > { %v8098_v55 = vadd.f32 %v5854_v57, %v5853_v38  ;;  %v5856_v62 = vpop.f32.mrb[122].mxu0  ;;  %v6963_v38 = vld [vmem:[%s8671_s2 + $0x1e8] sm:$0xff]  }
 0x237   : > { %v5857_v63 = vpop.f32.mrb[123].mxu0 }
 0x238   : > { %v8106_v32 = vadd.f32 %v5857_v63, %v5856_v62  ;;  %v6965_v63 = vld [vmem:[%s8671_s2 + $0x1a8] sm:$0xff]  }
 0x239   : > { %6426 = vmatmul.mubr.bf16.vlgmr.msra.gmra.mrb[48].mxu1 %v7522_v19  ;;  %v6953_v19 = vld [vmem:[%s8671_s2 + $0x190] sm:$0xff]  }
 0x23a   : > { %6092 = vmatpush3.bf16.msra.mxu1 %v6945_v10  ;;  %6429 = vmatprep.mubr.bf16.mxu1 %v7560_v8 }
 0x23b   : > { %6093 = vmatprep.subr.bf16.mxu1 %v6947_v18  ;;  %v6967_v18 = vld [vmem:[%s8671_s2 + $0x1f0] sm:$0xff]  }
 0x23c   : > { %v5971_v14 = vpop.f32.mrb[124].mxu0 }
 0x23d   : > { %v5972_v33 = vpop.f32.mrb[125].mxu0 }
 0x23e   : > { %v5973_v31 = vadd.f32 %v5972_v33, %v5971_v14  ;;  %v5974_v49 = vpop.f32.mrb[126].mxu0  ;;  %6094 = vmatpush3.bf16.msra.mxu1 %v6949_v17 }
 0x23f   : > { %v5975_v8 = vpop.f32.mrb[127].mxu0  ;;  %6095 = vmatprep.subr.bf16.mxu1 %v6951_v54 }
 0x240   : > { %v5859_v2 = vpop.f32.mrb[0].mxu1  ;;  %v8122_v4 = vadd.f32 %v5973_v31, %v5837_v25  ;;  %v5976_v7 = vadd.f32 %v5975_v8, %v5974_v49  ;;  %v6959_v25 = vld [vmem:[%s8671_s2 + $0x1e0] sm:$0xff]  }
 0x241   : > { %v5860_v26 = vpop.f32.mrb[1].mxu1  ;;  %6430 = vmatmul.mubr.bf16.gmra.mrb[52].mxu1 %v7606_v13 }
 0x242   : > { %v8124_v6 = vadd.f32 %v5860_v26, %v5859_v2  ;;  %v5862_v20 = vpop.f32.mrb[2].mxu1  ;;  %v8127_v34 = vadd.f32 %v5976_v7, %v5840_v39  ;;  %6433 = vmatprep.mubr.bf16.mxu1 %v7636_v15  ;;  %6096 = vmatpush3.bf16.msra.mxu1 %v6953_v19  ;;  %v6961_v15 = vld [vmem:[%s8671_s2 + $0x1a0] sm:$0xff]   ;;  %v6971_v2 = vld [vmem:[%s8671_s2 + $0x1f8] sm:$0xff]  }
 0x243   : > { %v5863_v5 = vpop.f32.mrb[3].mxu1  ;;  %6097 = vmatprep.subr.bf16.mxu1 %v6955_v41 }
 0x244   : > { %v8133_v61 = vadd.f32 %v5863_v5, %v5862_v20  ;;  %v5977_v0 = vpop.f32.mrb[128].mxu0  ;;  %v6973_v20 = vld [vmem:[%s8671_s2 + $0x1b8] sm:$0xff]  }
 0x245   : > { %v5978_v52 = vpop.f32.mrb[129].mxu0 }
 0x246   : > { %v5979_v13 = vadd.f32 %v5978_v52, %v5977_v0  ;;  %v5980_v39 = vpop.f32.mrb[130].mxu0  ;;  %6098 = vmatpush3.bf16.msra.mxu1 %v6957_v42 }
 0x247   : > { %v5981_v56 = vpop.f32.mrb[131].mxu0  ;;  %6099 = vmatprep.subr.bf16.mxu1 %v6959_v25 }
 0x248   : > { %v8145_v57 = vadd.f32 %v5979_v13, %v8084_v9  ;;  %v5982_v62 = vadd.f32 %v5981_v56, %v5980_v39 }
 0x249   : > { %6434 = vmatmul.mubr.bf16.gmra.mrb[56].mxu1 %v7681_v36 }
 0x24a   : > { %v8149_v10 = vadd.f32 %v5982_v62, %v8086_v40  ;;  %6437 = vmatprep.mubr.bf16.mxu1 %v7723_v50  ;;  %6100 = vmatpush3.bf16.msra.mxu1 %v6961_v15  ;;  %v6969_v50 = vld [vmem:[%s8671_s2 + $0x1b0] sm:$0xff]  }
 0x24b   : > { %6101 = vmatprep.subr.bf16.mxu1 %v6963_v38 }
 0x24c   : > { %v5865_v9 = vpop.f32.mrb[4].mxu1  ;;  %v5983_v17 = vpop.f32.mrb[132].mxu0 }
 0x24d   : > { %v5866_v54 = vpop.f32.mrb[5].mxu1  ;;  %v5984_v14 = vpop.f32.mrb[133].mxu0 }
 0x24e   : > { %v5867_v36 = vadd.f32 %v5866_v54, %v5865_v9  ;;  %v5985_v33 = vadd.f32 %v5984_v14, %v5983_v17  ;;  %v5868_v40 = vpop.f32.mrb[6].mxu1  ;;  %v5986_v31 = vpop.f32.mrb[134].mxu0  ;;  %6102 = vmatpush3.bf16.msra.mxu1 %v6965_v63 }
 0x24f   : > { %v5869_v49 = vpop.f32.mrb[7].mxu1  ;;  %v5987_v19 = vpop.f32.mrb[135].mxu0  ;;  %6103 = vmatprep.subr.bf16.mxu1 %v6967_v18 }
 0x250   : > { %v8165_v8 = vadd.f32 %v5985_v33, %v8090_v12  ;;  %v5870_v41 = vadd.f32 %v5869_v49, %v5868_v40  ;;  %v5988_v26 = vadd.f32 %v5987_v19, %v5986_v31  ;;  %v8178_v12 = vld [vmem:[%s8671_s2 + $0x200] sm:$0xff]   ;;  %v3330_v33 = vld [vmem:[#allocation2 + $0x18] sm:$0xf] }
 0x251   : > { %6438 = vmatmul.mubr.bf16.gmra.mrb[60].mxu1 %v7778_v28 }
 0x252   : > { %v8169_v7 = vadd.f32 %v5988_v26, %v8094_v44  ;;  %6441 = vmatprep.mubr.bf16.mxu1 %v7817_v35  ;;  %6104 = vmatpush3.bf16.msra.mxu1 %v6969_v50 }
 0x253   : > { %6105 = vmatprep.subr.bf16.mxu1 %v6971_v2 }
 0x254   : > { %v5989_v5 = vpop.f32.mrb[136].mxu0 }
 0x255   : > { %v5990_v42 = vpop.f32.mrb[137].mxu0 }
 0x256   : > { %v5991_v25 = vadd.f32 %v5990_v42, %v5989_v5  ;;  %v5992_v28 = vpop.f32.mrb[138].mxu0  ;;  %6106 = vmatpush3.bf16.msra.mxu1 %v6973_v20 }
 0x257   : > { %v5993_v0 = vpop.f32.mrb[139].mxu0  ;;  %6457 = vmatprep.subr.bf16.mxu1 %v8178_v12 }
 0x258   : > { %v5871_v44 = vpop.f32.mrb[8].mxu1  ;;  %v8182_v35 = vadd.f32 %v5991_v25, %v8098_v55  ;;  %v5994_v13 = vadd.f32 %v5993_v0, %v5992_v28  ;;  %v7043_v28 = vld [vmem:[#allocation2 + $0x20] ss:$0 sps:$4 sm:$0x11]   ;;  %v7044_v0 = vld [vmem:[#allocation2 + $0x28] sm:$0xf] }
 0x259   : > { %v5872_v52 = vpop.f32.mrb[9].mxu1  ;;  %6442 = vmatmul.mubr.bf16.gmra.mrb[64].mxu1 %v7856_v11 }
 0x25a   : > { %v5873_v39 = vadd.f32 %v5872_v52, %v5871_v44  ;;  %v5874_v15 = vpop.f32.mrb[10].mxu1  ;;  %v8186_v56 = vadd.f32 %v5994_v13, %v8106_v32  ;;  %6445 = vmatprep.mubr.bf16.mxu1 %v7877_v27  ;;  %v7042_v32 = vld [vmem:[#allocation2 + $0x1c] sm:$0xf]  ;;  %v3546_v44 = vshll.u32 %v7043_v28, 16 }
 0x25b   : > { %v5875_v38 = vpop.f32.mrb[11].mxu1  ;;  %v8197_v27 = vcombine.low %v3330_v33, %v7042_v32 }
 0x25c   : > { %v5876_v62 = vadd.f32 %v5875_v38, %v5874_v15  ;;  %v5995_v63 = vpop.f32.mrb[140].mxu0 }
 0x25d   : > { %v5996_v18 = vpop.f32.mrb[141].mxu0 }
 0x25e   : > { %v5997_v9 = vadd.f32 %v5996_v18, %v5995_v63  ;;  %v5998_v17 = vpop.f32.mrb[142].mxu0  ;;  %v3548_v18 = vrot.slane %v3546_v44, 1 }
 0x25f   : > { %v5999_v54 = vpop.f32.mrb[143].mxu0 }
 0x260   : > { %v8190_v55 = vadd.f32 %v5997_v9, %v8124_v6  ;;  %v6000_v14 = vadd.f32 %v5999_v54, %v5998_v17 }
 0x261   : > { %6446 = vmatmul.mubr.bf16.gmra.mrb[68].mxu1 %v7908_v24  ;;  %v3541_v24 = vshll.u32 %v8197_v27, 16 }
 0x262   : > { %v8194_v11 = vadd.f32 %v6000_v14, %v8133_v61  ;;  %6449 = vmatprep.mubr.bf16.mxu1 %v7925_v43  ;;  %v3332_v43 = vld [vmem:[#allocation2 + $0x24] sm:$0xf] }
 0x263   : > { %v8203_v52 = vcombine.low %v3332_v43, %v7044_v0  ;;  %v3543_v15 = vrot.slane %v3541_v24, 1  ;;  %v7045_v24 = vld [vmem:[#allocation2 + $0x2c] ss:$0 sps:$4 sm:$0x11]  }
 0x264   : > { %v5877_v40 = vpop.f32.mrb[12].mxu1  ;;  %v6001_v31 = vpop.f32.mrb[144].mxu0 }
 0x265   : > { %v5878_v50 = vpop.f32.mrb[13].mxu1  ;;  %v6002_v49 = vpop.f32.mrb[145].mxu0  ;;  %v3553_v9 = vshll.u32 %v8203_v52, 16 }
 0x266   : > { %v5879_v19 = vadd.f32 %v5878_v50, %v5877_v40  ;;  %v6003_v2 = vadd.f32 %v6002_v49, %v6001_v31  ;;  %v5880_v6 = vpop.f32.mrb[14].mxu1  ;;  %v6004_v26 = vpop.f32.mrb[146].mxu0  ;;  %v3334_v31 = vld [vmem:[#allocation2 + $0x30] sm:$0xf] }
 0x267   : > { %v5881_v20 = vpop.f32.mrb[15].mxu1  ;;  %v6005_v5 = vpop.f32.mrb[147].mxu0 }
 0x268   : > { %v8200_v42 = vadd.f32 %v6003_v2, %v5867_v36  ;;  %v5882_v61 = vadd.f32 %v5881_v20, %v5880_v6  ;;  %v6006_v25 = vadd.f32 %v6005_v5, %v6004_v26  ;;  %v3539_v36 = vshrl.u32 %v8197_v27, 16 }
 0x269   : > { %6450 = vmatmul.mubr.bf16.gmra.mrb[72].mxu1 %v7951_v3  ;;  %v3555_v2 = vrot.slane %v3553_v9, 1  ;;  %v3551_v5 = vshrl.u32 %v8203_v52, 16 }
 0x26a   : > { %v8205_v13 = vadd.f32 %v6006_v25, %v5870_v41  ;;  %6453 = vmatprep.mubr.bf16.mxu1 %v7967_v30  ;;  %v3544_v33 = vor.u32 %v3543_v15, %v3539_v36  ;;  %v7046_v25 = vld [vmem:[#allocation2 + $0x34] sm:$0xf] }
 0x26b   : > { %v8217_v43 = vcombine.low %v3334_v31, %v7046_v25  ;;  %v3556_v0 = vor.u32 %v3555_v2, %v3551_v5 }
 0x26c   : > { %v6007_v38 = vpop.f32.mrb[148].mxu0  ;;  %v3549_v49 = vsel %vm1449_vm6, %v3544_v33, %v3548_v18  ;;  %v6981_v18 = vld [vmem:[%s8671_s2 + $0x208] sm:$0xff]  }
 0x26d   : > { %v6008_v63 = vpop.f32.mrb[149].mxu0  ;;  %v3565_v36 = vshll.u32 %v8217_v43, 16 }
 0x26e   : > { %v6009_v17 = vadd.f32 %v6008_v63, %v6007_v38  ;;  %v6010_v54 = vpop.f32.mrb[150].mxu0  ;;  %v8219_v38 = vld [vmem:[#allocation2 + $0x40] sm:$0xf] }
 0x26f   : > { %v6011_v14 = vpop.f32.mrb[151].mxu0  ;;  %v3567_v31 = vrot.slane %v3565_v36, 1 }
 0x270   : > { %v5883_v3 = vpop.f32.mrb[16].mxu1  ;;  %v8210_v32 = vadd.f32 %v6009_v17, %v5873_v39  ;;  %v6012_v41 = vadd.f32 %v6011_v14, %v6010_v54  ;;  %v3558_v39 = vshll.u32 %v7045_v24, 16  ;;  %v3336_v54 = vld [vmem:[#allocation2 + $0x3c] sm:$0xf] }
 0x271   : > { %v5884_v40 = vpop.f32.mrb[17].mxu1  ;;  %6454 = vmatmul.mubr.bf16.gmra.mrb[76].mxu1 %v7988_v59  ;;  %v7047_v14 = vld [vmem:[#allocation2 + $0x38] ss:$0 sps:$4 sm:$0x11]  }
 0x272   : > { %v5885_v50 = vadd.f32 %v5884_v40, %v5883_v3  ;;  %v5886_v30 = vpop.f32.mrb[18].mxu1  ;;  %v8214_v6 = vadd.f32 %v6012_v41, %v5876_v62  ;;  %4083 = vmatprep.mubr.bf16.mxu1 %v3549_v49  ;;  %v3560_v62 = vrot.slane %v3558_v39, 1  ;;  %v3570_v33 = vshll.u32 %v7047_v14, 16 }
 0x273   : > { %v5887_v26 = vpop.f32.mrb[19].mxu1  ;;  %v8230_v40 = vcombine.low %v3336_v54, %v8219_v38  ;;  %v8247_v54 = vld [vmem:[#allocation2 + $0x4c] sm:$0xf] }
 0x274   : > { %v5888_v20 = vadd.f32 %v5887_v26, %v5886_v30  ;;  %v6013_v28 = vpop.f32.mrb[152].mxu0  ;;  %v3561_v3 = vsel %vm1449_vm6, %v3556_v0, %v3560_v62  ;;  %v3563_v26 = vshrl.u32 %v8217_v43, 16  ;;  %v3572_v5 = vrot.slane %v3570_v33, 1 }
 0x275   : > { %v6014_v44 = vpop.f32.mrb[153].mxu0  ;;  %v3577_v24 = vshll.u32 %v8230_v40, 16  ;;  %v3575_v33 = vshrl.u32 %v8230_v40, 16 }
 0x276   : > { %v6015_v15 = vadd.f32 %v6014_v44, %v6013_v28  ;;  %v6016_v59 = vpop.f32.mrb[154].mxu0  ;;  %v3568_v0 = vor.u32 %v3567_v31, %v3563_v26 }
 0x277   : > { %v6017_v63 = vpop.f32.mrb[155].mxu0 }
 0x278   : > { %v8225_v9 = vadd.f32 %v6015_v15, %v5879_v19  ;;  %v6018_v17 = vadd.f32 %v6017_v63, %v6016_v59  ;;  %v6986_v19 = vld [vmem:[%s8671_s2 + $0x210] sm:$0xff]   ;;  %v8240_v15 = vld [vmem:[#allocation2 + $0x44] ss:$0 sps:$4 sm:$0x11]   ;;  %v6991_v59 = vld [vmem:[%s8671_s2 + $0x218] sm:$0xff]  }
 0x279   : > { %4084 = vmatmul.mubr.bf16.vlgmr.msra.gmra.mrb[80].mxu1 %v8197_v27  ;;  %v3582_v31 = vshll.u32 %v8240_v15, 16 }
 0x27a   : > { %8690 = vst [vmem:[#allocation12_spill] sm:$0xff] %v8225_v9  ;;  %v8232_v41 = vadd.f32 %v6018_v17, %v5882_v61  ;;  %6458 = vmatpush3.bf16.msra.mxu1 %v8178_v12  ;;  %4091 = vmatprep.mubr.bf16.mxu1 %v3561_v3  ;;  %v3338_v17 = vld [vmem:[#allocation2 + $0x48] sm:$0xf]  ;;  %v3579_v3 = vrot.slane %v3577_v24, 1  ;;  %v3348_v9 = vld [vmem:[#allocation2 + $0x84] sm:$0xf] }
 0x27b   : > { %6459 = vmatprep.subr.bf16.mxu1 %v6981_v18 }
 0x27c   : > { %8691 = vst [vmem:[#allocation13_spill] sm:$0xff] %v8232_v41  ;;  %v5889_v30 = vpop.f32.mrb[20].mxu1  ;;  %v6019_v27 = vpop.f32.mrb[156].mxu0 }
 0x27d   : > { %v5890_v49 = vpop.f32.mrb[21].mxu1  ;;  %v6020_v2 = vpop.f32.mrb[157].mxu0 }
 0x27e   : > { %v5891_v61 = vadd.f32 %v5890_v49, %v5889_v30  ;;  %v6021_v39 = vadd.f32 %v6020_v2, %v6019_v27  ;;  %v5892_v25 = vpop.f32.mrb[22].mxu1  ;;  %v6022_v12 = vpop.f32.mrb[158].mxu0  ;;  %6460 = vmatpush3.bf16.msra.mxu1 %v6981_v18  ;;  %v3573_v18 = vsel %vm1449_vm6, %v3568_v0, %v3572_v5  ;;  %v6996_v30 = vld [vmem:[%s8671_s2 + $0x220] sm:$0xff]   ;;  %v3580_v49 = vor.u32 %v3579_v3, %v3575_v33  ;;  %v8261_v2 = vld [vmem:[#allocation2 + $0x50] ss:$0 sps:$4 sm:$0x11]  }
 0x27f   : > { %v5893_v28 = vpop.f32.mrb[23].mxu1  ;;  %v6023_v44 = vpop.f32.mrb[159].mxu0  ;;  %6461 = vmatprep.subr.bf16.mxu1 %v6986_v19  ;;  %v3594_v3 = vshll.u32 %v8261_v2, 16 }
 0x280   : > { %v8245_v63 = vadd.f32 %v6021_v39, %v5885_v50  ;;  %v5894_v62 = vadd.f32 %v5893_v28, %v5892_v25  ;;  %v6024_v36 = vadd.f32 %v6023_v44, %v6022_v12  ;;  %v8256_v50 = vcombine.low %v3338_v17, %v8247_v54  ;;  %v7001_v12 = vld [vmem:[%s8671_s2 + $0x228] sm:$0xff]  }
 0x281   : > { %4092 = vmatmul.mubr.bf16.gmra.mrb[84].mxu1 %v8203_v52  ;;  %v3584_v39 = vrot.slane %v3582_v31, 1 }
 0x282   : > { %8692 = vst [vmem:[#allocation14_spill] sm:$0xff] %v8245_v63  ;;  %v8251_v14 = vadd.f32 %v6024_v36, %v5888_v20  ;;  %4099 = vmatprep.mubr.bf16.mxu1 %v3573_v18  ;;  %6462 = vmatpush3.bf16.msra.mxu1 %v6986_v19  ;;  %v8263_v19 = vld [vmem:[#allocation2 + $0x58] sm:$0xf]  ;;  %v3589_v25 = vshll.u32 %v8256_v50, 16  ;;  %v3340_v36 = vld [vmem:[#allocation2 + $0x54] sm:$0xf] }
 0x283   : > { %6463 = vmatprep.subr.bf16.mxu1 %v6991_v59  ;;  %v8275_v33 = vcombine.low %v3340_v36, %v8263_v19  ;;  %v3344_v63 = vld [vmem:[#allocation2 + $0x6c] sm:$0xf] }
 0x284   : > { %8693 = vst [vmem:[#allocation15_spill] sm:$0xff] %v8251_v14  ;;  %v6025_v52 = vpop.f32.mrb[160].mxu0 }
 0x285   : > { %v6026_v27 = vpop.f32.mrb[161].mxu0 }
 0x286   : > { %v6027_v20 = vadd.f32 %v6026_v27, %v6025_v52  ;;  %v6028_v26 = vpop.f32.mrb[162].mxu0  ;;  %6464 = vmatpush3.bf16.msra.mxu1 %v6991_v59  ;;  %v3585_v59 = vsel %vm1449_vm6, %v3580_v49, %v3584_v39  ;;  %v3591_v27 = vrot.slane %v3589_v25, 1  ;;  %v3587_v49 = vshrl.u32 %v8256_v50, 16  ;;  %v7011_v25 = vld [vmem:[%s8671_s2 + $0x238] sm:$0xff]  }
 0x287   : > { %v6029_v24 = vpop.f32.mrb[163].mxu0  ;;  %6465 = vmatprep.subr.bf16.mxu1 %v6996_v30 }
 0x288   : > { %v5895_v5 = vpop.f32.mrb[24].mxu1  ;;  %v8269_v28 = vadd.f32 %v6027_v20, %v5891_v61  ;;  %v6030_v0 = vadd.f32 %v6029_v24, %v6028_v26  ;;  %v7006_v20 = vld [vmem:[%s8671_s2 + $0x230] sm:$0xff]   ;;  %v3601_v24 = vshll.u32 %v8275_v33, 16 }
 0x289   : > { %v5896_v44 = vpop.f32.mrb[25].mxu1  ;;  %4100 = vmatmul.mubr.bf16.gmra.mrb[88].mxu1 %v8217_v43 }
 0x28a   : > { %8694 = vst [vmem:[#allocation16_spill] sm:$0xff] %v8269_v28  ;;  %v5897_v17 = vadd.f32 %v5896_v44, %v5895_v5  ;;  %v5898_v18 = vpop.f32.mrb[26].mxu1  ;;  %v8277_v31 = vadd.f32 %v6030_v0, %v5894_v62  ;;  %4107 = vmatprep.mubr.bf16.mxu1 %v3585_v59  ;;  %6466 = vmatpush3.bf16.msra.mxu1 %v6996_v30  ;;  %v3596_v5 = vrot.slane %v3594_v3, 1  ;;  %v8284_v30 = vld [vmem:[#allocation2 + $0x5c] ss:$0 sps:$4 sm:$0x11]  }
 0x28b   : > { %v5899_v52 = vpop.f32.mrb[27].mxu1  ;;  %6467 = vmatprep.subr.bf16.mxu1 %v7001_v12  ;;  %v3592_v0 = vor.u32 %v3591_v27, %v3587_v49  ;;  %v3342_v59 = vld [vmem:[#allocation2 + $0x60] sm:$0xf]  ;;  %v3599_v27 = vshrl.u32 %v8275_v33, 16 }
 0x28c   : > { %8695 = vst [vmem:[#allocation17_spill] sm:$0xff] %v8277_v31  ;;  %v5900_v61 = vadd.f32 %v5899_v52, %v5898_v18  ;;  %v6031_v43 = vpop.f32.mrb[164].mxu0  ;;  %v8291_v52 = vld [vmem:[#allocation2 + $0x64] sm:$0xf] }
 0x28d   : > { %v6032_v26 = vpop.f32.mrb[165].mxu0  ;;  %v3597_v3 = vsel %vm1449_vm6, %v3592_v0, %v3596_v5 }
 0x28e   : > { %v6033_v39 = vadd.f32 %v6032_v26, %v6031_v43  ;;  %v6034_v62 = vpop.f32.mrb[166].mxu0  ;;  %6468 = vmatpush3.bf16.msra.mxu1 %v7001_v12  ;;  %v3603_v12 = vrot.slane %v3601_v24, 1  ;;  %v3606_v26 = vshll.u32 %v8284_v30, 16 }
 0x28f   : > { %v6035_v44 = vpop.f32.mrb[167].mxu0  ;;  %6469 = vmatprep.subr.bf16.mxu1 %v7006_v20 }
 0x290   : > { %v8289_v36 = vadd.f32 %v6033_v39, %v5897_v17  ;;  %v6036_v18 = vadd.f32 %v6035_v44, %v6034_v62  ;;  %v8300_v17 = vcombine.low %v3342_v59, %v8291_v52 }
 0x291   : > { %4108 = vmatmul.mubr.bf16.gmra.mrb[92].mxu1 %v8230_v40  ;;  %v3604_v40 = vor.u32 %v3603_v12, %v3599_v27 }
 0x292   : > { %8696 = vst [vmem:[#allocation18_spill] sm:$0xff] %v8289_v36  ;;  %v8295_v43 = vadd.f32 %v6036_v18, %v5900_v61  ;;  %4115 = vmatprep.mubr.bf16.mxu1 %v3597_v3  ;;  %6470 = vmatpush3.bf16.msra.mxu1 %v7006_v20  ;;  %v8302_v36 = vld [vmem:[#allocation2 + $0x68] ss:$0 sps:$4 sm:$0x11]   ;;  %v8304_v20 = vld [vmem:[#allocation2 + $0x70] sm:$0xf] }
 0x293   : > { %6471 = vmatprep.subr.bf16.mxu1 %v7011_v25  ;;  %v3613_v59 = vshll.u32 %v8300_v17, 16  ;;  %v3618_v27 = vshll.u32 %v8302_v36, 16 }
 0x294   : > { %8697 = vst [vmem:[#allocation19_spill] sm:$0xff] %v8295_v43  ;;  %v5901_v49 = vpop.f32.mrb[28].mxu1  ;;  %v6037_v39 = vpop.f32.mrb[168].mxu0  ;;  %v3608_v43 = vrot.slane %v3606_v26, 1 }
 0x295   : > { %v5902_v62 = vpop.f32.mrb[29].mxu1  ;;  %v6038_v44 = vpop.f32.mrb[169].mxu0  ;;  %v3615_v26 = vrot.slane %v3613_v59, 1 }
 0x296   : > { %v5903_v5 = vadd.f32 %v5902_v62, %v5901_v49  ;;  %v6039_v61 = vadd.f32 %v6038_v44, %v6037_v39  ;;  %v5904_v24 = vpop.f32.mrb[30].mxu1  ;;  %v6040_v0 = vpop.f32.mrb[170].mxu0  ;;  %6472 = vmatpush3.bf16.msra.mxu1 %v7011_v25  ;;  %v3609_v12 = vsel %vm1449_vm6, %v3604_v40, %v3608_v43  ;;  %v8313_v49 = vcombine.low %v3344_v63, %v8304_v20 }
 0x297   : > { %v5905_v18 = vpop.f32.mrb[31].mxu1  ;;  %v6041_v3 = vpop.f32.mrb[171].mxu0  ;;  %v3611_v44 = vshrl.u32 %v8300_v17, 16 }
 0x298   : > { %v8307_v31 = vadd.f32 %v6039_v61, %v5903_v5  ;;  %v5906_v28 = vadd.f32 %v5905_v18, %v5904_v24  ;;  %v6042_v14 = vadd.f32 %v6041_v3, %v6040_v0  ;;  %v3620_v5 = vrot.slane %v3618_v27, 1  ;;  %v8319_v18 = vld [vmem:[#allocation2 + $0x74] ss:$0 sps:$4 sm:$0x11]  }
 0x299   : > { %4116 = vmatmul.mubr.bf16.gmra.mrb[96].mxu1 %v8256_v50  ;;  %v3625_v61 = vshll.u32 %v8313_v49, 16  ;;  %v3616_v40 = vor.u32 %v3615_v26, %v3611_v44  ;;  %v3630_v26 = vshll.u32 %v8319_v18, 16 }
 0x29a   : > { %8698 = vst [vmem:[#allocation20_spill] sm:$0xff] %v8307_v31  ;;  %v8315_v25 = vadd.f32 %v6042_v14, %v5906_v28  ;;  %4123 = vmatprep.mubr.bf16.mxu1 %v3609_v12  ;;  %v3346_v14 = vld [vmem:[#allocation2 + $0x78] sm:$0xf] }
 0x29b   : > { %v3621_v59 = vsel %vm1449_vm6, %v3616_v40, %v3620_v5  ;;  %v5289_v44 = vcombine.low %v3346_v14, %v7991_v48  ;;  %v5290_v48 = vcombine.low %v3348_v9, %v7995_v51  ;;  %v3350_v51 = vld [vmem:[#allocation2 + $0x90] sm:$0xf] }
 0x29c   : > { %8699 = vst [vmem:[#allocation21_spill] sm:$0xff] %v8315_v25  ;;  %v6043_v39 = vpop.f32.mrb[172].mxu0  ;;  %v3627_v25 = vrot.slane %v3625_v61, 1  ;;  %v3632_v61 = vrot.slane %v3630_v26, 1 }
 0x29d   : > { %v6044_v62 = vpop.f32.mrb[173].mxu0  ;;  %v3637_v40 = vshll.u32 %v5289_v44, 16 }
 0x29e   : > { %v6045_v24 = vadd.f32 %v6044_v62, %v6043_v39  ;;  %v6046_v50 = vpop.f32.mrb[174].mxu0  ;;  %v3623_v39 = vshrl.u32 %v8313_v49, 16 }
 0x29f   : > { %v6047_v43 = vpop.f32.mrb[175].mxu0 }
 0x2a0   : > { %v5907_v0 = vpop.f32.mrb[32].mxu1  ;;  %v6048_v3 = vadd.f32 %v6047_v43, %v6046_v50 }
 0x2a1   : > { %v5908_v63 = vpop.f32.mrb[33].mxu1  ;;  %4124 = vmatmul.mubr.bf16.gmra.mrb[100].mxu1 %v8275_v33 }
 0x2a2   : > { %v5909_v28 = vadd.f32 %v5908_v63, %v5907_v0  ;;  %v5910_v12 = vpop.f32.mrb[34].mxu1  ;;  %4131 = vmatprep.mubr.bf16.mxu1 %v3621_v59  ;;  %v3628_v63 = vor.u32 %v3627_v25, %v3623_v39  ;;  %v3649_v39 = vshll.u32 %v5290_v48, 16 }
 0x2a3   : > { %v5911_v27 = vpop.f32.mrb[35].mxu1 }
 0x2a4   : > { %v8324_v62 = vadd.f32 %v6045_v24, %v5909_v28  ;;  %v5912_v31 = vadd.f32 %v5911_v27, %v5910_v12  ;;  %v6049_v50 = vpop.f32.mrb[176].mxu0  ;;  %v3633_v24 = vsel %vm1449_vm6, %v3628_v63, %v3632_v61  ;;  %v3642_v28 = vshll.u32 %v7997_v16, 16 }
 0x2a5   : > { %v6050_v0 = vpop.f32.mrb[177].mxu0  ;;  %v3635_v12 = vshrl.u32 %v5289_v44, 16 }
 0x2a6   : > { %v8328_v43 = vadd.f32 %v6048_v3, %v5912_v31  ;;  %v6051_v33 = vadd.f32 %v6050_v0, %v6049_v50  ;;  %v6052_v41 = vpop.f32.mrb[178].mxu0  ;;  %v3639_v31 = vrot.slane %v3637_v40, 1  ;;  %v3644_v27 = vrot.slane %v3642_v28, 1 }
 0x2a7   : > { %v6053_v5 = vpop.f32.mrb[179].mxu0 }
 0x2a8   : > { %8700 = vst [vmem:[#allocation22_spill] sm:$0xff] %v8328_v43  ;;  %v6054_v59 = vadd.f32 %v6053_v5, %v6052_v41  ;;  %v3640_v43 = vor.u32 %v3639_v31, %v3635_v12 }
 0x2a9   : > { %4132 = vmatmul.mubr.bf16.gmra.mrb[104].mxu1 %v8300_v17 }
 0x2aa   : > { %4139 = vmatprep.mubr.bf16.mxu1 %v3633_v24  ;;  %v3645_v40 = vsel %vm1449_vm6, %v3640_v43, %v3644_v27  ;;  %v3651_v24 = vrot.slane %v3649_v39, 1 }
 0x2ac   : > { %v5913_v3 = vpop.f32.mrb[36].mxu1 }
 0x2ad   : > { %v6055_v14 = vpop.f32.mrb[180].mxu0  ;;  %v5914_v25 = vpop.f32.mrb[37].mxu1 }
 0x2ae   : > { %v5915_v26 = vadd.f32 %v5914_v25, %v5913_v3  ;;  %v6056_v50 = vpop.f32.mrb[181].mxu0  ;;  %v5916_v41 = vpop.f32.mrb[38].mxu1  ;;  %v3647_v3 = vshrl.u32 %v5290_v48, 16  ;;  %v5291_v25 = vcombine.low %v3350_v51, %v7999_v45 }
 0x2af   : > { %v6057_v0 = vadd.f32 %v6056_v50, %v6055_v14  ;;  %v6058_v5 = vpop.f32.mrb[182].mxu0  ;;  %v5917_v17 = vpop.f32.mrb[39].mxu1  ;;  %v3654_v14 = vshll.u32 %v8002_v60, 16 }
 0x2b0   : > { %v8334_v63 = vadd.f32 %v6051_v33, %v5915_v26  ;;  %v5918_v16 = vadd.f32 %v5917_v17, %v5916_v41  ;;  %v6059_v61 = vpop.f32.mrb[183].mxu0  ;;  %v3652_v31 = vor.u32 %v3651_v24, %v3647_v3  ;;  %v3661_v26 = vshll.u32 %v5291_v25, 16 }
 0x2b1   : > { %v6060_v9 = vadd.f32 %v6059_v61, %v6058_v5  ;;  %4140 = vmatmul.mubr.bf16.gmra.mrb[108].mxu1 %v8313_v49  ;;  %v3656_v12 = vrot.slane %v3654_v14, 1  ;;  %v3352_v5 = vld [vmem:[#allocation2 + $0x9c] sm:$0xf] }
 0x2b2   : > { %v8338_v28 = vadd.f32 %v6054_v59, %v5918_v16  ;;  %4147 = vmatprep.mubr.bf16.mxu1 %v3645_v40  ;;  %v3666_v59 = vshll.u32 %v8008_v29, 16  ;;  %v5292_v27 = vcombine.low %v3352_v5, %v8004_v23  ;;  %v3663_v24 = vrot.slane %v3661_v26, 1  ;;  %v7048_v5 = vld [vmem:[#allocation2 + $0xac] sm:$0xf] }
 0x2b3   : > { %v3657_v43 = vsel %vm1449_vm6, %v3652_v31, %v3656_v12  ;;  %v3354_v12 = vld [vmem:[#allocation2 + $0xa8] sm:$0xf] }
 0x2b8   : > { %v5919_v33 = vpop.f32.mrb[40].mxu1 }
 0x2b9   : > { %v6061_v50 = vpop.f32.mrb[184].mxu0  ;;  %v5920_v41 = vpop.f32.mrb[41].mxu1  ;;  %4148 = vmatmul.mubr.bf16.gmra.mrb[112].mxu1 %v5289_v44  ;;  %v3668_v44 = vrot.slane %v3666_v59, 1 }
 0x2ba   : > { %v5921_v17 = vadd.f32 %v5920_v41, %v5919_v33  ;;  %v6062_v49 = vpop.f32.mrb[185].mxu0  ;;  %v5922_v61 = vpop.f32.mrb[42].mxu1  ;;  %4155 = vmatprep.mubr.bf16.mxu1 %v3657_v43  ;;  %v3659_v33 = vshrl.u32 %v5291_v25, 16  ;;  %v3673_v41 = vshll.u32 %v5292_v27, 16 }
 0x2bb   : > { %v6063_v60 = vadd.f32 %v6062_v49, %v6061_v50  ;;  %v6064_v39 = vpop.f32.mrb[186].mxu0  ;;  %v5923_v45 = vpop.f32.mrb[43].mxu1  ;;  %v3671_v50 = vshrl.u32 %v5292_v27, 16 }
 0x2bc   : > { %v8345_v16 = vadd.f32 %v6057_v0, %v5921_v17  ;;  %v5924_v51 = vadd.f32 %v5923_v45, %v5922_v61  ;;  %v6065_v40 = vpop.f32.mrb[187].mxu0  ;;  %v3664_v31 = vor.u32 %v3663_v24, %v3659_v33  ;;  %v3675_v29 = vrot.slane %v3673_v41, 1  ;;  %v7049_v33 = vld [vmem:[#allocation2 + $0xb0] ss:$0 sps:$4 sm:$0x11]  }
 0x2bd   : > { %v6066_v3 = vadd.f32 %v6065_v40, %v6064_v39  ;;  %v3678_v0 = vshll.u32 %v8015_v46, 16  ;;  %v5293_v17 = vcombine.low %v3354_v12, %v7048_v5  ;;  %v3356_v40 = vld [vmem:[#allocation2 + $0xb4] sm:$0xf]  ;;  %v7050_v46 = vld [vmem:[#allocation2 + $0xb8] sm:$0xf] }
 0x2be   : > { %v8347_v14 = vadd.f32 %v6060_v9, %v5924_v51  ;;  %v3669_v23 = vsel %vm1449_vm6, %v3664_v31, %v3668_v44  ;;  %v3676_v61 = vor.u32 %v3675_v29, %v3671_v50  ;;  %v3690_v44 = vshll.u32 %v7049_v33, 16  ;;  %v3358_v5 = vld [vmem:[#allocation2 + $0xc0] sm:$0xf]  ;;  %v7053_v33 = vld [vmem:[#allocation2 + $0xc8] ss:$0 sps:$4 sm:$0x11]  }
 0x2bf   : > { %v3680_v59 = vrot.slane %v3678_v0, 1  ;;  %v3685_v45 = vshll.u32 %v5293_v17, 16  ;;  %v5294_v41 = vcombine.low %v3356_v40, %v7050_v46 }
 0x2c0   : > { %v3692_v29 = vrot.slane %v3690_v44, 1  ;;  %v3714_v44 = vshll.u32 %v7053_v33, 16 }
 0x2c1   : > { %4156 = vmatmul.mubr.bf16.gmra.mrb[116].mxu1 %v5290_v48  ;;  %v3681_v24 = vsel %vm1449_vm6, %v3676_v61, %v3680_v59  ;;  %v3687_v12 = vrot.slane %v3685_v45, 1  ;;  %v3697_v50 = vshll.u32 %v5294_v41, 16 }
 0x2c2   : > { %4163 = vmatprep.mubr.bf16.mxu1 %v3669_v23  ;;  %v3683_v23 = vshrl.u32 %v5293_v17, 16 }
 0x2c4   : > { %v5925_v49 = vpop.f32.mrb[44].mxu1  ;;  %v3688_v0 = vor.u32 %v3687_v12, %v3683_v23  ;;  %v8361_v12 = vld [vmem:[#allocation2 + $0xd4] ss:$0 sps:$4 sm:$0x11]  }
 0x2c5   : > { %v5926_v26 = vpop.f32.mrb[45].mxu1 }
 0x2c6   : > { %v5927_v9 = vadd.f32 %v5926_v26, %v5925_v49  ;;  %v5928_v43 = vpop.f32.mrb[46].mxu1  ;;  %v3699_v49 = vrot.slane %v3697_v50, 1  ;;  %v7051_v26 = vld [vmem:[#allocation2 + $0xbc] ss:$0 sps:$4 sm:$0x11]   ;;  %v3716_v50 = vrot.slane %v3714_v44, 1 }
 0x2c7   : > { %v5929_v39 = vpop.f32.mrb[47].mxu1  ;;  %v3702_v61 = vshll.u32 %v7051_v26, 16  ;;  %v3804_v44 = vrot.slane %v8240_v15, 1  ;;  %v3813_v15 = vrot.slane %v8302_v36, 1  ;;  %v7034_v36 = vld [vmem:[#allocation3 + $0x20] sm:$0xff]  }
 0x2c8   : > { %v8351_v51 = vadd.f32 %v6063_v60, %v5927_v9  ;;  %v5930_v48 = vadd.f32 %v5929_v39, %v5928_v43  ;;  %v3693_v60 = vsel %vm1449_vm6, %v3688_v0, %v3692_v29  ;;  %v7052_v9 = vld [vmem:[#allocation2 + $0xc4] sm:$0xf]  ;;  %v3360_v39 = vld [vmem:[#allocation2 + $0xcc] sm:$0xf] }
 0x2c9   : > { %4164 = vmatmul.mubr.bf16.gmra.mrb[120].mxu1 %v5291_v25  ;;  %v3695_v25 = vshrl.u32 %v5294_v41, 16  ;;  %v5295_v43 = vcombine.low %v3358_v5, %v7052_v9  ;;  %v3704_v45 = vrot.slane %v3702_v61, 1  ;;  %v7031_v9 = vld [vmem:[#allocation3 + $0x8] sm:$0xff]  }
 0x2ca   : > { %v8354_v31 = vadd.f32 %v6066_v3, %v5930_v48  ;;  %4171 = vmatprep.mubr.bf16.mxu1 %v3681_v24  ;;  %v8357_v3 = vld [vmem:[#allocation2 + $0xd0] sm:$0xf]  ;;  %v7030_v24 = vld [vmem:[#allocation3] sm:$0xff]  }
 0x2cb   : > { %v3700_v59 = vor.u32 %v3699_v49, %v3695_v25  ;;  %v3709_v48 = vshll.u32 %v5295_v43, 16  ;;  %v5296_v40 = vcombine.low %v3360_v39, %v8357_v3  ;;  %6505 = vmatprep.subr.bf16.mxu0 %v7030_v24  ;;  %v3707_v29 = vshrl.u32 %v5295_v43, 16  ;;  %v8701_v39 = vld [vmem:[#allocation9_spill] sm:$0xff] }
 0x2cc   : > { %6506 = vmatpush3.bf16.msra.mxu0 %v7030_v24  ;;  %v3726_v49 = vshll.u32 %v8361_v12, 16  ;;  %v8702_v24 = vld [vmem:[#allocation10_spill] sm:$0xff] }
 0x2cd   : > { %v3711_v46 = vrot.slane %v3709_v48, 1  ;;  %v3721_v23 = vshll.u32 %v5296_v40, 16  ;;  %v3719_v5 = vshrl.u32 %v5296_v40, 16  ;;  %6507 = vmatprep.subr.bf16.mxu0 %v7031_v9  ;;  %v3382_v48 = vld [vmem:[#allocation2 + $0x48] sm:$0xe] }
 0x2ce   : > { %v3728_v26 = vrot.slane %v3726_v49, 1  ;;  %v5317_v33 = vcombine.low %v3382_v48, %v8247_v54 }
 0x2cf   : > { %v3712_v0 = vor.u32 %v3711_v46, %v3707_v29 }
 0x2d0   : > { %6508 = vmatpush3.bf16.msra.mxu0 %v7031_v9  ;;  %v3806_v46 = vrot.slane %v5317_v33, 1 }
 0x2d1   : > { %4172 = vmatmul.mubr.bf16.gmra.mrb[124].mxu1 %v5292_v27  ;;  %v3705_v27 = vsel %vm1449_vm6, %v3700_v59, %v3704_v45  ;;  %v3381_v59 = vld [vmem:[#allocation2 + $0x3c] sm:$0xe] }
 0x2d2   : > { %4179 = vmatprep.mubr.bf16.mxu1 %v3693_v60  ;;  %v3723_v60 = vrot.slane %v3721_v23, 1  ;;  %v5316_v45 = vcombine.low %v3381_v59, %v8219_v38  ;;  %v3383_v23 = vld [vmem:[#allocation2 + $0x54] sm:$0xe] }
 0x2d3   : > { %v5318_v38 = vcombine.low %v3383_v23, %v8263_v19 }
 0x2d4   : > { %v3724_v25 = vor.u32 %v3723_v60, %v3719_v5  ;;  %v3810_v60 = vrot.slane %v8284_v30, 1 }
 0x2d5   : > { %v3809_v54 = vrot.slane %v5318_v38, 1 }
 0x2d6   : > { %v3729_v61 = vsel %vm1449_vm6, %v3724_v25, %v3728_v26  ;;  %v7033_v26 = vld [vmem:[#allocation3 + $0x18] sm:$0xff]  }
 0x2d9   : > { %4180 = vmatmul.mubr.bf16.gmra.mrb[128].mxu1 %v5293_v17  ;;  %v3717_v17 = vsel %vm1449_vm6, %v3712_v0, %v3716_v50  ;;  %v3384_v50 = vld [vmem:[#allocation2 + $0x60] sm:$0xe] }
 0x2da   : > { %4187 = vmatprep.mubr.bf16.mxu1 %v3705_v27  ;;  %v8703_v27 = vld [vmem:[#allocation11_spill] sm:$0xff]  ;;  %v5319_v5 = vcombine.low %v3384_v50, %v8291_v52  ;;  %v3816_v52 = vrot.slane %v8319_v18, 1  ;;  %v7035_v18 = vld [vmem:[#allocation3 + $0x28] sm:$0xff]  }
 0x2dc   : > { %v3812_v49 = vrot.slane %v5319_v5, 1 }
 0x2de   : > { %v3814_v19 = vsel %vm1706_vm5, %v3812_v49, %v3813_v15 }
 0x2e1   : > { %4188 = vmatmul.mubr.bf16.gmra.mrb[132].mxu1 %v5294_v41  ;;  %v7032_v41 = vld [vmem:[#allocation3 + $0x10] sm:$0xff]  }
 0x2e2   : > { %4195 = vmatprep.mubr.bf16.mxu1 %v3717_v17  ;;  %6509 = vmatprep.subr.bf16.mxu0 %v7032_v41  ;;  %v3811_v17 = vsel %vm1706_vm5, %v3809_v54, %v3810_v60 }
 0x2e3   : > { %6510 = vmatpush3.bf16.msra.mxu0 %v7032_v41 }
 0x2e4   : > { %6511 = vmatprep.subr.bf16.mxu0 %v7033_v26 }
 0x2e7   : > { %6512 = vmatpush3.bf16.msra.mxu0 %v7033_v26 }
 0x2e8   : > { %6513 = vmatprep.subr.bf16.mxu0 %v7034_v36 }
 0x2e9   : > { %4196 = vmatmul.mubr.bf16.gmra.mrb[136].mxu1 %v5295_v43  ;;  %v3803_v43 = vrot.slane %v5316_v45, 1 }
 0x2ea   : > { %4203 = vmatprep.mubr.bf16.mxu1 %v3729_v61 }
 0x2eb   : > { %v3805_v29 = vsel %vm1706_vm5, %v3803_v43, %v3804_v44  ;;  %6514 = vmatpush3.bf16.msra.mxu0 %v7034_v36 }
 0x2ec   : > { %6515 = vmatprep.subr.bf16.mxu0 %v7035_v18 }
 0x2ef   : > { %6516 = vmatpush3.bf16.msra.mxu0 %v7035_v18 }
 0x2f1   : > { %4204 = vmatmul.mubr.bf16.gmra.mrb[140].mxu1 %v5296_v40  ;;  %v3807_v40 = vrot.slane %v8261_v2, 1  ;;  %v3385_v2 = vld [vmem:[#allocation2 + $0x6c] sm:$0xe] }
 0x2f2   : > { %6473 = vmatprep.mubr.bf16.mxu1 %v8701_v39  ;;  %v5320_v25 = vcombine.low %v3385_v2, %v8304_v20  ;;  %v3393_v20 = vld [vmem:[#allocation2 + $0xcc] sm:$0xe]  ;;  %v3840_v39 = vrot.slane %v8361_v12, 1 }
 0x2f3   : > { %v3808_v0 = vsel %vm1706_vm5, %v3806_v46, %v3807_v40  ;;  %v5328_v9 = vcombine.low %v3393_v20, %v8357_v3 }
 0x2f4   : > { %v3815_v61 = vrot.slane %v5320_v25, 1 }
 0x2f6   : > { %v3817_v30 = vsel %vm1706_vm5, %v3815_v61, %v3816_v52 }
 0x2f9   : > { %6474 = vmatmul.mubr.bf16.vlgmr.msra.gmra.mrb[48].mxu1 %v8702_v24 }
 0x2fa   : > { %6477 = vmatprep.mubr.bf16.mxu1 %v8703_v27 }
 0x301   : > { %6478 = vmatmul.mubr.bf16.gmra.mrb[52].mxu1 %v3805_v29 }
 0x302   : > { %6481 = vmatprep.mubr.bf16.mxu1 %v3808_v0 }
 0x309   : > { %6482 = vmatmul.mubr.bf16.gmra.mrb[56].mxu1 %v3811_v17 }
 0x30a   : > { %6485 = vmatprep.mubr.bf16.mxu1 %v3814_v19 }
 0x311   : > { %6486 = vmatmul.mubr.bf16.gmra.mrb[60].mxu1 %v3817_v30 }
 0x312   : > { %6489 = vmatprep.mubr.bf16.mxu1 %v8025_v22  ;;  %v3839_v22 = vrot.slane %v5328_v9, 1 }
 0x319   : > { %6490 = vmatmul.mubr.bf16.gmra.mrb[64].mxu1 %v8030_v58  ;;  %v3841_v58 = vsel %vm1706_vm5, %v3839_v22, %v3840_v39 }
 0x31a   : > { %6493 = vmatprep.mubr.bf16.mxu1 %v8033_v1  ;;  %v7036_v1 = vld [vmem:[#allocation3 + $0x30] sm:$0xff]  }
 0x31b   : > { %6517 = vmatprep.subr.bf16.mxu0 %v7036_v1 }
 0x31c   : > { %6518 = vmatpush3.bf16.msra.mxu0 %v7036_v1 }
 0x321   : > { %6494 = vmatmul.mubr.bf16.gmra.mrb[68].mxu1 %v8036_v37  ;;  %v7037_v37 = vld [vmem:[#allocation3 + $0x38] sm:$0xff]  }
 0x322   : > { %6497 = vmatprep.mubr.bf16.mxu1 %v8039_v47  ;;  %6519 = vmatprep.subr.bf16.mxu0 %v7037_v37 }
 0x323   : > { %6520 = vmatpush3.bf16.msra.mxu0 %v7037_v37 }
 0x329   : > { %6498 = vmatmul.mubr.bf16.gmra.mrb[72].mxu1 %v8042_v53 }
 0x32a   : > { %6501 = vmatprep.mubr.bf16.mxu1 %v8048_v21 }
 0x331   : > { %6502 = vmatmul.mubr.bf16.gmra.mrb[76].mxu1 %v3841_v58 }
 0x34c   : > { %v6107_v47 = vpop.f32.mrb[80].mxu1 }
 0x34d   : > { %v6108_v3 = vpop.f32.mrb[81].mxu1 }
 0x34e   : > { %v6109_v59 = vadd.f32 %v6108_v3, %v6107_v47  ;;  %v6110_v53 = vpop.f32.mrb[82].mxu1 }
 0x34f   : > { %v6111_v45 = vpop.f32.mrb[83].mxu1 }
 0x350   : > { %v6112_v21 = vadd.f32 %v6111_v45, %v6110_v53  ;;  %v8395_v48 = vadd.f32 %v8122_v4, %v6109_v59 }
 0x352   : > { %v8398_v24 = vadd.f32 %v8127_v34, %v6112_v21 }
 0x354   : > { %v6113_v12 = vpop.f32.mrb[84].mxu1 }
 0x355   : > { %v6114_v41 = vpop.f32.mrb[85].mxu1 }
 0x356   : > { %v6115_v27 = vadd.f32 %v6114_v41, %v6113_v12  ;;  %v6116_v33 = vpop.f32.mrb[86].mxu1 }
 0x357   : > { %v6117_v43 = vpop.f32.mrb[87].mxu1 }
 0x358   : > { %v6118_v44 = vadd.f32 %v6117_v43, %v6116_v33  ;;  %v8401_v40 = vadd.f32 %v8145_v57, %v6115_v27  ;;  %v8705_v33 = vld [vmem:[#allocation13_spill] sm:$0xff] }
 0x35a   : > { %v8404_v46 = vadd.f32 %v8149_v10, %v6118_v44 }
 0x35c   : > { %v6119_v23 = vpop.f32.mrb[88].mxu1 }
 0x35d   : > { %v6120_v29 = vpop.f32.mrb[89].mxu1 }
 0x35e   : > { %v6121_v38 = vadd.f32 %v6120_v29, %v6119_v23  ;;  %v6122_v4 = vpop.f32.mrb[90].mxu1 }
 0x35f   : > { %v6123_v50 = vpop.f32.mrb[91].mxu1 }
 0x360   : > { %v6124_v0 = vadd.f32 %v6123_v50, %v6122_v4  ;;  %v8407_v5 = vadd.f32 %v8165_v8, %v6121_v38 }
 0x362   : > { %v8410_v34 = vadd.f32 %v8169_v7, %v6124_v0  ;;  %v8707_v0 = vld [vmem:[#allocation15_spill] sm:$0xff] }
 0x364   : > { %v6125_v54 = vpop.f32.mrb[92].mxu1 }
 0x365   : > { %v6126_v60 = vpop.f32.mrb[93].mxu1 }
 0x366   : > { %v6127_v15 = vadd.f32 %v6126_v60, %v6125_v54  ;;  %v6128_v57 = vpop.f32.mrb[94].mxu1 }
 0x367   : > { %v6129_v49 = vpop.f32.mrb[95].mxu1 }
 0x368   : > { %v6130_v2 = vadd.f32 %v6129_v49, %v6128_v57  ;;  %v8413_v10 = vadd.f32 %v8182_v35, %v6127_v15 }
 0x36a   : > { %v8416_v17 = vadd.f32 %v8186_v56, %v6130_v2 }
 0x36c   : > { %v6131_v25 = vpop.f32.mrb[96].mxu1 }
 0x36d   : > { %v6132_v26 = vpop.f32.mrb[97].mxu1 }
 0x36e   : > { %v6133_v19 = vadd.f32 %v6132_v26, %v6131_v25  ;;  %v6134_v8 = vpop.f32.mrb[98].mxu1  ;;  %v8708_v26 = vld [vmem:[#allocation16_spill] sm:$0xff] }
 0x36f   : > { %v6135_v61 = vpop.f32.mrb[99].mxu1 }
 0x370   : > { %v6136_v52 = vadd.f32 %v6135_v61, %v6134_v8  ;;  %v8419_v7 = vadd.f32 %v8190_v55, %v6133_v19  ;;  %v8709_v8 = vld [vmem:[#allocation17_spill] sm:$0xff] }
 0x372   : > { %v8422_v30 = vadd.f32 %v8194_v11, %v6136_v52 }
 0x374   : > { %v6137_v36 = vpop.f32.mrb[100].mxu1 }
 0x375   : > { %v6138_v20 = vpop.f32.mrb[101].mxu1 }
 0x376   : > { %v6139_v9 = vadd.f32 %v6138_v20, %v6137_v36  ;;  %v6140_v35 = vpop.f32.mrb[102].mxu1 }
 0x377   : > { %v6141_v18 = vpop.f32.mrb[103].mxu1 }
 0x378   : > { %v6142_v22 = vadd.f32 %v6141_v18, %v6140_v35  ;;  %v8425_v56 = vadd.f32 %v8200_v42, %v6139_v9 }
 0x37a   : > { %v8428_v39 = vadd.f32 %v8205_v13, %v6142_v22  ;;  %v8704_v13 = vld [vmem:[#allocation12_spill] sm:$0xff]  ;;  %v8710_v22 = vld [vmem:[#allocation18_spill] sm:$0xff] }
 0x37c   : > { %v6143_v58 = vpop.f32.mrb[104].mxu1 }
 0x37d   : > { %v6144_v1 = vpop.f32.mrb[105].mxu1 }
 0x37e   : > { %v6145_v37 = vadd.f32 %v6144_v1, %v6143_v58  ;;  %v6146_v55 = vpop.f32.mrb[106].mxu1  ;;  %v8711_v1 = vld [vmem:[#allocation19_spill] sm:$0xff] }
 0x37f   : > { %v6147_v47 = vpop.f32.mrb[107].mxu1 }
 0x380   : > { %v6148_v3 = vadd.f32 %v6147_v47, %v6146_v55  ;;  %v8431_v11 = vadd.f32 %v8210_v32, %v6145_v37 }
 0x382   : > { %v8434_v59 = vadd.f32 %v8214_v6, %v6148_v3  ;;  %v8706_v6 = vld [vmem:[#allocation14_spill] sm:$0xff] }
 0x384   : > { %v6149_v53 = vpop.f32.mrb[108].mxu1 }
 0x385   : > { %v6150_v45 = vpop.f32.mrb[109].mxu1 }
 0x386   : > { %v6151_v21 = vadd.f32 %v6150_v45, %v6149_v53  ;;  %v6152_v42 = vpop.f32.mrb[110].mxu1 }
 0x387   : > { %v6153_v12 = vpop.f32.mrb[111].mxu1 }
 0x388   : > { %v6154_v41 = vadd.f32 %v6153_v12, %v6152_v42  ;;  %v8437_v27 = vadd.f32 %v8704_v13, %v6151_v21  ;;  %v8712_v42 = vld [vmem:[#allocation20_spill] sm:$0xff] }
 0x38a   : > { %v8440_v43 = vadd.f32 %v8705_v33, %v6154_v41  ;;  %v8713_v41 = vld [vmem:[#allocation21_spill] sm:$0xff] }
 0x38c   : > { %v6155_v44 = vpop.f32.mrb[112].mxu1 }
 0x38d   : > { %v6156_v23 = vpop.f32.mrb[113].mxu1 }
 0x38e   : > { %v6157_v29 = vadd.f32 %v6156_v23, %v6155_v44  ;;  %v6158_v32 = vpop.f32.mrb[114].mxu1 }
 0x38f   : > { %v6159_v38 = vpop.f32.mrb[115].mxu1 }
 0x390   : > { %v6160_v4 = vadd.f32 %v6159_v38, %v6158_v32  ;;  %v8443_v50 = vadd.f32 %v8706_v6, %v6157_v29  ;;  %v8714_v6 = vld [vmem:[#allocation22_spill] sm:$0xff] }
 0x392   : > { %v8446_v54 = vadd.f32 %v8707_v0, %v6160_v4 }
 0x394   : > { %v6161_v60 = vpop.f32.mrb[116].mxu1 }
 0x395   : > { %v6162_v15 = vpop.f32.mrb[117].mxu1 }
 0x396   : > { %v6163_v57 = vadd.f32 %v6162_v15, %v6161_v60  ;;  %v6164_v49 = vpop.f32.mrb[118].mxu1 }
 0x397   : > { %v6165_v2 = vpop.f32.mrb[119].mxu1 }
 0x398   : > { %v6166_v25 = vadd.f32 %v6165_v2, %v6164_v49  ;;  %v8449_v19 = vadd.f32 %v8708_v26, %v6163_v57 }
 0x39a   : > { %v8452_v61 = vadd.f32 %v8709_v8, %v6166_v25 }
 0x39c   : > { %v6167_v52 = vpop.f32.mrb[120].mxu1 }
 0x39d   : > { %v6168_v36 = vpop.f32.mrb[121].mxu1 }
 0x39e   : > { %v6169_v20 = vadd.f32 %v6168_v36, %v6167_v52  ;;  %v6170_v9 = vpop.f32.mrb[122].mxu1 }
 0x39f   : > { %v6171_v35 = vpop.f32.mrb[123].mxu1 }
 0x3a0   : > { %v6172_v18 = vadd.f32 %v6171_v35, %v6170_v9  ;;  %v8455_v58 = vadd.f32 %v8710_v22, %v6169_v20 }
 0x3a2   : > { %v8458_v37 = vadd.f32 %v8711_v1, %v6172_v18 }
 0x3a4   : > { %v6173_v55 = vpop.f32.mrb[124].mxu1 }
 0x3a5   : > { %v6174_v47 = vpop.f32.mrb[125].mxu1 }
 0x3a6   : > { %v6175_v3 = vadd.f32 %v6174_v47, %v6173_v55  ;;  %v6176_v53 = vpop.f32.mrb[126].mxu1 }
 0x3a7   : > { %v6177_v45 = vpop.f32.mrb[127].mxu1 }
 0x3a8   : > { %v6178_v21 = vadd.f32 %v6177_v45, %v6176_v53  ;;  %v8461_v12 = vadd.f32 %v8712_v42, %v6175_v3 }
 0x3aa   : > { %v8464_v13 = vadd.f32 %v8713_v41, %v6178_v21 }
 0x3ac   : > { %v6179_v33 = vpop.f32.mrb[128].mxu1 }
 0x3ad   : > { %v6180_v44 = vpop.f32.mrb[129].mxu1 }
 0x3ae   : > { %v6181_v23 = vadd.f32 %v6180_v44, %v6179_v33  ;;  %v6182_v29 = vpop.f32.mrb[130].mxu1 }
 0x3af   : > { %v6183_v32 = vpop.f32.mrb[131].mxu1 }
 0x3b0   : > { %v6184_v38 = vadd.f32 %v6183_v32, %v6182_v29  ;;  %v8467_v4 = vadd.f32 %v8324_v62, %v6181_v23 }
 0x3b2   : > { %v8470_v0 = vadd.f32 %v8714_v6, %v6184_v38 }
 0x3b4   : > { %v6185_v60 = vpop.f32.mrb[132].mxu1 }
 0x3b5   : > { %v6186_v15 = vpop.f32.mrb[133].mxu1 }
 0x3b6   : > { %v6187_v57 = vadd.f32 %v6186_v15, %v6185_v60  ;;  %v6188_v49 = vpop.f32.mrb[134].mxu1 }
 0x3b7   : > { %v6189_v2 = vpop.f32.mrb[135].mxu1 }
 0x3b8   : > { %v6190_v25 = vadd.f32 %v6189_v2, %v6188_v49  ;;  %v8473_v26 = vadd.f32 %v8334_v63, %v6187_v57 }
 0x3ba   : > { %v8476_v8 = vadd.f32 %v8338_v28, %v6190_v25 }
 0x3bc   : > { %v6191_v52 = vpop.f32.mrb[136].mxu1 }
 0x3bd   : > { %v6192_v36 = vpop.f32.mrb[137].mxu1 }
 0x3be   : > { %v6193_v20 = vadd.f32 %v6192_v36, %v6191_v52  ;;  %v6194_v62 = vpop.f32.mrb[138].mxu1 }
 0x3bf   : > { %v6195_v9 = vpop.f32.mrb[139].mxu1 }
 0x3c0   : > { %v6196_v35 = vadd.f32 %v6195_v9, %v6194_v62  ;;  %v8479_v18 = vadd.f32 %v8345_v16, %v6193_v20  ;;  %v8493_v16 = vld [vmem:[%s8674_s5] ss:$0 sm:$0xff] }
 0x3c2   : > { %v8482_v22 = vadd.f32 %v8347_v14, %v6196_v35 }
 0x3c4   : > { %v6197_v1 = vpop.f32.mrb[140].mxu1 }
 0x3c5   : > { %v6198_v55 = vpop.f32.mrb[141].mxu1 }
 0x3c6   : > { %v6199_v47 = vadd.f32 %v6198_v55, %v6197_v1  ;;  %v6200_v63 = vpop.f32.mrb[142].mxu1 }
 0x3c7   : > { %v6201_v3 = vpop.f32.mrb[143].mxu1 }
 0x3c8   : > { %v6202_v53 = vadd.f32 %v6201_v3, %v6200_v63  ;;  %v8485_v28 = vadd.f32 %v8351_v51, %v6199_v47 }
 0x3ca   : > { %v8488_v45 = vadd.f32 %v8354_v31, %v6202_v53 }
 0x3cc   : > { %v6475_v21 = vpop.f32.mrb[48].mxu1 }
 0x3cd   : > { %v6571_v14 = vadd.f32 %v8401_v40, %v6475_v21  ;;  %v4246_v42 = vpop.f32.mrb[49].mxu1 }
 0x3ce   : > { %v6574_v41 = vadd.f32 %v8395_v48, %v4246_v42  ;;  %v6476_v33 = vpop.f32.mrb[50].mxu1 }
 0x3cf   : > { %v4414_v44 = vadd.f32 %v6571_v14, %v8493_v16  ;;  %v6577_v51 = vadd.f32 %v8404_v46, %v6476_v33  ;;  %v4249_v23 = vpop.f32.mrb[51].mxu1 }
 0x3d0   : > { %v4412_v31 = vadd.f32 %v6574_v41, %v8493_v16  ;;  %v6580_v29 = vadd.f32 %v8398_v24, %v4249_v23 }
 0x3d1   : > { %v4415_v32 = vadd.f32 %v6577_v51, %v8493_v16  ;;  %v4446_v6 = vmax.f32 %v4414_v44, 0.0 }
 0x3d2   : > { %v4413_v38 = vadd.f32 %v6580_v29, %v8493_v16  ;;  %v4444_v40 = vmax.f32 %v4412_v31, 0.0 }
 0x3d3   : > { %v4447_v60 = vmax.f32 %v4415_v32, 0.0 }
 0x3d4   : > { %v4445_v15 = vmax.f32 %v4413_v38, 0.0  ;;  %v6479_v57 = vpop.f32.mrb[52].mxu1 }
 0x3d5   : > { %v4477_v48 = vpack.c.bf16 %v4447_v60, %v4446_v6  ;;  %v6583_v49 = vadd.f32 %v8413_v10, %v6479_v57  ;;  %v4262_v2 = vpop.f32.mrb[53].mxu1 }
 0x3d6   : > { %v6586_v46 = vadd.f32 %v8407_v5, %v4262_v2  ;;  %v6480_v25 = vpop.f32.mrb[54].mxu1  ;;  %v4476_v52 = vpack.c.bf16 %v4445_v15, %v4444_v40 }
 0x3d7   : > { %v4418_v36 = vadd.f32 %v6583_v49, %v8493_v16  ;;  %v6589_v24 = vadd.f32 %v8416_v17, %v6480_v25  ;;  %v4265_v20 = vpop.f32.mrb[55].mxu1 }
 0x3d8   : > { %v4416_v62 = vadd.f32 %v6586_v46, %v8493_v16  ;;  %v6592_v9 = vadd.f32 %v8410_v34, %v4265_v20  ;;  %6521 = vmatprep.mubr.bf16.mxu0 %v4476_v52 }
 0x3d9   : > { %v4419_v35 = vadd.f32 %v6589_v24, %v8493_v16  ;;  %6522 = vmatmul.mubr.bf16.vlgmr.msra.gmra.mrb[188].mxu0 %v4477_v48  ;;  %v4450_v1 = vmax.f32 %v4418_v36, 0.0 }
 0x3da   : > { %v4417_v10 = vadd.f32 %v6592_v9, %v8493_v16  ;;  %v4448_v5 = vmax.f32 %v4416_v62, 0.0 }
 0x3db   : > { %v4451_v55 = vmax.f32 %v4419_v35, 0.0 }
 0x3dc   : > { %v4449_v47 = vmax.f32 %v4417_v10, 0.0  ;;  %v6483_v63 = vpop.f32.mrb[56].mxu1 }
 0x3dd   : > { %v6595_v3 = vadd.f32 %v8425_v56, %v6483_v63  ;;  %v4278_v53 = vpop.f32.mrb[57].mxu1  ;;  %v4479_v17 = vpack.c.bf16 %v4451_v55, %v4450_v1 }
 0x3de   : > { %v6598_v21 = vadd.f32 %v8419_v7, %v4278_v53  ;;  %v6484_v14 = vpop.f32.mrb[58].mxu1  ;;  %v4478_v42 = vpack.c.bf16 %v4449_v47, %v4448_v5 }
 0x3df   : > { %v4422_v34 = vadd.f32 %v6595_v3, %v8493_v16  ;;  %v6601_v41 = vadd.f32 %v8428_v39, %v6484_v14  ;;  %v4281_v33 = vpop.f32.mrb[59].mxu1 }
 0x3e0   : > { %v4420_v44 = vadd.f32 %v6598_v21, %v8493_v16  ;;  %v6604_v51 = vadd.f32 %v8422_v30, %v4281_v33  ;;  %6525 = vmatprep.mubr.bf16.mxu0 %v4478_v42 }
 0x3e1   : > { %v4423_v23 = vadd.f32 %v6601_v41, %v8493_v16  ;;  %6526 = vmatmul.mubr.bf16.gmra.mrb[192].mxu0 %v4479_v17  ;;  %v4454_v31 = vmax.f32 %v4422_v34, 0.0 }
 0x3e2   : > { %v4421_v56 = vadd.f32 %v6604_v51, %v8493_v16  ;;  %v4452_v7 = vmax.f32 %v4420_v44, 0.0 }
 0x3e3   : > { %v4455_v29 = vmax.f32 %v4423_v23, 0.0 }
 0x3e4   : > { %v4453_v32 = vmax.f32 %v4421_v56, 0.0  ;;  %v6487_v38 = vpop.f32.mrb[60].mxu1 }
 0x3e5   : > { %v6607_v6 = vadd.f32 %v8437_v27, %v6487_v38  ;;  %v4294_v60 = vpop.f32.mrb[61].mxu1  ;;  %v4481_v39 = vpack.c.bf16 %v4455_v29, %v4454_v31 }
 0x3e6   : > { %v6610_v40 = vadd.f32 %v8431_v11, %v4294_v60  ;;  %v6488_v15 = vpop.f32.mrb[62].mxu1  ;;  %v4480_v57 = vpack.c.bf16 %v4453_v32, %v4452_v7 }
 0x3e7   : > { %v4426_v30 = vadd.f32 %v6607_v6, %v8493_v16  ;;  %v6613_v48 = vadd.f32 %v8440_v43, %v6488_v15  ;;  %v4297_v49 = vpop.f32.mrb[63].mxu1 }
 0x3e8   : > { %v4424_v2 = vadd.f32 %v6610_v40, %v8493_v16  ;;  %v6616_v46 = vadd.f32 %v8434_v59, %v4297_v49  ;;  %6529 = vmatprep.mubr.bf16.mxu0 %v4480_v57 }
 0x3e9   : > { %v4427_v25 = vadd.f32 %v6613_v48, %v8493_v16  ;;  %6530 = vmatmul.mubr.bf16.gmra.mrb[196].mxu0 %v4481_v39  ;;  %v4458_v52 = vmax.f32 %v4426_v30, 0.0 }
 0x3ea   : > { %v4425_v27 = vadd.f32 %v6616_v46, %v8493_v16  ;;  %v4456_v11 = vmax.f32 %v4424_v2, 0.0 }
 0x3eb   : > { %v4459_v36 = vmax.f32 %v4427_v25, 0.0 }
 0x3ec   : > { %v4457_v24 = vmax.f32 %v4425_v27, 0.0  ;;  %v6491_v20 = vpop.f32.mrb[64].mxu1 }
 0x3ed   : > { %v6619_v62 = vadd.f32 %v8449_v19, %v6491_v20  ;;  %v4310_v9 = vpop.f32.mrb[65].mxu1  ;;  %v4483_v43 = vpack.c.bf16 %v4459_v36, %v4458_v52 }
 0x3ee   : > { %v6622_v35 = vadd.f32 %v8443_v50, %v4310_v9  ;;  %v6492_v10 = vpop.f32.mrb[66].mxu1  ;;  %v4482_v1 = vpack.c.bf16 %v4457_v24, %v4456_v11 }
 0x3ef   : > { %v4430_v59 = vadd.f32 %v6619_v62, %v8493_v16  ;;  %v6625_v55 = vadd.f32 %v8452_v61, %v6492_v10  ;;  %v4313_v5 = vpop.f32.mrb[67].mxu1 }
 0x3f0   : > { %v4428_v47 = vadd.f32 %v6622_v35, %v8493_v16  ;;  %v6628_v63 = vadd.f32 %v8446_v54, %v4313_v5  ;;  %6533 = vmatprep.mubr.bf16.mxu0 %v4482_v1 }
 0x3f1   : > { %v4431_v3 = vadd.f32 %v6625_v55, %v8493_v16  ;;  %6534 = vmatmul.mubr.bf16.gmra.mrb[200].mxu0 %v4483_v43  ;;  %v4462_v53 = vmax.f32 %v4430_v59, 0.0 }
 0x3f2   : > { %v4429_v19 = vadd.f32 %v6628_v63, %v8493_v16  ;;  %v4460_v50 = vmax.f32 %v4428_v47, 0.0 }
 0x3f3   : > { %v4463_v17 = vmax.f32 %v4431_v3, 0.0 }
 0x3f4   : > { %v4461_v21 = vmax.f32 %v4429_v19, 0.0  ;;  %v6495_v14 = vpop.f32.mrb[68].mxu1 }
 0x3f5   : > { %v6631_v42 = vadd.f32 %v8461_v12, %v6495_v14  ;;  %v4326_v34 = vpop.f32.mrb[69].mxu1  ;;  %v4485_v61 = vpack.c.bf16 %v4463_v17, %v4462_v53 }
 0x3f6   : > { %v6634_v41 = vadd.f32 %v8455_v58, %v4326_v34  ;;  %v6496_v33 = vpop.f32.mrb[70].mxu1  ;;  %v4484_v44 = vpack.c.bf16 %v4461_v21, %v4460_v50 }
 0x3f7   : > { %v4434_v54 = vadd.f32 %v6631_v42, %v8493_v16  ;;  %v6637_v51 = vadd.f32 %v8464_v13, %v6496_v33  ;;  %v4329_v23 = vpop.f32.mrb[71].mxu1 }
 0x3f8   : > { %v4432_v56 = vadd.f32 %v6634_v41, %v8493_v16  ;;  %v6640_v31 = vadd.f32 %v8458_v37, %v4329_v23  ;;  %6537 = vmatprep.mubr.bf16.mxu0 %v4484_v44 }
 0x3f9   : > { %v4435_v29 = vadd.f32 %v6637_v51, %v8493_v16  ;;  %6538 = vmatmul.mubr.bf16.gmra.mrb[204].mxu0 %v4485_v61  ;;  %v4466_v7 = vmax.f32 %v4434_v54, 0.0 }
 0x3fa   : > { %v4433_v12 = vadd.f32 %v6640_v31, %v8493_v16  ;;  %v4464_v58 = vmax.f32 %v4432_v56, 0.0 }
 0x3fb   : > { %v4467_v32 = vmax.f32 %v4435_v29, 0.0 }
 0x3fc   : > { %v4465_v38 = vmax.f32 %v4433_v12, 0.0  ;;  %v6499_v6 = vpop.f32.mrb[72].mxu1 }
 0x3fd   : > { %v6643_v60 = vadd.f32 %v8473_v26, %v6499_v6  ;;  %v4342_v39 = vpop.f32.mrb[73].mxu1  ;;  %v4487_v13 = vpack.c.bf16 %v4467_v32, %v4466_v7 }
 0x3fe   : > { %v6646_v40 = vadd.f32 %v8467_v4, %v4342_v39  ;;  %v6500_v15 = vpop.f32.mrb[74].mxu1  ;;  %v4486_v57 = vpack.c.bf16 %v4465_v38, %v4464_v58 }
 0x3ff   : > { %v4438_v37 = vadd.f32 %v6643_v60, %v8493_v16  ;;  %v6649_v30 = vadd.f32 %v8476_v8, %v6500_v15  ;;  %v4345_v48 = vpop.f32.mrb[75].mxu1 }
 0x400   : > { %v4436_v49 = vadd.f32 %v6646_v40, %v8493_v16  ;;  %v6652_v2 = vadd.f32 %v8470_v0, %v4345_v48  ;;  %6541 = vmatprep.mubr.bf16.mxu0 %v4486_v57 }
 0x401   : > { %v4439_v46 = vadd.f32 %v6649_v30, %v8493_v16  ;;  %6542 = vmatmul.mubr.bf16.gmra.mrb[208].mxu0 %v4487_v13  ;;  %v4470_v25 = vmax.f32 %v4438_v37, 0.0 }
 0x402   : > { %v4437_v26 = vadd.f32 %v6652_v2, %v8493_v16  ;;  %v4468_v4 = vmax.f32 %v4436_v49, 0.0 }
 0x403   : > { %v4471_v27 = vmax.f32 %v4439_v46, 0.0 }
 0x404   : > { %v4469_v52 = vmax.f32 %v4437_v26, 0.0  ;;  %v6503_v36 = vpop.f32.mrb[76].mxu1 }
 0x405   : > { %v6655_v11 = vadd.f32 %v8485_v28, %v6503_v36  ;;  %v4358_v24 = vpop.f32.mrb[77].mxu1  ;;  %v4489_v8 = vpack.c.bf16 %v4471_v27, %v4470_v25 }
 0x406   : > { %v6658_v20 = vadd.f32 %v8479_v18, %v4358_v24  ;;  %v6504_v62 = vpop.f32.mrb[78].mxu1  ;;  %v4488_v9 = vpack.c.bf16 %v4469_v52, %v4468_v4 }
 0x407   : > { %v4442_v0 = vadd.f32 %v6655_v11, %v8493_v16  ;;  %v6661_v43 = vadd.f32 %v8488_v45, %v6504_v62  ;;  %v4361_v35 = vpop.f32.mrb[79].mxu1 }
 0x408   : > { %v4440_v10 = vadd.f32 %v6658_v20, %v8493_v16  ;;  %v6664_v1 = vadd.f32 %v8482_v22, %v4361_v35  ;;  %6545 = vmatprep.mubr.bf16.mxu0 %v4488_v9  ;;  %v8563_v22 = vld [vmem:[%s8675_s6] ss:$0 sm:$0xff] }
 0x409   : > { %v4443_v28 = vadd.f32 %v6661_v43, %v8493_v16  ;;  %6546 = vmatmul.mubr.bf16.gmra.mrb[212].mxu0 %v4489_v8  ;;  %v4474_v18 = vmax.f32 %v4442_v0, 0.0 }
 0x40a   : > { %v4441_v59 = vadd.f32 %v6664_v1, %v8493_v16  ;;  %v4472_v5 = vmax.f32 %v4440_v10, 0.0 }
 0x40b   : > { %v4475_v55 = vmax.f32 %v4443_v28, 0.0 }
 0x40c   : > { %v4473_v47 = vmax.f32 %v4441_v59, 0.0 }
 0x40d   : > { %v4491_v63 = vpack.c.bf16 %v4475_v55, %v4474_v18 }
 0x40e   : > { %v4490_v3 = vpack.c.bf16 %v4473_v47, %v4472_v5 }
 0x410   : > { %6549 = vmatprep.mubr.bf16.mxu0 %v4490_v3 }
 0x411   : > { %6550 = vmatmul.mubr.bf16.gmra.mrb[216].mxu0 %v4491_v63 }
 0x4ac   : > { %v6523_v45 = vpop.f32.mrb[188].mxu0 }
 0x4ad   : > { %v4597_v19 = vpop.f32.mrb[189].mxu0  ;;  %v4606_v16 = vadd.f32 %v6523_v45, %v8563_v22 }
 0x4ae   : > { %v6524_v53 = vpop.f32.mrb[190].mxu0  ;;  %v4598_v21 = vadd.f32 %v8563_v22, %v4597_v19 }
 0x4af   : > { %v4609_v17 = vadd.f32 %v6524_v53, %v8563_v22  ;;  %v4600_v50 = vpop.f32.mrb[191].mxu0 }
 0x4b0   : > { %v4601_v14 = vadd.f32 %v8563_v22, %v4600_v50 }
 0x4b1   : > { %v5678_v42 = vpack.c.bf16 %v4609_v17, %v4606_v16 }
 0x4b2   : > { %v5673_v34 = vpack.c.bf16 %v4601_v14, %v4598_v21 }
 0x4b3   : > { %5776 = vst [vmem:[%s8571_s9 + $0x8] sm:$0xff] %v5678_v42  }
 0x4b4   : > { %5674 = vst [vmem:[%s8571_s9] sm:$0xff] %v5673_v34   ;;  %v6527_v61 = vpop.f32.mrb[192].mxu0 }
 0x4b5   : > { %v4613_v41 = vpop.f32.mrb[193].mxu0  ;;  %v4622_v44 = vadd.f32 %v6527_v61, %v8563_v22 }
 0x4b6   : > { %v6528_v33 = vpop.f32.mrb[194].mxu0  ;;  %v4614_v23 = vadd.f32 %v8563_v22, %v4613_v41 }
 0x4b7   : > { %v4625_v54 = vadd.f32 %v6528_v33, %v8563_v22  ;;  %v4616_v51 = vpop.f32.mrb[195].mxu0 }
 0x4b8   : > { %v4617_v56 = vadd.f32 %v8563_v22, %v4616_v51 }
 0x4b9   : > { %v5688_v31 = vpack.c.bf16 %v4625_v54, %v4622_v44 }
 0x4ba   : > { %v5683_v29 = vpack.c.bf16 %v4617_v56, %v4614_v23 }
 0x4bb   : > { %5778 = vst [vmem:[%s8571_s9 + $0x18] sm:$0xff] %v5688_v31  }
 0x4bc   : > { %5777 = vst [vmem:[%s8571_s9 + $0x10] sm:$0xff] %v5683_v29   ;;  %v6531_v12 = vpop.f32.mrb[196].mxu0 }
 0x4bd   : > { %v4629_v7 = vpop.f32.mrb[197].mxu0  ;;  %v4638_v58 = vadd.f32 %v6531_v12, %v8563_v22 }
 0x4be   : > { %v6532_v32 = vpop.f32.mrb[198].mxu0  ;;  %v4630_v60 = vadd.f32 %v8563_v22, %v4629_v7 }
 0x4bf   : > { %v4641_v38 = vadd.f32 %v6532_v32, %v8563_v22  ;;  %v4632_v6 = vpop.f32.mrb[199].mxu0 }
 0x4c0   : > { %v4633_v39 = vadd.f32 %v8563_v22, %v4632_v6 }
 0x4c1   : > { %v5698_v13 = vpack.c.bf16 %v4641_v38, %v4638_v58 }
 0x4c2   : > { %v5693_v40 = vpack.c.bf16 %v4633_v39, %v4630_v60 }
 0x4c3   : > { %5780 = vst [vmem:[%s8571_s9 + $0x28] sm:$0xff] %v5698_v13  }
 0x4c4   : > { %5779 = vst [vmem:[%s8571_s9 + $0x20] sm:$0xff] %v5693_v40   ;;  %v6535_v15 = vpop.f32.mrb[200].mxu0 }
 0x4c5   : > { %v4645_v57 = vpop.f32.mrb[201].mxu0  ;;  %v4654_v30 = vadd.f32 %v6535_v15, %v8563_v22 }
 0x4c6   : > { %v6536_v37 = vpop.f32.mrb[202].mxu0  ;;  %v4646_v2 = vadd.f32 %v8563_v22, %v4645_v57 }
 0x4c7   : > { %v4657_v48 = vadd.f32 %v6536_v37, %v8563_v22  ;;  %v4648_v49 = vpop.f32.mrb[203].mxu0 }
 0x4c8   : > { %v4649_v46 = vadd.f32 %v8563_v22, %v4648_v49 }
 0x4c9   : > { %v5708_v26 = vpack.c.bf16 %v4657_v48, %v4654_v30 }
 0x4ca   : > { %v5703_v25 = vpack.c.bf16 %v4649_v46, %v4646_v2 }
 0x4cb   : > { %5782 = vst [vmem:[%s8571_s9 + $0x38] sm:$0xff] %v5708_v26  }
 0x4cc   : > { %5781 = vst [vmem:[%s8571_s9 + $0x30] sm:$0xff] %v5703_v25   ;;  %v6539_v27 = vpop.f32.mrb[204].mxu0 }
 0x4cd   : > { %v4661_v4 = vpop.f32.mrb[205].mxu0  ;;  %v4670_v36 = vadd.f32 %v6539_v27, %v8563_v22 }
 0x4ce   : > { %v6540_v52 = vpop.f32.mrb[206].mxu0  ;;  %v4662_v8 = vadd.f32 %v8563_v22, %v4661_v4 }
 0x4cf   : > { %v4673_v11 = vadd.f32 %v6540_v52, %v8563_v22  ;;  %v4664_v24 = vpop.f32.mrb[207].mxu0 }
 0x4d0   : > { %v4665_v20 = vadd.f32 %v8563_v22, %v4664_v24 }
 0x4d1   : > { %v5718_v62 = vpack.c.bf16 %v4673_v11, %v4670_v36 }
 0x4d2   : > { %v5713_v9 = vpack.c.bf16 %v4665_v20, %v4662_v8 }
 0x4d3   : > { %5784 = vst [vmem:[%s8571_s9 + $0x48] sm:$0xff] %v5718_v62  }
 0x4d4   : > { %5783 = vst [vmem:[%s8571_s9 + $0x40] sm:$0xff] %v5713_v9   ;;  %v6543_v0 = vpop.f32.mrb[208].mxu0 }
 0x4d5   : > { %v4677_v43 = vpop.f32.mrb[209].mxu0  ;;  %v4686_v10 = vadd.f32 %v6543_v0, %v8563_v22 }
 0x4d6   : > { %v6544_v35 = vpop.f32.mrb[210].mxu0  ;;  %v4678_v59 = vadd.f32 %v8563_v22, %v4677_v43 }
 0x4d7   : > { %v4689_v1 = vadd.f32 %v6544_v35, %v8563_v22  ;;  %v4680_v28 = vpop.f32.mrb[211].mxu0 }
 0x4d8   : > { %v4681_v18 = vadd.f32 %v8563_v22, %v4680_v28 }
 0x4d9   : > { %v5728_v55 = vpack.c.bf16 %v4689_v1, %v4686_v10 }
 0x4da   : > { %v5723_v5 = vpack.c.bf16 %v4681_v18, %v4678_v59 }
 0x4db   : > { %5786 = vst [vmem:[%s8571_s9 + $0x58] sm:$0xff] %v5728_v55  }
 0x4dc   : > { %5785 = vst [vmem:[%s8571_s9 + $0x50] sm:$0xff] %v5723_v5   ;;  %v6547_v47 = vpop.f32.mrb[212].mxu0 }
 0x4dd   : > { %v4693_v63 = vpop.f32.mrb[213].mxu0  ;;  %v4702_v45 = vadd.f32 %v6547_v47, %v8563_v22 }
 0x4de   : > { %v6548_v3 = vpop.f32.mrb[214].mxu0  ;;  %v4694_v16 = vadd.f32 %v8563_v22, %v4693_v63 }
 0x4df   : > { %v4705_v19 = vadd.f32 %v6548_v3, %v8563_v22  ;;  %v4696_v53 = vpop.f32.mrb[215].mxu0 }
 0x4e0   : > { %v4697_v17 = vadd.f32 %v8563_v22, %v4696_v53 }
 0x4e1   : > { %v5738_v50 = vpack.c.bf16 %v4705_v19, %v4702_v45 }
 0x4e2   : > { %v5733_v21 = vpack.c.bf16 %v4697_v17, %v4694_v16 }
 0x4e3   : > { %5788 = vst [vmem:[%s8571_s9 + $0x68] sm:$0xff] %v5738_v50  }
 0x4e4   : > { %5787 = vst [vmem:[%s8571_s9 + $0x60] sm:$0xff] %v5733_v21   ;;  %v6551_v14 = vpop.f32.mrb[216].mxu0 }
 0x4e5   : > { %v4709_v42 = vpop.f32.mrb[217].mxu0  ;;  %v4718_v61 = vadd.f32 %v6551_v14, %v8563_v22 }
 0x4e6   : > { %v6552_v34 = vpop.f32.mrb[218].mxu0  ;;  %v4710_v44 = vadd.f32 %v8563_v22, %v4709_v42 }
 0x4e7   : > { %v4721_v41 = vadd.f32 %v6552_v34, %v8563_v22  ;;  %v4712_v33 = vpop.f32.mrb[219].mxu0 }
 0x4e8   : > { %v4713_v54 = vadd.f32 %v8563_v22, %v4712_v33 }
 0x4e9   : > { %v5748_v51 = vpack.c.bf16 %v4721_v41, %v4718_v61 }
 0x4ea   : > { %v5743_v23 = vpack.c.bf16 %v4713_v54, %v4710_v44 }
 0x4eb   : > { %5790 = vst [vmem:[%s8571_s9 + $0x78] sm:$0xff] %v5748_v51  }
 0x4ec   : > { %5789 = vst [vmem:[%s8571_s9 + $0x70] sm:$0xff] %v5743_v23  }
 0x4ed   : > { %7095 = shalt.err (!%p7092_p7)
}
 0x4ee   : > { %s7096_s22 = scalar_lea.hbm %s8620_s13, 2048  ;;  %s7100_s8 = scalar_lea.hbm %s8676_s7, 4096 }
 0x4ef   : > { %p7097_p8 = scmp.ne.s32.totalorder %s8620_s13, %s7096_s22  ;;  %p7101_p1 = scmp.lt.u32.totalorder %s8620_s13, %s8676_s7 }
 0x4f0   : > { %p7102_p0 = scmp.lt.u32.totalorder %s7100_s8, %s7096_s22  ;;  %p7104_p6 = scmp.lt.u32.totalorder %s7096_s22, %s8620_s13 }
 0x4f1   : > { %p7098_p11 = pnand %p7097_p8, %p8715_p9 }
 0x4f2   : > { %p7103_p5 = por %p7102_p0, %p7101_p1 }
 0x4f3   : > { %p7099_p13 = pneg %p7098_p11 }
 0x4f4   : > { %p7105_p10 = por %p7104_p6, %p7103_p5 }
 0x4f6   : > { %p7106_p12 = pnand %p7105_p10, %p7099_p13 }
 0x4f8   : > { %7109 = shalt.err (!%p7106_p12)
}
 0x4f9   : > { %s7157_s15 = smov 64   ;;  %s7158_s16 = smov 4  }
 0x4fa   : > { %6734 = dma.vmem_to_hbm [thread:$0]  (%p8715_p9), %s8622_s17, 2048, %s8620_s13, %s8628_s28, %s7157_s15, %s7157_s15, %s7158_s16  }
 0x4fb PF: > { %p6746_p2 = scmp.ge.s32.totalorder %s7148_s27, 2  ;;  %s4913_s19 = sand.u32 1, %s7136_s24  }
 0x4fc   : > { %p8716_p3 = scmp.ne.s32.totalorder %s8681_s12, 0  ;;  %s4914_s18 = scalar_lea.sflag [#allocation5], %s4913_s19 }
 0x4fe   : > { %p6741_p4 = pnand %p6746_p2, %p8716_p3 }
 0x500   : > { %7131 = dma.done.wait (!%p6741_p4), %s4914_s18, 2048  }
 0x501   : > { %7133 = vsyncadd (!%p6741_p4), %s4914_s18, 4294965248  ;;  %p18_p7 = scmp.ge.s32.totalorder %s7224_s30, 4   ;;  %s8717_s24 = smov %s7140_s25 }
 0x502   : > { %s8718_s25 = smov %s7144_s26  ;;  %s8719_s26 = smov %s7235_s10 }
 0x503   : > { %s8720_s27 = smov %s7224_s30  ;;  %20 = sbr.rel (!%p18_p7) target bundleno = 4 (0x4), region = 93 }
 0x50a   :  { %4919 = vsyncpa [#allocation4], 1 }
 0x50b   :  { %4921 = vsyncpa [#allocation4 + $0x1], 1 }
 0x50c   :  { %4922 = vsyncpa [#allocation5], 1 }
 0x50d   :  { %4924 = vsyncpa [#allocation5 + $0x1], 1 }

</bundles_post_ra>
